<compile_context>
chip_gen: v7x
topology: tpu7x:2x2x1
jax: 0.10.0
libtpu: 0.0.40
codegen_flags: <defaults>
</compile_context>

<pallas_src>
import jax
import jax.numpy as jnp
from jax import lax
from jax.experimental import pallas as pl
from jax.experimental.pallas import tpu as pltpu


_BN_EPS = 1e-3          # norm_cfg=dict(type='BN', momentum=0.03, eps=0.001)


# --------------------------------------------------------------------------
# Fully fused Pallas kernel (one grid step per image)
# --------------------------------------------------------------------------

def _bepc3_fused_kernel(x_ref, w1_ref, b1_ref, w2_ref, b2_ref,
                        rw1_ref, rb1_ref, rw2_ref, rb2_ref,
                        w3a_ref, w3b_ref, b3_ref, a_ref,
                        o_ref, pad_ref):
    """Fused BepC3StageBlock for one NHWC image.

    x_ref   : (1, H, W, Cin)
    w1/w2   : (Cin, ch)      folded 1x1 conv weights,  b1/b2: (1, ch)
    rw1/rw2 : (9, ch, ch)    reparameterized RepVGG taps, k = ky*3 + kx
    rb1/rb2 : (1, ch)
    w3a/w3b : (ch, cout)     split conv3 weight (blk-half / y2-half)
    b3      : (1, cout)
    a_ref   : (1, 1)         BottleRep adaptive alpha
    o_ref   : (1, H, W, cout)
    pad_ref : VMEM scratch (H+2, W+2, ch) — zero-padded conv workspace
    """
    _, h, w, cin = x_ref.shape
    ch = rb1_ref.shape[-1]
    cout = o_ref.shape[-1]

    x2d = x_ref[0].reshape(h * w, cin)

    # conv1 / conv2 : 1x1 conv (BN folded) + ReLU — two MXU matmuls on x2d.
    y1 = jnp.maximum(
        jnp.dot(x2d, w1_ref[...], preferred_element_type=jnp.float32)
        + b1_ref[...], 0.0)
    y2 = jnp.maximum(
        jnp.dot(x2d, w2_ref[...], preferred_element_type=jnp.float32)
        + b2_ref[...], 0.0)

    # Zero the padded scratch once: only the interior is rewritten below, so
    # the 1-pixel zero border is shared by both RepVGG 3x3 convolutions.
    pad_ref[...] = jnp.zeros_like(pad_ref)

    def conv3x3_relu(src2d, taps_ref, bias_ref):
        pad_ref[1:h + 1, 1:w + 1, :] = src2d.reshape(h, w, ch)
        acc = jnp.zeros((h * w, ch), jnp.float32)
        for k in range(9):                       # unrolled: 9 MXU matmuls
            ky, kx = divmod(k, 3)
            tap = pad_ref[ky:ky + h, kx:kx + w, :].reshape(h * w, ch)
            acc = acc + jnp.dot(tap, taps_ref[k],
                                preferred_element_type=jnp.float32)
        return jnp.maximum(acc + bias_ref[...], 0.0)

    # RepStageBlock(num_blocks=1) == one BottleRep == two RepVGG blocks.
    r1 = conv3x3_relu(y1, rw1_ref, rb1_ref)
    r2 = conv3x3_relu(r1, rw2_ref, rb2_ref)

    # BottleRep shortcut + channel concat + conv3 (+ BN + ReLU), concat fused
    # as two matmuls against the split conv3 weight.
    blk = r2 + a_ref[...] * y1
    out = (jnp.dot(blk, w3a_ref[...], preferred_element_type=jnp.float32)
           + jnp.dot(y2, w3b_ref[...], preferred_element_type=jnp.float32)
           + b3_ref[...])
    o_ref[...] = jnp.maximum(out, 0.0).reshape(1, h, w, cout).astype(o_ref.dtype)


# --------------------------------------------------------------------------
# Parameter folding (BN -> conv bias; RepVGG -> equivalent 3x3 conv)
# --------------------------------------------------------------------------

def _fold_conv_bn(w, bn, eps):
    """Fold eval-mode BN into an OIHW conv weight, returning (w', bias)."""
    scale = bn["g"] / jnp.sqrt(bn["v"] + eps)
    return w * scale[:, None, None, None], bn["b"] - bn["m"] * scale


def _fold_bn_only(bn, eps, ch):
    """Express a bare BN (RepVGG identity branch) as a 3x3 conv + bias."""
    eye = jnp.zeros((ch, ch, 3, 3), jnp.float32)
    eye = eye.at[jnp.arange(ch), jnp.arange(ch), 1, 1].set(1.0)
    return _fold_conv_bn(eye, bn, eps)


def _repvgg_equivalent(p, ch, eps):
    """RepVGG training-time branches -> single equivalent 3x3 conv + bias."""
    k3, b3 = _fold_conv_bn(p["w3"], p["bn3"], eps)
    k1, b1 = _fold_conv_bn(p["w1"], p["bn1"], eps)
    k1 = jnp.pad(k1, ((0, 0), (0, 0), (1, 1), (1, 1)))
    kid, bid = _fold_bn_only(p["bnid"], eps, ch)
    return k3 + k1 + kid, b3 + b1 + bid


def _oihw_to_taps(w):
    """(Cout, Cin, 3, 3) -> (9, Cin, Cout), tap k = ky*3 + kx."""
    return jnp.transpose(w, (2, 3, 1, 0)).reshape(9, w.shape[1], w.shape[0])


def _oihw_to_mat(w):
    """(Cout, Cin, 1, 1) -> (Cin, Cout)."""
    return jnp.transpose(w[:, :, 0, 0], (1, 0))


# --------------------------------------------------------------------------
# Full BepC3StageBlock forward
# --------------------------------------------------------------------------

@jax.jit
def bepc3_forward(x_nchw, params):
    n, cin, h, w = x_nchw.shape
    ch = params["conv1"]["w"].shape[0]        # hidden channels
    cout = params["conv3"]["w"].shape[0]

    x_nhwc = jnp.transpose(x_nchw, (0, 2, 3, 1))

    # Trace-time parameter folding (no runtime cost inside the kernel).
    w1, b1 = _fold_conv_bn(params["conv1"]["w"], params["conv1"]["bn"], _BN_EPS)
    w2, b2 = _fold_conv_bn(params["conv2"]["w"], params["conv2"]["bn"], _BN_EPS)
    wq1, bq1 = _repvgg_equivalent(params["rep1"], ch, _BN_EPS)
    wq2, bq2 = _repvgg_equivalent(params["rep2"], ch, _BN_EPS)
    w3, b3 = _fold_conv_bn(params["conv3"]["w"], params["conv3"]["bn"], _BN_EPS)
    w3_mat = _oihw_to_mat(w3)                 # (2*ch, cout)

    const2 = lambda i: (0, 0)
    const3 = lambda i: (0, 0, 0)

    out_nhwc = pl.pallas_call(
        _bepc3_fused_kernel,
        out_shape=jax.ShapeDtypeStruct((n, h, w, cout), x_nhwc.dtype),
        grid_spec=pltpu.PrefetchScalarGridSpec(
            num_scalar_prefetch=0,
            grid=(n,),
            in_specs=[
                pl.BlockSpec((1, h, w, cin), lambda i: (i, 0, 0, 0)),
                pl.BlockSpec((cin, ch), const2),      # conv1 weight (resident)
                pl.BlockSpec((1, ch), const2),        # conv1 bias
                pl.BlockSpec((cin, ch), const2),      # conv2 weight
                pl.BlockSpec((1, ch), const2),        # conv2 bias
                pl.BlockSpec((9, ch, ch), const3),    # RepVGG-1 taps
                pl.BlockSpec((1, ch), const2),        # RepVGG-1 bias
                pl.BlockSpec((9, ch, ch), const3),    # RepVGG-2 taps
                pl.BlockSpec((1, ch), const2),        # RepVGG-2 bias
                pl.BlockSpec((ch, cout), const2),     # conv3 weight (blk half)
                pl.BlockSpec((ch, cout), const2),     # conv3 weight (y2 half)
                pl.BlockSpec((1, cout), const2),      # conv3 bias
                pl.BlockSpec((1, 1), const2),         # BottleRep alpha
            ],
            out_specs=pl.BlockSpec((1, h, w, cout), lambda i: (i, 0, 0, 0)),
            scratch_shapes=[pltpu.VMEM((h + 2, w + 2, ch), jnp.float32)],
        ),
        compiler_params=pltpu.CompilerParams(
            dimension_semantics=("parallel",)),
    )(x_nhwc,
      _oihw_to_mat(w1), b1.reshape(1, ch),
      _oihw_to_mat(w2), b2.reshape(1, ch),
      _oihw_to_taps(wq1), bq1.reshape(1, ch),
      _oihw_to_taps(wq2), bq2.reshape(1, ch),
      w3_mat[:ch], w3_mat[ch:], b3.reshape(1, cout),
      params["alpha"].reshape(1, 1))

    return jnp.transpose(out_nhwc, (0, 3, 1, 2))


# --------------------------------------------------------------------------
# Pure-JAX reference (un-fused branches, eval-mode BN) for verification
# --------------------------------------------------------------------------

_PREC = lax.Precision.HIGHEST


def _conv_ref(x, w, padding):
    return lax.conv_general_dilated(
        x, w, window_strides=(1, 1),
        padding=[(padding, padding), (padding, padding)],
        dimension_numbers=("NCHW", "OIHW", "NCHW"),
        precision=_PREC)


def _bn_ref(x, bn, eps):
    scale = (bn["g"] / jnp.sqrt(bn["v"] + eps))[None, :, None, None]
    return (x - bn["m"][None, :, None, None]) * scale + bn["b"][None, :, None, None]


def _convmodule_ref(x, w, bn, eps):
    return jnp.maximum(_bn_ref(_conv_ref(x, w, 0), bn, eps), 0.0)


def _repvgg_ref(x, p, eps):
    dense = _bn_ref(_conv_ref(x, p["w3"], 1), p["bn3"], eps)
    one = _bn_ref(_conv_ref(x, p["w1"], 0), p["bn1"], eps)
    ident = _bn_ref(x, p["bnid"], eps)
    return jnp.maximum(dense + one + ident, 0.0)


def bepc3_reference(x, params):
    y1 = _convmodule_ref(x, params["conv1"]["w"], params["conv1"]["bn"], _BN_EPS)
    y2 = _convmodule_ref(x, params["conv2"]["w"], params["conv2"]["bn"], _BN_EPS)
    r = _repvgg_ref(_repvgg_ref(y1, params["rep1"], _BN_EPS), params["rep2"], _BN_EPS)
    blk = r + params["alpha"][0] * y1
    cat = jnp.concatenate([blk, y2], axis=1)
    return _convmodule_ref(cat, params["conv3"]["w"], params["conv3"]["bn"], _BN_EPS)


# --------------------------------------------------------------------------
# Deterministic parameter construction
# --------------------------------------------------------------------------

def _make_bn(key, c):
    kg, kb, km, kv = jax.random.split(key, 4)
    return dict(
        g=1.0 + 0.1 * jax.random.normal(kg, (c,), jnp.float32),
        b=0.1 * jax.random.normal(kb, (c,), jnp.float32),
        m=0.1 * jax.random.normal(km, (c,), jnp.float32),
        v=jax.random.uniform(kv, (c,), jnp.float32, minval=0.5, maxval=1.5),
    )


def _make_conv(key, cout, cin, k):
    std = 1.0 / float(cin * k * k) ** 0.5
    return std * jax.random.normal(key, (cout, cin, k, k), jnp.float32)


def make_params(key, in_channels, out_channels, hidden_ratio=0.5):
    ch = int(out_channels * hidden_ratio)
    keys = jax.random.split(key, 16)

    def rep(k0, k1, k2, k3, k4):
        return dict(
            w3=_make_conv(k0, ch, ch, 3), bn3=_make_bn(k1, ch),
            w1=_make_conv(k2, ch, ch, 1), bn1=_make_bn(k3, ch),
            bnid=_make_bn(k4, ch),
        )

    return dict(
        conv1=dict(w=_make_conv(keys[0], ch, in_channels, 1), bn=_make_bn(keys[1], ch)),
        conv2=dict(w=_make_conv(keys[2], ch, in_channels, 1), bn=_make_bn(keys[3], ch)),
        conv3=dict(w=_make_conv(keys[4], out_channels, 2 * ch, 1),
                   bn=_make_bn(keys[5], out_channels)),
        rep1=rep(*keys[6:11]),
        rep2=rep(*keys[11:16]),
        alpha=jnp.ones((1,), jnp.float32),   # BottleRep adaptive_weight init
    )


if __name__ == "__main__":
    key = jax.random.PRNGKey(0)
    k_x, k_p = jax.random.split(key)

    N, C_IN, C_OUT, H, W = 2, 16, 16, 16, 16
    x = jax.random.normal(k_x, (N, C_IN, H, W), dtype=jnp.float32)
    params = make_params(k_p, C_IN, C_OUT, hidden_ratio=0.5)

    out = bepc3_forward(x, params)
    out = jax.block_until_ready(out)

    ref = bepc3_reference(x, params)
    assert out.shape == (N, C_OUT, H, W), out.shape
    assert out.dtype == x.dtype
    max_err = float(jnp.max(jnp.abs(out - ref)))
    assert jnp.allclose(out, ref, atol=1e-2, rtol=1e-2), f"max abs err {max_err}"

    print("KERNEL_OK")
</pallas_src>

<mosaic_0001>
module attributes {stable_mosaic.version = 11 : i64} {
  func.func @_bepc3_fused_kernel(%arg0: i32, %arg1: memref<1x16x16x16xf32, #tpu.memory_space<vmem>>, %arg2: memref<16x8xf32, #tpu.memory_space<vmem>>, %arg3: memref<1x8xf32, #tpu.memory_space<vmem>>, %arg4: memref<16x8xf32, #tpu.memory_space<vmem>>, %arg5: memref<1x8xf32, #tpu.memory_space<vmem>>, %arg6: memref<9x8x8xf32, #tpu.memory_space<vmem>>, %arg7: memref<1x8xf32, #tpu.memory_space<vmem>>, %arg8: memref<9x8x8xf32, #tpu.memory_space<vmem>>, %arg9: memref<1x8xf32, #tpu.memory_space<vmem>>, %arg10: memref<8x16xf32, #tpu.memory_space<vmem>>, %arg11: memref<8x16xf32, #tpu.memory_space<vmem>>, %arg12: memref<1x16xf32, #tpu.memory_space<vmem>>, %arg13: memref<1x1xf32, #tpu.memory_space<vmem>>, %arg14: memref<1x16x16x16xf32, #tpu.memory_space<vmem>>, %arg15: memref<18x18x8xf32, #tpu.memory_space<vmem>>) attributes {dimension_semantics = [#tpu.dimension_semantics<parallel>], iteration_bounds = array<i64: 2>, scalar_prefetch = 0 : i64, scratch_operands = 1 : i64, tpu.core_type = #tpu.core_type<tc>, window_params = [{transform_indices = @transform_0, window_bounds = array<i64: 1, 16, 16, 16>}, {pipeline_mode = #tpu.pipeline_mode<synchronous>, transform_indices = @transform_1, window_bounds = array<i64: 16, 8>}, {pipeline_mode = #tpu.pipeline_mode<synchronous>, transform_indices = @transform_2, window_bounds = array<i64: 1, 8>}, {pipeline_mode = #tpu.pipeline_mode<synchronous>, transform_indices = @transform_3, window_bounds = array<i64: 16, 8>}, {pipeline_mode = #tpu.pipeline_mode<synchronous>, transform_indices = @transform_4, window_bounds = array<i64: 1, 8>}, {pipeline_mode = #tpu.pipeline_mode<synchronous>, transform_indices = @transform_5, window_bounds = array<i64: 9, 8, 8>}, {pipeline_mode = #tpu.pipeline_mode<synchronous>, transform_indices = @transform_6, window_bounds = array<i64: 1, 8>}, {pipeline_mode = #tpu.pipeline_mode<synchronous>, transform_indices = @transform_7, window_bounds = array<i64: 9, 8, 8>}, {pipeline_mode = #tpu.pipeline_mode<synchronous>, transform_indices = @transform_8, window_bounds = array<i64: 1, 8>}, {pipeline_mode = #tpu.pipeline_mode<synchronous>, transform_indices = @transform_9, window_bounds = array<i64: 8, 16>}, {pipeline_mode = #tpu.pipeline_mode<synchronous>, transform_indices = @transform_10, window_bounds = array<i64: 8, 16>}, {pipeline_mode = #tpu.pipeline_mode<synchronous>, transform_indices = @transform_11, window_bounds = array<i64: 1, 16>}, {pipeline_mode = #tpu.pipeline_mode<synchronous>, transform_indices = @transform_12, window_bounds = array<i64: 1, 1>}, {transform_indices = @transform_13, window_bounds = array<i64: 1, 16, 16, 16>}]} {
    %c0 = arith.constant 0 : index
    %c0_0 = arith.constant 0 : index
    %c0_1 = arith.constant 0 : index
    %c0_2 = arith.constant 0 : index
    %0 = vector.load %arg1[%c0, %c0_0, %c0_1, %c0_2] : memref<1x16x16x16xf32, #tpu.memory_space<vmem>>, vector<1x16x16x16xf32>
    %1 = vector.shape_cast %0 : vector<1x16x16x16xf32> to vector<16x16x16xf32>
    %2 = vector.shape_cast %1 : vector<16x16x16xf32> to vector<256x16xf32>
    %c0_3 = arith.constant 0 : index
    %c0_4 = arith.constant 0 : index
    %3 = vector.load %arg2[%c0_3, %c0_4] : memref<16x8xf32, #tpu.memory_space<vmem>>, vector<16x8xf32>
    %cst = arith.constant dense<0.000000e+00> : vector<256x8xf32>
    %4 = tpu.matmul %2, %3, %cst {dimension_numbers = #tpu.dot_dimension_numbers<[1], [0], [0], [1], [0, 0, 1, 1], [], []>} : vector<256x16xf32>, vector<16x8xf32>, vector<256x8xf32> -> vector<256x8xf32>
    %c0_5 = arith.constant 0 : index
    %c0_6 = arith.constant 0 : index
    %5 = vector.load %arg3[%c0_5, %c0_6] : memref<1x8xf32, #tpu.memory_space<vmem>>, vector<1x8xf32>
    %6 = vector.broadcast %5 : vector<1x8xf32> to vector<256x8xf32>
    %7 = arith.addf %4, %6 : vector<256x8xf32>
    %cst_7 = arith.constant 0.000000e+00 : f32
    %8 = vector.broadcast %cst_7 : f32 to vector<256x8xf32>
    %9 = arith.maximumf %7, %8 : vector<256x8xf32>
    %c0_8 = arith.constant 0 : index
    %c0_9 = arith.constant 0 : index
    %10 = vector.load %arg4[%c0_8, %c0_9] : memref<16x8xf32, #tpu.memory_space<vmem>>, vector<16x8xf32>
    %cst_10 = arith.constant dense<0.000000e+00> : vector<256x8xf32>
    %11 = tpu.matmul %2, %10, %cst_10 {dimension_numbers = #tpu.dot_dimension_numbers<[1], [0], [0], [1], [0, 0, 1, 1], [], []>} : vector<256x16xf32>, vector<16x8xf32>, vector<256x8xf32> -> vector<256x8xf32>
    %c0_11 = arith.constant 0 : index
    %c0_12 = arith.constant 0 : index
    %12 = vector.load %arg5[%c0_11, %c0_12] : memref<1x8xf32, #tpu.memory_space<vmem>>, vector<1x8xf32>
    %13 = vector.broadcast %12 : vector<1x8xf32> to vector<256x8xf32>
    %14 = arith.addf %11, %13 : vector<256x8xf32>
    %cst_13 = arith.constant 0.000000e+00 : f32
    %15 = vector.broadcast %cst_13 : f32 to vector<256x8xf32>
    %16 = arith.maximumf %14, %15 : vector<256x8xf32>
    %cst_14 = arith.constant 0.000000e+00 : f32
    %17 = vector.broadcast %cst_14 : f32 to vector<18x18x8xf32>
    %c0_15 = arith.constant 0 : index
    %c0_16 = arith.constant 0 : index
    %c0_17 = arith.constant 0 : index
    %18 = vector.load %arg15[%c0_15, %c0_16, %c0_17] : memref<18x18x8xf32, #tpu.memory_space<vmem>>, vector<18x18x8xf32>
    tpu.vector_store %arg15[%c0_15, %c0_16, %c0_17], %17 {strides = array<i32>} : memref<18x18x8xf32, #tpu.memory_space<vmem>>, vector<18x18x8xf32>,
    %19 = vector.shape_cast %9 : vector<256x8xf32> to vector<16x16x8xf32>
    %c1 = arith.constant 1 : index
    %c1_18 = arith.constant 1 : index
    %c0_19 = arith.constant 0 : index
    %20 = vector.load %arg15[%c1, %c1_18, %c0_19] : memref<18x18x8xf32, #tpu.memory_space<vmem>>, vector<16x16x8xf32>
    tpu.vector_store %arg15[%c1, %c1_18, %c0_19], %19 {strides = array<i32>} : memref<18x18x8xf32, #tpu.memory_space<vmem>>, vector<16x16x8xf32>,
    %cst_20 = arith.constant 0.000000e+00 : f32
    %21 = vector.broadcast %cst_20 : f32 to vector<256x8xf32>
    %c0_21 = arith.constant 0 : index
    %c0_22 = arith.constant 0 : index
    %c0_23 = arith.constant 0 : index
    %22 = vector.load %arg15[%c0_21, %c0_22, %c0_23] : memref<18x18x8xf32, #tpu.memory_space<vmem>>, vector<16x16x8xf32>
    %23 = vector.shape_cast %22 : vector<16x16x8xf32> to vector<256x8xf32>
    %c0_24 = arith.constant 0 : index
    %c0_25 = arith.constant 0 : index
    %c0_26 = arith.constant 0 : index
    %24 = vector.load %arg6[%c0_24, %c0_25, %c0_26] : memref<9x8x8xf32, #tpu.memory_space<vmem>>, vector<1x8x8xf32>
    %25 = vector.shape_cast %24 : vector<1x8x8xf32> to vector<8x8xf32>
    %cst_27 = arith.constant dense<0.000000e+00> : vector<256x8xf32>
    %26 = tpu.matmul %23, %25, %cst_27 {dimension_numbers = #tpu.dot_dimension_numbers<[1], [0], [0], [1], [0, 0, 1, 1], [], []>} : vector<256x8xf32>, vector<8x8xf32>, vector<256x8xf32> -> vector<256x8xf32>
    %27 = arith.addf %21, %26 : vector<256x8xf32>
    %c0_28 = arith.constant 0 : index
    %c1_29 = arith.constant 1 : index
    %c0_30 = arith.constant 0 : index
    %28 = vector.load %arg15[%c0_28, %c1_29, %c0_30] : memref<18x18x8xf32, #tpu.memory_space<vmem>>, vector<16x16x8xf32>
    %29 = vector.shape_cast %28 : vector<16x16x8xf32> to vector<256x8xf32>
    %c1_31 = arith.constant 1 : index
    %c0_32 = arith.constant 0 : index
    %c0_33 = arith.constant 0 : index
    %30 = vector.load %arg6[%c1_31, %c0_32, %c0_33] : memref<9x8x8xf32, #tpu.memory_space<vmem>>, vector<1x8x8xf32>
    %31 = vector.shape_cast %30 : vector<1x8x8xf32> to vector<8x8xf32>
    %cst_34 = arith.constant dense<0.000000e+00> : vector<256x8xf32>
    %32 = tpu.matmul %29, %31, %cst_34 {dimension_numbers = #tpu.dot_dimension_numbers<[1], [0], [0], [1], [0, 0, 1, 1], [], []>} : vector<256x8xf32>, vector<8x8xf32>, vector<256x8xf32> -> vector<256x8xf32>
    %33 = arith.addf %27, %32 : vector<256x8xf32>
    %c0_35 = arith.constant 0 : index
    %c2 = arith.constant 2 : index
    %c0_36 = arith.constant 0 : index
    %34 = vector.load %arg15[%c0_35, %c2, %c0_36] : memref<18x18x8xf32, #tpu.memory_space<vmem>>, vector<16x16x8xf32>
    %35 = vector.shape_cast %34 : vector<16x16x8xf32> to vector<256x8xf32>
    %c2_37 = arith.constant 2 : index
    %c0_38 = arith.constant 0 : index
    %c0_39 = arith.constant 0 : index
    %36 = vector.load %arg6[%c2_37, %c0_38, %c0_39] : memref<9x8x8xf32, #tpu.memory_space<vmem>>, vector<1x8x8xf32>
    %37 = vector.shape_cast %36 : vector<1x8x8xf32> to vector<8x8xf32>
    %cst_40 = arith.constant dense<0.000000e+00> : vector<256x8xf32>
    %38 = tpu.matmul %35, %37, %cst_40 {dimension_numbers = #tpu.dot_dimension_numbers<[1], [0], [0], [1], [0, 0, 1, 1], [], []>} : vector<256x8xf32>, vector<8x8xf32>, vector<256x8xf32> -> vector<256x8xf32>
    %39 = arith.addf %33, %38 : vector<256x8xf32>
    %c1_41 = arith.constant 1 : index
    %c0_42 = arith.constant 0 : index
    %c0_43 = arith.constant 0 : index
    %40 = vector.load %arg15[%c1_41, %c0_42, %c0_43] : memref<18x18x8xf32, #tpu.memory_space<vmem>>, vector<16x16x8xf32>
    %41 = vector.shape_cast %40 : vector<16x16x8xf32> to vector<256x8xf32>
    %c3 = arith.constant 3 : index
    %c0_44 = arith.constant 0 : index
    %c0_45 = arith.constant 0 : index
    %42 = vector.load %arg6[%c3, %c0_44, %c0_45] : memref<9x8x8xf32, #tpu.memory_space<vmem>>, vector<1x8x8xf32>
    %43 = vector.shape_cast %42 : vector<1x8x8xf32> to vector<8x8xf32>
    %cst_46 = arith.constant dense<0.000000e+00> : vector<256x8xf32>
    %44 = tpu.matmul %41, %43, %cst_46 {dimension_numbers = #tpu.dot_dimension_numbers<[1], [0], [0], [1], [0, 0, 1, 1], [], []>} : vector<256x8xf32>, vector<8x8xf32>, vector<256x8xf32> -> vector<256x8xf32>
    %45 = arith.addf %39, %44 : vector<256x8xf32>
    %c1_47 = arith.constant 1 : index
    %c1_48 = arith.constant 1 : index
    %c0_49 = arith.constant 0 : index
    %46 = vector.load %arg15[%c1_47, %c1_48, %c0_49] : memref<18x18x8xf32, #tpu.memory_space<vmem>>, vector<16x16x8xf32>
    %47 = vector.shape_cast %46 : vector<16x16x8xf32> to vector<256x8xf32>
    %c4 = arith.constant 4 : index
    %c0_50 = arith.constant 0 : index
    %c0_51 = arith.constant 0 : index
    %48 = vector.load %arg6[%c4, %c0_50, %c0_51] : memref<9x8x8xf32, #tpu.memory_space<vmem>>, vector<1x8x8xf32>
    %49 = vector.shape_cast %48 : vector<1x8x8xf32> to vector<8x8xf32>
    %cst_52 = arith.constant dense<0.000000e+00> : vector<256x8xf32>
    %50 = tpu.matmul %47, %49, %cst_52 {dimension_numbers = #tpu.dot_dimension_numbers<[1], [0], [0], [1], [0, 0, 1, 1], [], []>} : vector<256x8xf32>, vector<8x8xf32>, vector<256x8xf32> -> vector<256x8xf32>
    %51 = arith.addf %45, %50 : vector<256x8xf32>
    %c1_53 = arith.constant 1 : index
    %c2_54 = arith.constant 2 : index
    %c0_55 = arith.constant 0 : index
    %52 = vector.load %arg15[%c1_53, %c2_54, %c0_55] : memref<18x18x8xf32, #tpu.memory_space<vmem>>, vector<16x16x8xf32>
    %53 = vector.shape_cast %52 : vector<16x16x8xf32> to vector<256x8xf32>
    %c5 = arith.constant 5 : index
    %c0_56 = arith.constant 0 : index
    %c0_57 = arith.constant 0 : index
    %54 = vector.load %arg6[%c5, %c0_56, %c0_57] : memref<9x8x8xf32, #tpu.memory_space<vmem>>, vector<1x8x8xf32>
    %55 = vector.shape_cast %54 : vector<1x8x8xf32> to vector<8x8xf32>
    %cst_58 = arith.constant dense<0.000000e+00> : vector<256x8xf32>
    %56 = tpu.matmul %53, %55, %cst_58 {dimension_numbers = #tpu.dot_dimension_numbers<[1], [0], [0], [1], [0, 0, 1, 1], [], []>} : vector<256x8xf32>, vector<8x8xf32>, vector<256x8xf32> -> vector<256x8xf32>
    %57 = arith.addf %51, %56 : vector<256x8xf32>
    %c2_59 = arith.constant 2 : index
    %c0_60 = arith.constant 0 : index
    %c0_61 = arith.constant 0 : index
    %58 = vector.load %arg15[%c2_59, %c0_60, %c0_61] : memref<18x18x8xf32, #tpu.memory_space<vmem>>, vector<16x16x8xf32>
    %59 = vector.shape_cast %58 : vector<16x16x8xf32> to vector<256x8xf32>
    %c6 = arith.constant 6 : index
    %c0_62 = arith.constant 0 : index
    %c0_63 = arith.constant 0 : index
    %60 = vector.load %arg6[%c6, %c0_62, %c0_63] : memref<9x8x8xf32, #tpu.memory_space<vmem>>, vector<1x8x8xf32>
    %61 = vector.shape_cast %60 : vector<1x8x8xf32> to vector<8x8xf32>
    %cst_64 = arith.constant dense<0.000000e+00> : vector<256x8xf32>
    %62 = tpu.matmul %59, %61, %cst_64 {dimension_numbers = #tpu.dot_dimension_numbers<[1], [0], [0], [1], [0, 0, 1, 1], [], []>} : vector<256x8xf32>, vector<8x8xf32>, vector<256x8xf32> -> vector<256x8xf32>
    %63 = arith.addf %57, %62 : vector<256x8xf32>
    %c2_65 = arith.constant 2 : index
    %c1_66 = arith.constant 1 : index
    %c0_67 = arith.constant 0 : index
    %64 = vector.load %arg15[%c2_65, %c1_66, %c0_67] : memref<18x18x8xf32, #tpu.memory_space<vmem>>, vector<16x16x8xf32>
    %65 = vector.shape_cast %64 : vector<16x16x8xf32> to vector<256x8xf32>
    %c7 = arith.constant 7 : index
    %c0_68 = arith.constant 0 : index
    %c0_69 = arith.constant 0 : index
    %66 = vector.load %arg6[%c7, %c0_68, %c0_69] : memref<9x8x8xf32, #tpu.memory_space<vmem>>, vector<1x8x8xf32>
    %67 = vector.shape_cast %66 : vector<1x8x8xf32> to vector<8x8xf32>
    %cst_70 = arith.constant dense<0.000000e+00> : vector<256x8xf32>
    %68 = tpu.matmul %65, %67, %cst_70 {dimension_numbers = #tpu.dot_dimension_numbers<[1], [0], [0], [1], [0, 0, 1, 1], [], []>} : vector<256x8xf32>, vector<8x8xf32>, vector<256x8xf32> -> vector<256x8xf32>
    %69 = arith.addf %63, %68 : vector<256x8xf32>
    %c2_71 = arith.constant 2 : index
    %c2_72 = arith.constant 2 : index
    %c0_73 = arith.constant 0 : index
    %70 = vector.load %arg15[%c2_71, %c2_72, %c0_73] : memref<18x18x8xf32, #tpu.memory_space<vmem>>, vector<16x16x8xf32>
    %71 = vector.shape_cast %70 : vector<16x16x8xf32> to vector<256x8xf32>
    %c8 = arith.constant 8 : index
    %c0_74 = arith.constant 0 : index
    %c0_75 = arith.constant 0 : index
    %72 = vector.load %arg6[%c8, %c0_74, %c0_75] : memref<9x8x8xf32, #tpu.memory_space<vmem>>, vector<1x8x8xf32>
    %73 = vector.shape_cast %72 : vector<1x8x8xf32> to vector<8x8xf32>
    %cst_76 = arith.constant dense<0.000000e+00> : vector<256x8xf32>
    %74 = tpu.matmul %71, %73, %cst_76 {dimension_numbers = #tpu.dot_dimension_numbers<[1], [0], [0], [1], [0, 0, 1, 1], [], []>} : vector<256x8xf32>, vector<8x8xf32>, vector<256x8xf32> -> vector<256x8xf32>
    %75 = arith.addf %69, %74 : vector<256x8xf32>
    %c0_77 = arith.constant 0 : index
    %c0_78 = arith.constant 0 : index
    %76 = vector.load %arg7[%c0_77, %c0_78] : memref<1x8xf32, #tpu.memory_space<vmem>>, vector<1x8xf32>
    %77 = vector.broadcast %76 : vector<1x8xf32> to vector<256x8xf32>
    %78 = arith.addf %75, %77 : vector<256x8xf32>
    %cst_79 = arith.constant 0.000000e+00 : f32
    %79 = vector.broadcast %cst_79 : f32 to vector<256x8xf32>
    %80 = arith.maximumf %78, %79 : vector<256x8xf32>
    %81 = vector.shape_cast %80 : vector<256x8xf32> to vector<16x16x8xf32>
    %c1_80 = arith.constant 1 : index
    %c1_81 = arith.constant 1 : index
    %c0_82 = arith.constant 0 : index
    %82 = vector.load %arg15[%c1_80, %c1_81, %c0_82] : memref<18x18x8xf32, #tpu.memory_space<vmem>>, vector<16x16x8xf32>
    tpu.vector_store %arg15[%c1_80, %c1_81, %c0_82], %81 {strides = array<i32>} : memref<18x18x8xf32, #tpu.memory_space<vmem>>, vector<16x16x8xf32>,
    %cst_83 = arith.constant 0.000000e+00 : f32
    %83 = vector.broadcast %cst_83 : f32 to vector<256x8xf32>
    %c0_84 = arith.constant 0 : index
    %c0_85 = arith.constant 0 : index
    %c0_86 = arith.constant 0 : index
    %84 = vector.load %arg15[%c0_84, %c0_85, %c0_86] : memref<18x18x8xf32, #tpu.memory_space<vmem>>, vector<16x16x8xf32>
    %85 = vector.shape_cast %84 : vector<16x16x8xf32> to vector<256x8xf32>
    %c0_87 = arith.constant 0 : index
    %c0_88 = arith.constant 0 : index
    %c0_89 = arith.constant 0 : index
    %86 = vector.load %arg8[%c0_87, %c0_88, %c0_89] : memref<9x8x8xf32, #tpu.memory_space<vmem>>, vector<1x8x8xf32>
    %87 = vector.shape_cast %86 : vector<1x8x8xf32> to vector<8x8xf32>
    %cst_90 = arith.constant dense<0.000000e+00> : vector<256x8xf32>
    %88 = tpu.matmul %85, %87, %cst_90 {dimension_numbers = #tpu.dot_dimension_numbers<[1], [0], [0], [1], [0, 0, 1, 1], [], []>} : vector<256x8xf32>, vector<8x8xf32>, vector<256x8xf32> -> vector<256x8xf32>
    %89 = arith.addf %83, %88 : vector<256x8xf32>
    %c0_91 = arith.constant 0 : index
    %c1_92 = arith.constant 1 : index
    %c0_93 = arith.constant 0 : index
    %90 = vector.load %arg15[%c0_91, %c1_92, %c0_93] : memref<18x18x8xf32, #tpu.memory_space<vmem>>, vector<16x16x8xf32>
    %91 = vector.shape_cast %90 : vector<16x16x8xf32> to vector<256x8xf32>
    %c1_94 = arith.constant 1 : index
    %c0_95 = arith.constant 0 : index
    %c0_96 = arith.constant 0 : index
    %92 = vector.load %arg8[%c1_94, %c0_95, %c0_96] : memref<9x8x8xf32, #tpu.memory_space<vmem>>, vector<1x8x8xf32>
    %93 = vector.shape_cast %92 : vector<1x8x8xf32> to vector<8x8xf32>
    %cst_97 = arith.constant dense<0.000000e+00> : vector<256x8xf32>
    %94 = tpu.matmul %91, %93, %cst_97 {dimension_numbers = #tpu.dot_dimension_numbers<[1], [0], [0], [1], [0, 0, 1, 1], [], []>} : vector<256x8xf32>, vector<8x8xf32>, vector<256x8xf32> -> vector<256x8xf32>
    %95 = arith.addf %89, %94 : vector<256x8xf32>
    %c0_98 = arith.constant 0 : index
    %c2_99 = arith.constant 2 : index
    %c0_100 = arith.constant 0 : index
    %96 = vector.load %arg15[%c0_98, %c2_99, %c0_100] : memref<18x18x8xf32, #tpu.memory_space<vmem>>, vector<16x16x8xf32>
    %97 = vector.shape_cast %96 : vector<16x16x8xf32> to vector<256x8xf32>
    %c2_101 = arith.constant 2 : index
    %c0_102 = arith.constant 0 : index
    %c0_103 = arith.constant 0 : index
    %98 = vector.load %arg8[%c2_101, %c0_102, %c0_103] : memref<9x8x8xf32, #tpu.memory_space<vmem>>, vector<1x8x8xf32>
    %99 = vector.shape_cast %98 : vector<1x8x8xf32> to vector<8x8xf32>
    %cst_104 = arith.constant dense<0.000000e+00> : vector<256x8xf32>
    %100 = tpu.matmul %97, %99, %cst_104 {dimension_numbers = #tpu.dot_dimension_numbers<[1], [0], [0], [1], [0, 0, 1, 1], [], []>} : vector<256x8xf32>, vector<8x8xf32>, vector<256x8xf32> -> vector<256x8xf32>
    %101 = arith.addf %95, %100 : vector<256x8xf32>
    %c1_105 = arith.constant 1 : index
    %c0_106 = arith.constant 0 : index
    %c0_107 = arith.constant 0 : index
    %102 = vector.load %arg15[%c1_105, %c0_106, %c0_107] : memref<18x18x8xf32, #tpu.memory_space<vmem>>, vector<16x16x8xf32>
    %103 = vector.shape_cast %102 : vector<16x16x8xf32> to vector<256x8xf32>
    %c3_108 = arith.constant 3 : index
    %c0_109 = arith.constant 0 : index
    %c0_110 = arith.constant 0 : index
    %104 = vector.load %arg8[%c3_108, %c0_109, %c0_110] : memref<9x8x8xf32, #tpu.memory_space<vmem>>, vector<1x8x8xf32>
    %105 = vector.shape_cast %104 : vector<1x8x8xf32> to vector<8x8xf32>
    %cst_111 = arith.constant dense<0.000000e+00> : vector<256x8xf32>
    %106 = tpu.matmul %103, %105, %cst_111 {dimension_numbers = #tpu.dot_dimension_numbers<[1], [0], [0], [1], [0, 0, 1, 1], [], []>} : vector<256x8xf32>, vector<8x8xf32>, vector<256x8xf32> -> vector<256x8xf32>
    %107 = arith.addf %101, %106 : vector<256x8xf32>
    %c1_112 = arith.constant 1 : index
    %c1_113 = arith.constant 1 : index
    %c0_114 = arith.constant 0 : index
    %108 = vector.load %arg15[%c1_112, %c1_113, %c0_114] : memref<18x18x8xf32, #tpu.memory_space<vmem>>, vector<16x16x8xf32>
    %109 = vector.shape_cast %108 : vector<16x16x8xf32> to vector<256x8xf32>
    %c4_115 = arith.constant 4 : index
    %c0_116 = arith.constant 0 : index
    %c0_117 = arith.constant 0 : index
    %110 = vector.load %arg8[%c4_115, %c0_116, %c0_117] : memref<9x8x8xf32, #tpu.memory_space<vmem>>, vector<1x8x8xf32>
    %111 = vector.shape_cast %110 : vector<1x8x8xf32> to vector<8x8xf32>
    %cst_118 = arith.constant dense<0.000000e+00> : vector<256x8xf32>
    %112 = tpu.matmul %109, %111, %cst_118 {dimension_numbers = #tpu.dot_dimension_numbers<[1], [0], [0], [1], [0, 0, 1, 1], [], []>} : vector<256x8xf32>, vector<8x8xf32>, vector<256x8xf32> -> vector<256x8xf32>
    %113 = arith.addf %107, %112 : vector<256x8xf32>
    %c1_119 = arith.constant 1 : index
    %c2_120 = arith.constant 2 : index
    %c0_121 = arith.constant 0 : index
    %114 = vector.load %arg15[%c1_119, %c2_120, %c0_121] : memref<18x18x8xf32, #tpu.memory_space<vmem>>, vector<16x16x8xf32>
    %115 = vector.shape_cast %114 : vector<16x16x8xf32> to vector<256x8xf32>
    %c5_122 = arith.constant 5 : index
    %c0_123 = arith.constant 0 : index
    %c0_124 = arith.constant 0 : index
    %116 = vector.load %arg8[%c5_122, %c0_123, %c0_124] : memref<9x8x8xf32, #tpu.memory_space<vmem>>, vector<1x8x8xf32>
    %117 = vector.shape_cast %116 : vector<1x8x8xf32> to vector<8x8xf32>
    %cst_125 = arith.constant dense<0.000000e+00> : vector<256x8xf32>
    %118 = tpu.matmul %115, %117, %cst_125 {dimension_numbers = #tpu.dot_dimension_numbers<[1], [0], [0], [1], [0, 0, 1, 1], [], []>} : vector<256x8xf32>, vector<8x8xf32>, vector<256x8xf32> -> vector<256x8xf32>
    %119 = arith.addf %113, %118 : vector<256x8xf32>
    %c2_126 = arith.constant 2 : index
    %c0_127 = arith.constant 0 : index
    %c0_128 = arith.constant 0 : index
    %120 = vector.load %arg15[%c2_126, %c0_127, %c0_128] : memref<18x18x8xf32, #tpu.memory_space<vmem>>, vector<16x16x8xf32>
    %121 = vector.shape_cast %120 : vector<16x16x8xf32> to vector<256x8xf32>
    %c6_129 = arith.constant 6 : index
    %c0_130 = arith.constant 0 : index
    %c0_131 = arith.constant 0 : index
    %122 = vector.load %arg8[%c6_129, %c0_130, %c0_131] : memref<9x8x8xf32, #tpu.memory_space<vmem>>, vector<1x8x8xf32>
    %123 = vector.shape_cast %122 : vector<1x8x8xf32> to vector<8x8xf32>
    %cst_132 = arith.constant dense<0.000000e+00> : vector<256x8xf32>
    %124 = tpu.matmul %121, %123, %cst_132 {dimension_numbers = #tpu.dot_dimension_numbers<[1], [0], [0], [1], [0, 0, 1, 1], [], []>} : vector<256x8xf32>, vector<8x8xf32>, vector<256x8xf32> -> vector<256x8xf32>
    %125 = arith.addf %119, %124 : vector<256x8xf32>
    %c2_133 = arith.constant 2 : index
    %c1_134 = arith.constant 1 : index
    %c0_135 = arith.constant 0 : index
    %126 = vector.load %arg15[%c2_133, %c1_134, %c0_135] : memref<18x18x8xf32, #tpu.memory_space<vmem>>, vector<16x16x8xf32>
    %127 = vector.shape_cast %126 : vector<16x16x8xf32> to vector<256x8xf32>
    %c7_136 = arith.constant 7 : index
    %c0_137 = arith.constant 0 : index
    %c0_138 = arith.constant 0 : index
    %128 = vector.load %arg8[%c7_136, %c0_137, %c0_138] : memref<9x8x8xf32, #tpu.memory_space<vmem>>, vector<1x8x8xf32>
    %129 = vector.shape_cast %128 : vector<1x8x8xf32> to vector<8x8xf32>
    %cst_139 = arith.constant dense<0.000000e+00> : vector<256x8xf32>
    %130 = tpu.matmul %127, %129, %cst_139 {dimension_numbers = #tpu.dot_dimension_numbers<[1], [0], [0], [1], [0, 0, 1, 1], [], []>} : vector<256x8xf32>, vector<8x8xf32>, vector<256x8xf32> -> vector<256x8xf32>
    %131 = arith.addf %125, %130 : vector<256x8xf32>
    %c2_140 = arith.constant 2 : index
    %c2_141 = arith.constant 2 : index
    %c0_142 = arith.constant 0 : index
    %132 = vector.load %arg15[%c2_140, %c2_141, %c0_142] : memref<18x18x8xf32, #tpu.memory_space<vmem>>, vector<16x16x8xf32>
    %133 = vector.shape_cast %132 : vector<16x16x8xf32> to vector<256x8xf32>
    %c8_143 = arith.constant 8 : index
    %c0_144 = arith.constant 0 : index
    %c0_145 = arith.constant 0 : index
    %134 = vector.load %arg8[%c8_143, %c0_144, %c0_145] : memref<9x8x8xf32, #tpu.memory_space<vmem>>, vector<1x8x8xf32>
    %135 = vector.shape_cast %134 : vector<1x8x8xf32> to vector<8x8xf32>
    %cst_146 = arith.constant dense<0.000000e+00> : vector<256x8xf32>
    %136 = tpu.matmul %133, %135, %cst_146 {dimension_numbers = #tpu.dot_dimension_numbers<[1], [0], [0], [1], [0, 0, 1, 1], [], []>} : vector<256x8xf32>, vector<8x8xf32>, vector<256x8xf32> -> vector<256x8xf32>
    %137 = arith.addf %131, %136 : vector<256x8xf32>
    %c0_147 = arith.constant 0 : index
    %c0_148 = arith.constant 0 : index
    %138 = vector.load %arg9[%c0_147, %c0_148] : memref<1x8xf32, #tpu.memory_space<vmem>>, vector<1x8xf32>
    %139 = vector.broadcast %138 : vector<1x8xf32> to vector<256x8xf32>
    %140 = arith.addf %137, %139 : vector<256x8xf32>
    %cst_149 = arith.constant 0.000000e+00 : f32
    %141 = vector.broadcast %cst_149 : f32 to vector<256x8xf32>
    %142 = arith.maximumf %140, %141 : vector<256x8xf32>
    %c0_150 = arith.constant 0 : index
    %c0_151 = arith.constant 0 : index
    %143 = vector.load %arg13[%c0_150, %c0_151] : memref<1x1xf32, #tpu.memory_space<vmem>>, vector<1x1xf32>
    %144 = vector.broadcast %143 : vector<1x1xf32> to vector<256x8xf32>
    %145 = arith.mulf %144, %9 : vector<256x8xf32>
    %146 = arith.addf %142, %145 : vector<256x8xf32>
    %c0_152 = arith.constant 0 : index
    %c0_153 = arith.constant 0 : index
    %147 = vector.load %arg10[%c0_152, %c0_153] : memref<8x16xf32, #tpu.memory_space<vmem>>, vector<8x16xf32>
    %cst_154 = arith.constant dense<0.000000e+00> : vector<256x16xf32>
    %148 = tpu.matmul %146, %147, %cst_154 {dimension_numbers = #tpu.dot_dimension_numbers<[1], [0], [0], [1], [0, 0, 1, 1], [], []>} : vector<256x8xf32>, vector<8x16xf32>, vector<256x16xf32> -> vector<256x16xf32>
    %c0_155 = arith.constant 0 : index
    %c0_156 = arith.constant 0 : index
    %149 = vector.load %arg11[%c0_155, %c0_156] : memref<8x16xf32, #tpu.memory_space<vmem>>, vector<8x16xf32>
    %cst_157 = arith.constant dense<0.000000e+00> : vector<256x16xf32>
    %150 = tpu.matmul %16, %149, %cst_157 {dimension_numbers = #tpu.dot_dimension_numbers<[1], [0], [0], [1], [0, 0, 1, 1], [], []>} : vector<256x8xf32>, vector<8x16xf32>, vector<256x16xf32> -> vector<256x16xf32>
    %151 = arith.addf %148, %150 : vector<256x16xf32>
    %c0_158 = arith.constant 0 : index
    %c0_159 = arith.constant 0 : index
    %152 = vector.load %arg12[%c0_158, %c0_159] : memref<1x16xf32, #tpu.memory_space<vmem>>, vector<1x16xf32>
    %153 = vector.broadcast %152 : vector<1x16xf32> to vector<256x16xf32>
    %154 = arith.addf %151, %153 : vector<256x16xf32>
    %cst_160 = arith.constant 0.000000e+00 : f32
    %155 = vector.broadcast %cst_160 : f32 to vector<256x16xf32>
    %156 = arith.maximumf %154, %155 : vector<256x16xf32>
    %157 = vector.shape_cast %156 : vector<256x16xf32> to vector<1x16x16x16xf32>
    %c0_161 = arith.constant 0 : index
    %c0_162 = arith.constant 0 : index
    %c0_163 = arith.constant 0 : index
    %c0_164 = arith.constant 0 : index
    %158 = vector.load %arg14[%c0_161, %c0_162, %c0_163, %c0_164] : memref<1x16x16x16xf32, #tpu.memory_space<vmem>>, vector<1x16x16x16xf32>
    tpu.vector_store %arg14[%c0_161, %c0_162, %c0_163, %c0_164], %157 {strides = array<i32>} : memref<1x16x16x16xf32, #tpu.memory_space<vmem>>, vector<1x16x16x16xf32>,
    return
  }
  func.func @transform_0(%arg0: i32) -> (i32, i32, i32, i32) {
    %c0_i32 = arith.constant 0 : i32
    %c0_i32_0 = arith.constant 0 : i32
    %c0_i32_1 = arith.constant 0 : i32
    %c0_i32_2 = arith.constant 0 : i32
    return %arg0, %c0_i32, %c0_i32_0, %c0_i32_1 : i32, i32, i32, i32
  }
  func.func @transform_1(%arg0: i32) -> (i32, i32) {
    %c0_i32 = arith.constant 0 : i32
    %c0_i32_0 = arith.constant 0 : i32
    %c0_i32_1 = arith.constant 0 : i32
    return %c0_i32, %c0_i32_0 : i32, i32
  }
  func.func @transform_2(%arg0: i32) -> (i32, i32) {
    %c0_i32 = arith.constant 0 : i32
    %c0_i32_0 = arith.constant 0 : i32
    %c0_i32_1 = arith.constant 0 : i32
    return %c0_i32, %c0_i32_0 : i32, i32
  }
  func.func @transform_3(%arg0: i32) -> (i32, i32) {
    %c0_i32 = arith.constant 0 : i32
    %c0_i32_0 = arith.constant 0 : i32
    %c0_i32_1 = arith.constant 0 : i32
    return %c0_i32, %c0_i32_0 : i32, i32
  }
  func.func @transform_4(%arg0: i32) -> (i32, i32) {
    %c0_i32 = arith.constant 0 : i32
    %c0_i32_0 = arith.constant 0 : i32
    %c0_i32_1 = arith.constant 0 : i32
    return %c0_i32, %c0_i32_0 : i32, i32
  }
  func.func @transform_5(%arg0: i32) -> (i32, i32, i32) {
    %c0_i32 = arith.constant 0 : i32
    %c0_i32_0 = arith.constant 0 : i32
    %c0_i32_1 = arith.constant 0 : i32
    %c0_i32_2 = arith.constant 0 : i32
    return %c0_i32, %c0_i32_0, %c0_i32_1 : i32, i32, i32
  }
  func.func @transform_6(%arg0: i32) -> (i32, i32) {
    %c0_i32 = arith.constant 0 : i32
    %c0_i32_0 = arith.constant 0 : i32
    %c0_i32_1 = arith.constant 0 : i32
    return %c0_i32, %c0_i32_0 : i32, i32
  }
  func.func @transform_7(%arg0: i32) -> (i32, i32, i32) {
    %c0_i32 = arith.constant 0 : i32
    %c0_i32_0 = arith.constant 0 : i32
    %c0_i32_1 = arith.constant 0 : i32
    %c0_i32_2 = arith.constant 0 : i32
    return %c0_i32, %c0_i32_0, %c0_i32_1 : i32, i32, i32
  }
  func.func @transform_8(%arg0: i32) -> (i32, i32) {
    %c0_i32 = arith.constant 0 : i32
    %c0_i32_0 = arith.constant 0 : i32
    %c0_i32_1 = arith.constant 0 : i32
    return %c0_i32, %c0_i32_0 : i32, i32
  }
  func.func @transform_9(%arg0: i32) -> (i32, i32) {
    %c0_i32 = arith.constant 0 : i32
    %c0_i32_0 = arith.constant 0 : i32
    %c0_i32_1 = arith.constant 0 : i32
    return %c0_i32, %c0_i32_0 : i32, i32
  }
  func.func @transform_10(%arg0: i32) -> (i32, i32) {
    %c0_i32 = arith.constant 0 : i32
    %c0_i32_0 = arith.constant 0 : i32
    %c0_i32_1 = arith.constant 0 : i32
    return %c0_i32, %c0_i32_0 : i32, i32
  }
  func.func @transform_11(%arg0: i32) -> (i32, i32) {
    %c0_i32 = arith.constant 0 : i32
    %c0_i32_0 = arith.constant 0 : i32
    %c0_i32_1 = arith.constant 0 : i32
    return %c0_i32, %c0_i32_0 : i32, i32
  }
  func.func @transform_12(%arg0: i32) -> (i32, i32) {
    %c0_i32 = arith.constant 0 : i32
    %c0_i32_0 = arith.constant 0 : i32
    %c0_i32_1 = arith.constant 0 : i32
    return %c0_i32, %c0_i32_0 : i32, i32
  }
  func.func @transform_13(%arg0: i32) -> (i32, i32, i32, i32) {
    %c0_i32 = arith.constant 0 : i32
    %c0_i32_0 = arith.constant 0 : i32
    %c0_i32_1 = arith.constant 0 : i32
    %c0_i32_2 = arith.constant 0 : i32
    return %arg0, %c0_i32, %c0_i32_0, %c0_i32_1 : i32, i32, i32, i32
  }
}

</mosaic_0001>

<bundles_post_ra>
// kernel: bepc3_forward.1
= control target key start
LH: loop header
LB: loop body
LE: loop exit
PB: predicated region body
PF: predicated region fallthrough
CT: control target
= control target key end

     0   :  { %s12328_s27 = smov 0   ;;  %s14735_s0 = inlined_call_operand.vmem [shape: f32[2,16,16,16], index: 0, kind: input, shape index: {}]   ;;  %s14736_s1 = inlined_call_operand.vmem [shape: f32[16,8], index: 1, kind: input, shape index: {}]   ;;  %s14737_s2 = inlined_call_operand.vmem [shape: f32[1,8], index: 2, kind: input, shape index: {}]   ;;  %s14738_s3 = inlined_call_operand.vmem [shape: f32[16,8], index: 3, kind: input, shape index: {}]   ;;  %s14739_s4 = inlined_call_operand.vmem [shape: f32[1,8], index: 4, kind: input, shape index: {}]   ;;  %s14740_s5 = inlined_call_operand.vmem [shape: f32[9,8,8], index: 5, kind: input, shape index: {}]   ;;  %s14741_s6 = inlined_call_operand.vmem [shape: f32[1,8], index: 6, kind: input, shape index: {}]   ;;  %s14742_s7 = inlined_call_operand.vmem [shape: f32[9,8,8], index: 7, kind: input, shape index: {}]   ;;  %s14743_s8 = inlined_call_operand.vmem [shape: f32[1,8], index: 8, kind: input, shape index: {}]   ;;  %s14744_s9 = inlined_call_operand.vmem [shape: f32[8,16], index: 9, kind: input, shape index: {}]   ;;  %s14745_s10 = inlined_call_operand.vmem [shape: f32[8,16], index: 10, kind: input, shape index: {}]   ;;  %s14746_s11 = inlined_call_operand.vmem [shape: f32[1,16], index: 11, kind: input, shape index: {}]   ;;  %s14747_s12 = inlined_call_operand.<no memory space> [shape: f32[1,1], index: 12, kind: input, shape index: {}]   ;;  %s14748_s13 = inlined_call_operand.vmem [shape: f32[2,16,16,16], index: 13, kind: output, shape index: {}]  }
   0x1   :  { %v18_v0 = vstv %s14747_s12 }
   0x2   :  { %19 = vst [vmem:[#allocation3] sm:$0x1] %v18_v0 }
   0x3 LB: > { %s9080_s28 = sadd.s32 4294967295, %s12251_s27   ;;  %p9084_p0 = scmp.ge.s32.totalorder %s12251_s27, 1  ;;  %s12251_s27 = sphi %s12328_s27, %s25_s27  }
   0x4   : > { %p389_p1 = scmp.lt.s32.totalorder %s12251_s27, 3 }
   0x6   : > { %p390_p2 = pnand %p9084_p0, %p389_p1 }
   0x8   : > { %393 = sbr.rel (%p390_p2) target bundleno = 1988 (0x7c4), region = 72 }
   0xf   : > { %v475_v1 = vld [vmem:[%s14736_s1] sm:$0xff]  ;;  %v476_v2 = vld [vmem:[%s14736_s1 + $0x8] sm:$0xff]  ;;  %p433_p3 = scmp.lt.s32.totalorder %s9080_s28, 1  ;;  %v12253_v4 = vmov 0   ;;  %v9749_v5 = vld [vmem:[#allocation3] ss:$0 sm:$0xff] }
  0x10   : > { %v11651_v3 = vpack.c.bf16 %v476_v2, %v475_v1  ;;  %12213 = vset.pattern.permute.xlu0 %v12253_v4  ;;  %vm484_vm0 = vcmask 130048   ;;  %vm1104_vm1 = vcmask 64512   ;;  %vm1107_vm2 = vcmask 58368   ;;  %v9155_v37 = vld [vmem:[%s14740_s5 + $0x8] sm:$0xff]  ;;  %v1225_v40 = vld [vmem:[%s14740_s5] sm:$0xff]  ;;  %v12486_v43 = vld [vmem:[%s14740_s5 + $0x10] sm:$0xff] }
  0x11   : > { %s15137_s28 = smov (!%p433_p3, %s9080_s28), 1  ;;  %8211 = vperm.xlu0 %12213, %v9749_v5   ;;  %v12254_v36 = vmov 0.0   ;;  %10651 = vmatprep.subr.mxu0 %v9155_v37  ;;  %v12492_v44 = vld [vmem:[%s14737_s2] ss:$0 sm:$0xff] }
  0x12   : > { %11652 = vmatprep.subr.bf16.mxu1 %v11651_v3  ;;  %s9817_s15 = sshll.u32 %s15137_s28, 8  ;;  %1110 = vst.msk [vmem:[#allocation2 + $0x20] sm:$0xff] %vm1104_vm1, %v12254_v36  ;;  %1105 = vst.msk [vmem:[#allocation2] sm:$0xff] %vm1104_vm1, %v12254_v36  ;;  %10652 = vmatpush3.msra.mxu0 %v9155_v37 }
  0x13   : > { %11654 = vmatpush3.bf16.msra.mxu1 %v11651_v3  ;;  %s12350_s18 = scalar_lea.vmem %s14735_s0, %s9817_s15  ;;  %1106 = vst.msk [vmem:[#allocation2 + $0x8] sm:$0xff] %vm1104_vm1, %v12254_v36  ;;  %1109 = vst.msk [vmem:[#allocation2 + $0x18] sm:$0xff] %vm1104_vm1, %v12254_v36  ;;  %10701 = vmatprep.subr.mxu0 %v1225_v40 }
  0x14   : > { %v12353_v6 = vld [vmem:[%s12350_s18] sm:$0xff]  ;;  %v444_v7 = vld [vmem:[%s12350_s18 + $0x8] sm:$0xff]  ;;  %v445_v8 = vld [vmem:[%s12350_s18 + $0x10] sm:$0xff]  ;;  %1112 = vst.msk [vmem:[#allocation2 + $0x30] sm:$0xff] %vm1104_vm1, %v12254_v36 }
  0x15   : > { %10551 = vmatprep.mubr.msk.f32.mxu1 %vm484_vm0, %v12353_v6  ;;  %v446_v9 = vld [vmem:[%s12350_s18 + $0x18] sm:$0xff]  ;;  %v447_v10 = vld [vmem:[%s12350_s18 + $0x20] sm:$0xff]  ;;  %v448_v11 = vld [vmem:[%s12350_s18 + $0x28] sm:$0xff]  ;;  %1113 = vst.msk [vmem:[#allocation2 + $0x38] sm:$0xff] %vm1104_vm1, %v12254_v36 }
  0x16   : > { %10552 = vmatmul.mubr.msk.f32.vlgmr.msra.gmra.mrb[0].mxu1 %vm484_vm0, %v444_v7  ;;  %v449_v12 = vld [vmem:[%s12350_s18 + $0x30] sm:$0xff]  ;;  %v450_v13 = vld [vmem:[%s12350_s18 + $0x38] sm:$0xff]  ;;  %v451_v14 = vld [vmem:[%s12350_s18 + $0x40] sm:$0xff]  ;;  %1115 = vst.msk [vmem:[#allocation2 + $0x48] sm:$0xff] %vm1104_vm1, %v12254_v36 }
  0x17   : > { %10554 = vmatprep.mubr.msk.f32.mxu1 %vm484_vm0, %v445_v8  ;;  %v452_v15 = vld [vmem:[%s12350_s18 + $0x48] sm:$0xff]  ;;  %v453_v16 = vld [vmem:[%s12350_s18 + $0x50] sm:$0xff]  ;;  %v454_v17 = vld [vmem:[%s12350_s18 + $0x58] sm:$0xff]  ;;  %1116 = vst.msk [vmem:[#allocation2 + $0x50] sm:$0xff] %vm1104_vm1, %v12254_v36 }
  0x18   : > { %v455_v18 = vld [vmem:[%s12350_s18 + $0x60] sm:$0xff]  ;;  %v456_v19 = vld [vmem:[%s12350_s18 + $0x68] sm:$0xff]  ;;  %v457_v20 = vld [vmem:[%s12350_s18 + $0x70] sm:$0xff]  ;;  %1118 = vst.msk [vmem:[#allocation2 + $0x60] sm:$0xff] %vm1104_vm1, %v12254_v36 }
  0x19   : > { %v458_v21 = vld [vmem:[%s12350_s18 + $0x78] sm:$0xff]  ;;  %v459_v22 = vld [vmem:[%s12350_s18 + $0x80] sm:$0xff]  ;;  %v460_v23 = vld [vmem:[%s12350_s18 + $0x88] sm:$0xff]  ;;  %1119 = vst.msk [vmem:[#allocation2 + $0x68] sm:$0xff] %vm1104_vm1, %v12254_v36 }
  0x1a   : > { %10555 = vmatmul.mubr.msk.f32.gmra.mrb[2].mxu1 %vm484_vm0, %v446_v9  ;;  %v461_v24 = vld [vmem:[%s12350_s18 + $0x90] sm:$0xff]  ;;  %v462_v25 = vld [vmem:[%s12350_s18 + $0x98] sm:$0xff]  ;;  %v463_v26 = vld [vmem:[%s12350_s18 + $0xa0] sm:$0xff]  ;;  %1121 = vst.msk [vmem:[#allocation2 + $0x78] sm:$0xff] %vm1104_vm1, %v12254_v36 }
  0x1b   : > { %10557 = vmatprep.mubr.msk.f32.mxu1 %vm484_vm0, %v447_v10  ;;  %v464_v27 = vld [vmem:[%s12350_s18 + $0xa8] sm:$0xff]  ;;  %v465_v28 = vld [vmem:[%s12350_s18 + $0xb0] sm:$0xff]  ;;  %v466_v29 = vld [vmem:[%s12350_s18 + $0xb8] sm:$0xff]  ;;  %1122 = vst.msk [vmem:[#allocation2 + $0x80] sm:$0xff] %vm1104_vm1, %v12254_v36 }
  0x1c   : > { %v467_v30 = vld [vmem:[%s12350_s18 + $0xc0] sm:$0xff]  ;;  %v468_v31 = vld [vmem:[%s12350_s18 + $0xc8] sm:$0xff]  ;;  %v469_v32 = vld [vmem:[%s12350_s18 + $0xd0] sm:$0xff]  ;;  %1124 = vst.msk [vmem:[#allocation2 + $0x90] sm:$0xff] %vm1104_vm1, %v12254_v36 }
  0x1d   : > { %v470_v33 = vld [vmem:[%s12350_s18 + $0xd8] sm:$0xff]  ;;  %v471_v34 = vld [vmem:[%s12350_s18 + $0xe0] sm:$0xff]  ;;  %v472_v35 = vld [vmem:[%s12350_s18 + $0xe8] sm:$0xff]  ;;  %1125 = vst.msk [vmem:[#allocation2 + $0x98] sm:$0xff] %vm1104_vm1, %v12254_v36 }
  0x1e   : > { %10558 = vmatmul.mubr.msk.f32.gmra.mrb[4].mxu1 %vm484_vm0, %v448_v11  ;;  %1127 = vst.msk [vmem:[#allocation2 + $0xa8] sm:$0xff] %vm1104_vm1, %v12254_v36  ;;  %1128 = vst.msk [vmem:[#allocation2 + $0xb0] sm:$0xff] %vm1104_vm1, %v12254_v36  ;;  %v1226_v38 = vld [vmem:[#allocation2 + $0x1] sm:$0xff]  ;;  %v473_v41 = vld [vmem:[%s12350_s18 + $0xf0] sm:$0xff] }
  0x1f   : > { %10560 = vmatprep.mubr.msk.f32.mxu1 %vm484_vm0, %v449_v12  ;;  %1130 = vst.msk [vmem:[#allocation2 + $0xc0] sm:$0xff] %vm1104_vm1, %v12254_v36  ;;  %1131 = vst.msk [vmem:[#allocation2 + $0xc8] sm:$0xff] %vm1104_vm1, %v12254_v36  ;;  %10653 = vmatprep.mubr.msk.f32.mxu0 %vm1104_vm1, %v1226_v38  ;;  %v474_v42 = vld [vmem:[%s12350_s18 + $0xf8] sm:$0xff] }
  0x20   : > { %1133 = vst.msk [vmem:[#allocation2 + $0xd8] sm:$0xff] %vm1104_vm1, %v12254_v36  ;;  %1134 = vst.msk [vmem:[#allocation2 + $0xe0] sm:$0xff] %vm1104_vm1, %v12254_v36 }
  0x21   : > { %1136 = vst.msk [vmem:[#allocation2 + $0xf0] sm:$0xff] %vm1104_vm1, %v12254_v36  ;;  %1137 = vst.msk [vmem:[#allocation2 + $0xf8] sm:$0xff] %vm1104_vm1, %v12254_v36 }
  0x22   : > { %10561 = vmatmul.mubr.msk.f32.gmra.mrb[6].mxu1 %vm484_vm0, %v450_v13  ;;  %1139 = vst.msk [vmem:[#allocation2 + $0x108] sm:$0xff] %vm1104_vm1, %v12254_v36  ;;  %1140 = vst.msk [vmem:[#allocation2 + $0x110] sm:$0xff] %vm1104_vm1, %v12254_v36 }
  0x23   : > { %10563 = vmatprep.mubr.msk.f32.mxu1 %vm484_vm0, %v451_v14  ;;  %1142 = vst.msk [vmem:[#allocation2 + $0x120] sm:$0xff] %vm1104_vm1, %v12254_v36  ;;  %1143 = vst.msk [vmem:[#allocation2 + $0x128] sm:$0xff] %vm1104_vm1, %v12254_v36 }
  0x24   : > { %1145 = vst.msk [vmem:[#allocation2 + $0x138] sm:$0xff] %vm1104_vm1, %v12254_v36  ;;  %1146 = vst.msk [vmem:[#allocation2 + $0x140] sm:$0xff] %vm1104_vm1, %v12254_v36 }
  0x25   : > { %1148 = vst.msk [vmem:[#allocation2 + $0x150] sm:$0xff] %vm1104_vm1, %v12254_v36  ;;  %1149 = vst.msk [vmem:[#allocation2 + $0x158] sm:$0xff] %vm1104_vm1, %v12254_v36 }
  0x26   : > { %10564 = vmatmul.mubr.msk.f32.gmra.mrb[8].mxu1 %vm484_vm0, %v452_v15  ;;  %1151 = vst.msk [vmem:[#allocation2 + $0x168] sm:$0xff] %vm1104_vm1, %v12254_v36  ;;  %1152 = vst.msk [vmem:[#allocation2 + $0x170] sm:$0xff] %vm1104_vm1, %v12254_v36 }
  0x27   : > { %10566 = vmatprep.mubr.msk.f32.mxu1 %vm484_vm0, %v453_v16  ;;  %1154 = vst.msk [vmem:[#allocation2 + $0x180] sm:$0xff] %vm1104_vm1, %v12254_v36  ;;  %1155 = vst.msk [vmem:[#allocation2 + $0x188] sm:$0xff] %vm1104_vm1, %v12254_v36 }
  0x28   : > { %1157 = vst.msk [vmem:[#allocation2 + $0x198] sm:$0xff] %vm1104_vm1, %v12254_v36  ;;  %1158 = vst.msk [vmem:[#allocation2 + $0x1a0] sm:$0xff] %vm1104_vm1, %v12254_v36 }
  0x29   : > { %1111 = vst.msk [vmem:[#allocation2 + $0x28] sm:$0x3] %vm1107_vm2, %v12254_v36  ;;  %1108 = vst.msk [vmem:[#allocation2 + $0x10] sm:$0x3] %vm1107_vm2, %v12254_v36 }
  0x2a   : > { %10567 = vmatmul.mubr.msk.f32.gmra.mrb[10].mxu1 %vm484_vm0, %v454_v17  ;;  %1114 = vst.msk [vmem:[#allocation2 + $0x40] sm:$0x3] %vm1107_vm2, %v12254_v36  ;;  %1117 = vst.msk [vmem:[#allocation2 + $0x58] sm:$0x3] %vm1107_vm2, %v12254_v36 }
  0x2b   : > { %10569 = vmatprep.mubr.msk.f32.mxu1 %vm484_vm0, %v455_v18  ;;  %1120 = vst.msk [vmem:[#allocation2 + $0x70] sm:$0x3] %vm1107_vm2, %v12254_v36  ;;  %1123 = vst.msk [vmem:[#allocation2 + $0x88] sm:$0x3] %vm1107_vm2, %v12254_v36 }
  0x2c   : > { %1126 = vst.msk [vmem:[#allocation2 + $0xa0] sm:$0x3] %vm1107_vm2, %v12254_v36  ;;  %1129 = vst.msk [vmem:[#allocation2 + $0xb8] sm:$0x3] %vm1107_vm2, %v12254_v36 }
  0x2d   : > { %1132 = vst.msk [vmem:[#allocation2 + $0xd0] sm:$0x3] %vm1107_vm2, %v12254_v36  ;;  %1135 = vst.msk [vmem:[#allocation2 + $0xe8] sm:$0x3] %vm1107_vm2, %v12254_v36 }
  0x2e   : > { %10570 = vmatmul.mubr.msk.f32.gmra.mrb[12].mxu1 %vm484_vm0, %v456_v19  ;;  %1138 = vst.msk [vmem:[#allocation2 + $0x100] sm:$0x3] %vm1107_vm2, %v12254_v36  ;;  %1141 = vst.msk [vmem:[#allocation2 + $0x118] sm:$0x3] %vm1107_vm2, %v12254_v36 }
  0x2f   : > { %10572 = vmatprep.mubr.msk.f32.mxu1 %vm484_vm0, %v457_v20  ;;  %1144 = vst.msk [vmem:[#allocation2 + $0x130] sm:$0x3] %vm1107_vm2, %v12254_v36  ;;  %1147 = vst.msk [vmem:[#allocation2 + $0x148] sm:$0x3] %vm1107_vm2, %v12254_v36 }
  0x30   : > { %1150 = vst.msk [vmem:[#allocation2 + $0x160] sm:$0x3] %vm1107_vm2, %v12254_v36  ;;  %1153 = vst.msk [vmem:[#allocation2 + $0x178] sm:$0x3] %vm1107_vm2, %v12254_v36  ;;  %v1227_v39 = vld [vmem:[#allocation2 + $0x9] sm:$0xff] }
  0x31   : > { %1156 = vst.msk [vmem:[#allocation2 + $0x190] sm:$0x3] %vm1107_vm2, %v12254_v36  ;;  %1159 = vst.msk [vmem:[#allocation2 + $0x1a8] sm:$0x3] %vm1107_vm2, %v12254_v36  ;;  %10654 = vmatmul.mubr.msk.f32.vlgmr.msra.gmra.mrb[0].mxu0 %vm1104_vm1, %v1227_v39 }
  0x32   : > { %10573 = vmatmul.mubr.msk.f32.gmra.mrb[14].mxu1 %vm484_vm0, %v458_v21  ;;  %10702 = vmatpush3.msra.mxu0 %v1225_v40 }
  0x33   : > { %10575 = vmatprep.mubr.msk.f32.mxu1 %vm484_vm0, %v459_v22  ;;  %10751 = vmatprep.subr.mxu0 %v12486_v43 }
  0x36   : > { %10576 = vmatmul.mubr.msk.f32.gmra.mrb[16].mxu1 %vm484_vm0, %v460_v23 }
  0x37   : > { %10578 = vmatprep.mubr.msk.f32.mxu1 %vm484_vm0, %v461_v24 }
  0x3a   : > { %10579 = vmatmul.mubr.msk.f32.gmra.mrb[18].mxu1 %vm484_vm0, %v462_v25 }
  0x3b   : > { %10581 = vmatprep.mubr.msk.f32.mxu1 %vm484_vm0, %v463_v26 }
  0x3e   : > { %10582 = vmatmul.mubr.msk.f32.gmra.mrb[20].mxu1 %vm484_vm0, %v464_v27 }
  0x3f   : > { %10584 = vmatprep.mubr.msk.f32.mxu1 %vm484_vm0, %v465_v28 }
  0x42   : > { %10585 = vmatmul.mubr.msk.f32.gmra.mrb[22].mxu1 %vm484_vm0, %v466_v29 }
  0x43   : > { %10587 = vmatprep.mubr.msk.f32.mxu1 %vm484_vm0, %v467_v30 }
  0x46   : > { %10588 = vmatmul.mubr.msk.f32.gmra.mrb[24].mxu1 %vm484_vm0, %v468_v31 }
  0x47   : > { %10590 = vmatprep.mubr.msk.f32.mxu1 %vm484_vm0, %v469_v32 }
  0x4a   : > { %10591 = vmatmul.mubr.msk.f32.gmra.mrb[26].mxu1 %vm484_vm0, %v470_v33 }
  0x4b   : > { %10593 = vmatprep.mubr.msk.f32.mxu1 %vm484_vm0, %v471_v34 }
  0x4e   : > { %10594 = vmatmul.mubr.msk.f32.gmra.mrb[28].mxu1 %vm484_vm0, %v472_v35 }
  0x4f   : > { %10596 = vmatprep.mubr.msk.f32.mxu1 %vm484_vm0, %v473_v41 }
  0x52   : > { %10597 = vmatmul.mubr.msk.f32.gmra.mrb[30].mxu1 %vm484_vm0, %v474_v42 }
  0x53   : > { %10603 = vmatprep.mubr.msk.f32.mxu1 %vm484_vm0, %v12353_v6 }
  0xe9   : > { %v10553_v45 = vpop.f32.mrb[0].mxu1 }
  0xea   : > { %v12495_v46 = vadd.f32 %v10553_v45, %v12492_v44  ;;  %v647_v47 = vpop.f32.mrb[1].mxu1 }
  0xeb   : > { %v12498_v48 = vadd.f32 %v12492_v44, %v647_v47 }
  0xec   : > { %14911 = vst [vmem:[#allocation4_spill] sm:$0xff] %v12495_v46  ;;  %v14778_v49 = vmax.f32 %v12495_v46, 0.0  ;;  %v12971_v46 = vld [vmem:[%s14740_s5 + $0x20] sm:$0xff] }
  0xed   : > { %14912 = vst [vmem:[#allocation5_spill] sm:$0xff] %v12498_v48  ;;  %v14777_v50 = vmax.f32 %v12498_v48, 0.0  ;;  %v10556_v51 = vpop.f32.mrb[2].mxu1 }
  0xee   : > { %1162 = vst.msk [vmem:[#allocation2 + $0x21] sm:$0xff] %vm1104_vm1, %v14778_v49  ;;  %v12506_v52 = vadd.f32 %v10556_v51, %v12492_v44  ;;  %v657_v53 = vpop.f32.mrb[3].mxu1  ;;  %v1194_v49 = vld [vmem:[#allocation2 + $0x8] sm:$0xff] }
  0xef   : > { %1161 = vst.msk [vmem:[#allocation2 + $0x19] sm:$0xff] %vm1104_vm1, %v14777_v50  ;;  %v12512_v54 = vadd.f32 %v12492_v44, %v657_v53 }
  0xf0   : > { %14913 = vst [vmem:[#allocation6_spill] sm:$0xff] %v12506_v52  ;;  %v14775_v55 = vmax.f32 %v12506_v52, 0.0 }
  0xf1   : > { %14914 = vst [vmem:[#allocation7_spill] sm:$0xff] %v12512_v54  ;;  %v14773_v56 = vmax.f32 %v12512_v54, 0.0  ;;  %v10559_v57 = vpop.f32.mrb[4].mxu1 }
  0xf2   : > { %1164 = vst.msk [vmem:[#allocation2 + $0x39] sm:$0xff] %vm1104_vm1, %v14775_v55  ;;  %v12520_v58 = vadd.f32 %v10559_v57, %v12492_v44  ;;  %v667_v59 = vpop.f32.mrb[5].mxu1 }
  0xf3   : > { %1163 = vst.msk [vmem:[#allocation2 + $0x31] sm:$0xff] %vm1104_vm1, %v14773_v56  ;;  %v12526_v60 = vadd.f32 %v12492_v44, %v667_v59 }
  0xf4   : > { %14915 = vst [vmem:[#allocation8_spill] sm:$0xff] %v12520_v58  ;;  %v14770_v61 = vmax.f32 %v12520_v58, 0.0 }
  0xf5   : > { %14916 = vst [vmem:[#allocation9_spill] sm:$0xff] %v12526_v60  ;;  %v14769_v62 = vmax.f32 %v12526_v60, 0.0  ;;  %v10562_v63 = vpop.f32.mrb[6].mxu1  ;;  %v12546_v4 = vld [vmem:[#allocation2 + $0x21] sm:$0xff] }
  0xf6   : > { %1166 = vst.msk [vmem:[#allocation2 + $0x51] sm:$0xff] %vm1104_vm1, %v14770_v61  ;;  %v12534_v0 = vadd.f32 %v10562_v63, %v12492_v44  ;;  %v677_v1 = vpop.f32.mrb[7].mxu1  ;;  %v12536_v2 = vld [vmem:[#allocation2 + $0x19] sm:$0xff] }
  0xf7   : > { %1165 = vst.msk [vmem:[#allocation2 + $0x49] sm:$0xff] %vm1104_vm1, %v14769_v62  ;;  %v12542_v3 = vadd.f32 %v12492_v44, %v677_v1  ;;  %10656 = vmatprep.mubr.msk.f32.mxu0 %vm1104_vm1, %v12536_v2 }
  0xf8   : > { %14917 = vst [vmem:[#allocation10_spill] sm:$0xff] %v12534_v0  ;;  %v14768_v5 = vmax.f32 %v12534_v0, 0.0  ;;  %10657 = vmatmul.mubr.msk.f32.gmra.mrb[2].mxu0 %vm1104_vm1, %v12546_v4 }
  0xf9   : > { %14918 = vst [vmem:[#allocation11_spill] sm:$0xff] %v12542_v3  ;;  %v14766_v6 = vmax.f32 %v12542_v3, 0.0  ;;  %v10565_v7 = vpop.f32.mrb[8].mxu1  ;;  %v12568_v12 = vld [vmem:[#allocation2 + $0x39] sm:$0xff] }
  0xfa   : > { %1168 = vst.msk [vmem:[#allocation2 + $0x69] sm:$0xff] %vm1104_vm1, %v14768_v5  ;;  %v12556_v8 = vadd.f32 %v10565_v7, %v12492_v44  ;;  %v687_v9 = vpop.f32.mrb[9].mxu1  ;;  %v12558_v10 = vld [vmem:[#allocation2 + $0x31] sm:$0xff] }
  0xfb   : > { %1167 = vst.msk [vmem:[#allocation2 + $0x61] sm:$0xff] %vm1104_vm1, %v14766_v6  ;;  %v12564_v11 = vadd.f32 %v12492_v44, %v687_v9  ;;  %10659 = vmatprep.mubr.msk.f32.mxu0 %vm1104_vm1, %v12558_v10 }
  0xfc   : > { %14919 = vst [vmem:[#allocation12_spill] sm:$0xff] %v12556_v8  ;;  %v14764_v13 = vmax.f32 %v12556_v8, 0.0  ;;  %10660 = vmatmul.mubr.msk.f32.gmra.mrb[4].mxu0 %vm1104_vm1, %v12568_v12 }
  0xfd   : > { %14920 = vst [vmem:[#allocation13_spill] sm:$0xff] %v12564_v11  ;;  %v14763_v14 = vmax.f32 %v12564_v11, 0.0  ;;  %v10568_v15 = vpop.f32.mrb[10].mxu1  ;;  %v12590_v20 = vld [vmem:[#allocation2 + $0x51] sm:$0xff] }
  0xfe   : > { %1170 = vst.msk [vmem:[#allocation2 + $0x81] sm:$0xff] %vm1104_vm1, %v14764_v13  ;;  %v12578_v16 = vadd.f32 %v10568_v15, %v12492_v44  ;;  %v697_v17 = vpop.f32.mrb[11].mxu1  ;;  %v12580_v18 = vld [vmem:[#allocation2 + $0x49] sm:$0xff] }
  0xff   : > { %1169 = vst.msk [vmem:[#allocation2 + $0x79] sm:$0xff] %vm1104_vm1, %v14763_v14  ;;  %v12586_v19 = vadd.f32 %v12492_v44, %v697_v17  ;;  %10662 = vmatprep.mubr.msk.f32.mxu0 %vm1104_vm1, %v12580_v18 }
 0x100   : > { %14921 = vst [vmem:[#allocation14_spill] sm:$0xff] %v12578_v16  ;;  %v14762_v21 = vmax.f32 %v12578_v16, 0.0  ;;  %10663 = vmatmul.mubr.msk.f32.gmra.mrb[6].mxu0 %vm1104_vm1, %v12590_v20 }
 0x101   : > { %14922 = vst [vmem:[#allocation15_spill] sm:$0xff] %v12586_v19  ;;  %v14760_v22 = vmax.f32 %v12586_v19, 0.0  ;;  %v10571_v23 = vpop.f32.mrb[12].mxu1  ;;  %v12612_v28 = vld [vmem:[#allocation2 + $0x69] sm:$0xff] }
 0x102   : > { %1172 = vst.msk [vmem:[#allocation2 + $0x99] sm:$0xff] %vm1104_vm1, %v14762_v21  ;;  %v12600_v24 = vadd.f32 %v10571_v23, %v12492_v44  ;;  %v707_v25 = vpop.f32.mrb[13].mxu1  ;;  %v12602_v26 = vld [vmem:[#allocation2 + $0x61] sm:$0xff] }
 0x103   : > { %1171 = vst.msk [vmem:[#allocation2 + $0x91] sm:$0xff] %vm1104_vm1, %v14760_v22  ;;  %v12608_v27 = vadd.f32 %v12492_v44, %v707_v25  ;;  %10665 = vmatprep.mubr.msk.f32.mxu0 %vm1104_vm1, %v12602_v26 }
 0x104   : > { %14923 = vst [vmem:[#allocation16_spill] sm:$0xff] %v12600_v24  ;;  %v14758_v29 = vmax.f32 %v12600_v24, 0.0  ;;  %10666 = vmatmul.mubr.msk.f32.gmra.mrb[8].mxu0 %vm1104_vm1, %v12612_v28 }
 0x105   : > { %14924 = vst [vmem:[#allocation17_spill] sm:$0xff] %v12608_v27  ;;  %v14757_v30 = vmax.f32 %v12608_v27, 0.0  ;;  %v10574_v31 = vpop.f32.mrb[14].mxu1  ;;  %v12634_v36 = vld [vmem:[#allocation2 + $0x81] sm:$0xff] }
 0x106   : > { %1174 = vst.msk [vmem:[#allocation2 + $0xb1] sm:$0xff] %vm1104_vm1, %v14758_v29  ;;  %v12622_v32 = vadd.f32 %v10574_v31, %v12492_v44  ;;  %v717_v33 = vpop.f32.mrb[15].mxu1  ;;  %v12624_v34 = vld [vmem:[#allocation2 + $0x79] sm:$0xff] }
 0x107   : > { %1173 = vst.msk [vmem:[#allocation2 + $0xa9] sm:$0xff] %vm1104_vm1, %v14757_v30  ;;  %v12630_v35 = vadd.f32 %v12492_v44, %v717_v33  ;;  %10668 = vmatprep.mubr.msk.f32.mxu0 %vm1104_vm1, %v12624_v34 }
 0x108   : > { %14925 = vst [vmem:[#allocation18_spill] sm:$0xff] %v12622_v32  ;;  %v14756_v37 = vmax.f32 %v12622_v32, 0.0  ;;  %10669 = vmatmul.mubr.msk.f32.gmra.mrb[10].mxu0 %vm1104_vm1, %v12634_v36 }
 0x109   : > { %14926 = vst [vmem:[#allocation19_spill] sm:$0xff] %v12630_v35  ;;  %v14754_v38 = vmax.f32 %v12630_v35, 0.0  ;;  %v10577_v39 = vpop.f32.mrb[16].mxu1  ;;  %v12656_v47 = vld [vmem:[#allocation2 + $0x99] sm:$0xff] }
 0x10a   : > { %1176 = vst.msk [vmem:[#allocation2 + $0xc9] sm:$0xff] %vm1104_vm1, %v14756_v37  ;;  %v12644_v40 = vadd.f32 %v10577_v39, %v12492_v44  ;;  %v727_v41 = vpop.f32.mrb[17].mxu1  ;;  %v12646_v42 = vld [vmem:[#allocation2 + $0x91] sm:$0xff] }
 0x10b   : > { %1175 = vst.msk [vmem:[#allocation2 + $0xc1] sm:$0xff] %vm1104_vm1, %v14754_v38  ;;  %v12652_v45 = vadd.f32 %v12492_v44, %v727_v41  ;;  %10671 = vmatprep.mubr.msk.f32.mxu0 %vm1104_vm1, %v12646_v42 }
 0x10c   : > { %14927 = vst [vmem:[#allocation20_spill] sm:$0xff] %v12644_v40  ;;  %v14752_v51 = vmax.f32 %v12644_v40, 0.0  ;;  %10672 = vmatmul.mubr.msk.f32.gmra.mrb[12].mxu0 %vm1104_vm1, %v12656_v47 }
 0x10d   : > { %14928 = vst [vmem:[#allocation21_spill] sm:$0xff] %v12652_v45  ;;  %v14751_v53 = vmax.f32 %v12652_v45, 0.0  ;;  %v10580_v57 = vpop.f32.mrb[18].mxu1  ;;  %v12678_v9 = vld [vmem:[#allocation2 + $0xb1] sm:$0xff] }
 0x10e   : > { %1178 = vst.msk [vmem:[#allocation2 + $0xe1] sm:$0xff] %vm1104_vm1, %v14752_v51  ;;  %v12666_v59 = vadd.f32 %v10580_v57, %v12492_v44  ;;  %v737_v63 = vpop.f32.mrb[19].mxu1  ;;  %v12668_v1 = vld [vmem:[#allocation2 + $0xa9] sm:$0xff] }
 0x10f   : > { %1177 = vst.msk [vmem:[#allocation2 + $0xd9] sm:$0xff] %vm1104_vm1, %v14751_v53  ;;  %v12674_v7 = vadd.f32 %v12492_v44, %v737_v63  ;;  %10674 = vmatprep.mubr.msk.f32.mxu0 %vm1104_vm1, %v12668_v1 }
 0x110   : > { %14929 = vst [vmem:[#allocation22_spill] sm:$0xff] %v12666_v59  ;;  %v14750_v15 = vmax.f32 %v12666_v59, 0.0  ;;  %10675 = vmatmul.mubr.msk.f32.gmra.mrb[14].mxu0 %vm1104_vm1, %v12678_v9  ;;  %v12885_v59 = vld [vmem:[#allocation2 + $0xb0] sm:$0xff] }
 0x111   : > { %14930 = vst [vmem:[#allocation23_spill] sm:$0xff] %v12674_v7  ;;  %v14749_v17 = vmax.f32 %v12674_v7, 0.0  ;;  %v10583_v23 = vpop.f32.mrb[20].mxu1  ;;  %v12700_v41 = vld [vmem:[#allocation2 + $0xc9] sm:$0xff] }
 0x112   : > { %1180 = vst.msk [vmem:[#allocation2 + $0xf9] sm:$0xff] %vm1104_vm1, %v14750_v15  ;;  %v12688_v25 = vadd.f32 %v10583_v23, %v12492_v44  ;;  %v747_v31 = vpop.f32.mrb[21].mxu1  ;;  %v12690_v33 = vld [vmem:[#allocation2 + $0xc1] sm:$0xff] }
 0x113   : > { %1179 = vst.msk [vmem:[#allocation2 + $0xf1] sm:$0xff] %vm1104_vm1, %v14749_v17  ;;  %v12696_v39 = vadd.f32 %v12492_v44, %v747_v31  ;;  %10677 = vmatprep.mubr.msk.f32.mxu0 %vm1104_vm1, %v12690_v33  ;;  %v12881_v7 = vld [vmem:[#allocation2 + $0xa8] sm:$0xff]  ;;  %v12889_v45 = vld [vmem:[#allocation2 + $0xc0] sm:$0xff] }
 0x114   : > { %14931 = vst [vmem:[#allocation24_spill] sm:$0xff] %v12688_v25  ;;  %v14753_v57 = vmax.f32 %v12688_v25, 0.0  ;;  %10678 = vmatmul.mubr.msk.f32.gmra.mrb[16].mxu0 %vm1104_vm1, %v12700_v41  ;;  %v12877_v25 = vld [vmem:[#allocation2 + $0x98] sm:$0xff]  ;;  %v12893_v40 = vld [vmem:[#allocation2 + $0xc8] sm:$0xff] }
 0x115   : > { %14932 = vst [vmem:[#allocation25_spill] sm:$0xff] %v12696_v39  ;;  %v14755_v63 = vmax.f32 %v12696_v39, 0.0  ;;  %v10586_v23 = vpop.f32.mrb[22].mxu1  ;;  %v12722_v51 = vld [vmem:[#allocation2 + $0xe1] sm:$0xff]  ;;  %v12873_v39 = vld [vmem:[#allocation2 + $0x90] sm:$0xff] }
 0x116   : > { %1182 = vst.msk [vmem:[#allocation2 + $0x111] sm:$0xff] %vm1104_vm1, %v14753_v57  ;;  %v12710_v31 = vadd.f32 %v10586_v23, %v12492_v44  ;;  %v757_v17 = vpop.f32.mrb[23].mxu1  ;;  %v12712_v15 = vld [vmem:[#allocation2 + $0xd9] sm:$0xff] }
 0x117   : > { %1181 = vst.msk [vmem:[#allocation2 + $0x109] sm:$0xff] %vm1104_vm1, %v14755_v63  ;;  %v12718_v53 = vadd.f32 %v12492_v44, %v757_v17  ;;  %10680 = vmatprep.mubr.msk.f32.mxu0 %vm1104_vm1, %v12712_v15  ;;  %v12897_v35 = vld [vmem:[#allocation2 + $0xd8] sm:$0xff]  ;;  %v12901_v32 = vld [vmem:[#allocation2 + $0xe0] sm:$0xff] }
 0x118   : > { %14933 = vst [vmem:[#allocation26_spill] sm:$0xff] %v12710_v31  ;;  %v14759_v57 = vmax.f32 %v12710_v31, 0.0  ;;  %10681 = vmatmul.mubr.msk.f32.gmra.mrb[18].mxu0 %vm1104_vm1, %v12722_v51  ;;  %v12869_v31 = vld [vmem:[#allocation2 + $0x80] sm:$0xff] }
 0x119   : > { %14934 = vst [vmem:[#allocation27_spill] sm:$0xff] %v12718_v53  ;;  %v14761_v23 = vmax.f32 %v12718_v53, 0.0  ;;  %v10589_v38 = vpop.f32.mrb[24].mxu1  ;;  %v12744_v29 = vld [vmem:[#allocation2 + $0xf9] sm:$0xff] }
 0x11a   : > { %1184 = vst.msk [vmem:[#allocation2 + $0x129] sm:$0xff] %vm1104_vm1, %v14759_v57  ;;  %v12732_v17 = vadd.f32 %v10589_v38, %v12492_v44  ;;  %v767_v63 = vpop.f32.mrb[25].mxu1  ;;  %v12734_v37 = vld [vmem:[#allocation2 + $0xf1] sm:$0xff] }
 0x11b   : > { %1183 = vst.msk [vmem:[#allocation2 + $0x121] sm:$0xff] %vm1104_vm1, %v14761_v23  ;;  %v12740_v30 = vadd.f32 %v12492_v44, %v767_v63  ;;  %10683 = vmatprep.mubr.msk.f32.mxu0 %vm1104_vm1, %v12734_v37  ;;  %v12865_v53 = vld [vmem:[#allocation2 + $0x78] sm:$0xff]  ;;  %v12905_v27 = vld [vmem:[#allocation2 + $0xf0] sm:$0xff] }
 0x11c   : > { %14935 = vst [vmem:[#allocation28_spill] sm:$0xff] %v12732_v17  ;;  %v14765_v57 = vmax.f32 %v12732_v17, 0.0  ;;  %10684 = vmatmul.mubr.msk.f32.gmra.mrb[20].mxu0 %vm1104_vm1, %v12744_v29  ;;  %v12861_v17 = vld [vmem:[#allocation2 + $0x68] sm:$0xff]  ;;  %v12909_v24 = vld [vmem:[#allocation2 + $0xf8] sm:$0xff] }
 0x11d   : > { %14936 = vst [vmem:[#allocation29_spill] sm:$0xff] %v12740_v30  ;;  %v14767_v38 = vmax.f32 %v12740_v30, 0.0  ;;  %v10592_v22 = vpop.f32.mrb[26].mxu1  ;;  %v12766_v13 = vld [vmem:[#allocation2 + $0x111] sm:$0xff]  ;;  %v12857_v30 = vld [vmem:[#allocation2 + $0x60] sm:$0xff] }
 0x11e   : > { %1186 = vst.msk [vmem:[#allocation2 + $0x141] sm:$0xff] %vm1104_vm1, %v14765_v57  ;;  %v12754_v63 = vadd.f32 %v10592_v22, %v12492_v44  ;;  %v777_v23 = vpop.f32.mrb[27].mxu1  ;;  %v12756_v21 = vld [vmem:[#allocation2 + $0x109] sm:$0xff] }
 0x11f   : > { %1185 = vst.msk [vmem:[#allocation2 + $0x139] sm:$0xff] %vm1104_vm1, %v14767_v38  ;;  %v12762_v14 = vadd.f32 %v12492_v44, %v777_v23  ;;  %10686 = vmatprep.mubr.msk.f32.mxu0 %vm1104_vm1, %v12756_v21  ;;  %v12913_v19 = vld [vmem:[#allocation2 + $0x108] sm:$0xff]  ;;  %v12917_v16 = vld [vmem:[#allocation2 + $0x110] sm:$0xff] }
 0x120   : > { %14937 = vst [vmem:[#allocation30_spill] sm:$0xff] %v12754_v63  ;;  %v14771_v57 = vmax.f32 %v12754_v63, 0.0  ;;  %10687 = vmatmul.mubr.msk.f32.gmra.mrb[22].mxu0 %vm1104_vm1, %v12766_v13  ;;  %v12853_v63 = vld [vmem:[#allocation2 + $0x50] sm:$0xff] }
 0x121   : > { %14938 = vst [vmem:[#allocation31_spill] sm:$0xff] %v12762_v14  ;;  %v14772_v22 = vmax.f32 %v12762_v14, 0.0  ;;  %v10595_v6 = vpop.f32.mrb[28].mxu1  ;;  %v12788_v61 = vld [vmem:[#allocation2 + $0x129] sm:$0xff]  ;;  %v12837_v14 = vld [vmem:[#allocation2 + $0x20] sm:$0xff] }
 0x122   : > { %1188 = vst.msk [vmem:[#allocation2 + $0x159] sm:$0xff] %vm1104_vm1, %v14771_v57  ;;  %v12776_v23 = vadd.f32 %v10595_v6, %v12492_v44  ;;  %v787_v38 = vpop.f32.mrb[29].mxu1  ;;  %v12778_v5 = vld [vmem:[#allocation2 + $0x121] sm:$0xff] }
 0x123   : > { %1187 = vst.msk [vmem:[#allocation2 + $0x151] sm:$0xff] %vm1104_vm1, %v14772_v22  ;;  %v12784_v62 = vadd.f32 %v12492_v44, %v787_v38  ;;  %10689 = vmatprep.mubr.msk.f32.mxu0 %vm1104_vm1, %v12778_v5  ;;  %v12921_v11 = vld [vmem:[#allocation2 + $0x120] sm:$0xff]  ;;  %v12931_v58 = vld [vmem:[#allocation2 + $0x128] sm:$0xff] }
 0x124   : > { %14939 = vst [vmem:[#allocation32_spill] sm:$0xff] %v12776_v23  ;;  %v14774_v57 = vmax.f32 %v12776_v23, 0.0  ;;  %10690 = vmatmul.mubr.msk.f32.gmra.mrb[24].mxu0 %vm1104_vm1, %v12788_v61  ;;  %v12831_v23 = vld [vmem:[#allocation2 + $0x18] sm:$0xff] }
 0x125   : > { %14940 = vst [vmem:[#allocation33_spill] sm:$0xff] %v12784_v62  ;;  %v14776_v6 = vmax.f32 %v12784_v62, 0.0  ;;  %v12804_v38 = vld [vmem:[#allocation2 + $0x141] sm:$0xff]  ;;  %v12828_v62 = vld [vmem:[%s14740_s5 + $0x18] sm:$0xff]  ;;  %v10598_v8 = vpop.f32.mrb[30].mxu1 }
 0x126   : > { %1190 = vst.msk [vmem:[#allocation2 + $0x171] sm:$0xff] %vm1104_vm1, %v14774_v57  ;;  %v12797_v22 = vld [vmem:[#allocation2 + $0x139] sm:$0xff]  ;;  %v12926_v3 = vadd.f32 %v10598_v8, %v12492_v44  ;;  %v797_v0 = vpop.f32.mrb[31].mxu1 }
 0x127   : > { %1189 = vst.msk [vmem:[#allocation2 + $0x169] sm:$0xff] %vm1104_vm1, %v14776_v6  ;;  %10692 = vmatprep.mubr.msk.f32.mxu0 %vm1104_vm1, %v12797_v22  ;;  %v1193_v6 = vld [vmem:[#allocation2] sm:$0xff]  ;;  %v12929_v60 = vadd.f32 %v12492_v44, %v797_v0  ;;  %v12936_v52 = vld [vmem:[#allocation2 + $0x138] sm:$0xff] }
 0x128   : > { %10693 = vmatmul.mubr.msk.f32.gmra.mrb[26].mxu0 %vm1104_vm1, %v12804_v38  ;;  %14943 = vst [vmem:[#allocation36_spill] sm:$0xff] %v12926_v3  ;;  %v14808_v54 = vmax.f32 %v12926_v3, 0.0  ;;  %v12947_v44 = vld [vmem:[#allocation2 + $0x140] sm:$0xff]  ;;  %v1903_v3 = vld [vmem:[#allocation2 + $0xa] sm:$0xff] }
 0x129   : > { %v12812_v57 = vld [vmem:[#allocation2 + $0x159] sm:$0xff]  ;;  %14944 = vst [vmem:[#allocation37_spill] sm:$0xff] %v12929_v60  ;;  %v14809_v48 = vmax.f32 %v12929_v60, 0.0 }
 0x12a   : > { %v12808_v56 = vld [vmem:[#allocation2 + $0x151] sm:$0xff]  ;;  %1192 = vst.msk [vmem:[#allocation2 + $0x189] sm:$0xff] %vm1104_vm1, %v14808_v54 }
 0x12b   : > { %10695 = vmatprep.mubr.msk.f32.mxu0 %vm1104_vm1, %v12808_v56  ;;  %1191 = vst.msk [vmem:[#allocation2 + $0x181] sm:$0xff] %vm1104_vm1, %v14809_v48  ;;  %v12951_v0 = vld [vmem:[#allocation2 + $0x150] sm:$0xff]  ;;  %v12955_v8 = vld [vmem:[#allocation2 + $0x158] sm:$0xff]  ;;  %v1902_v48 = vld [vmem:[#allocation2 + $0x2] sm:$0xff] }
 0x12c   : > { %10696 = vmatmul.mubr.msk.f32.gmra.mrb[28].mxu0 %vm1104_vm1, %v12812_v57 }
 0x12d   : > { %v12820_v50 = vld [vmem:[#allocation2 + $0x171] sm:$0xff] }
 0x12e   : > { %v12816_v55 = vld [vmem:[#allocation2 + $0x169] sm:$0xff]  ;;  %14942 = vst [vmem:[#allocation35_spill] sm:$0xff] %v12820_v50 }
 0x12f   : > { %14941 = vst [vmem:[#allocation34_spill] sm:$0xff] %v12816_v55  ;;  %10698 = vmatprep.mubr.msk.f32.mxu0 %vm1104_vm1, %v12816_v55  ;;  %v12959_v54 = vld [vmem:[#allocation2 + $0x168] sm:$0xff]  ;;  %v12963_v60 = vld [vmem:[#allocation2 + $0x170] sm:$0xff] }
 0x130   : > { %10699 = vmatmul.mubr.msk.f32.gmra.mrb[30].mxu0 %vm1104_vm1, %v12820_v50  ;;  %v12974_v50 = vld [vmem:[#allocation2 + $0x1a] sm:$0xff]  ;;  %v12980_v55 = vld [vmem:[#allocation2 + $0x22] sm:$0xff] }
 0x131   : > { %10703 = vmatprep.mubr.msk.f32.mxu0 %vm1104_vm1, %v1193_v6  ;;  %v12841_v6 = vld [vmem:[#allocation2 + $0x30] sm:$0xff]  ;;  %14945 = vst [vmem:[#allocation38_spill] sm:$0xff] %v12974_v50  ;;  %14946 = vst [vmem:[#allocation39_spill] sm:$0xff] %v12980_v55 }
 0x134   : > { %10704 = vmatmul.mubr.msk.f32.vlgmr.msra.gmra.mrb[0].mxu0 %vm1104_vm1, %v1194_v49  ;;  %v12845_v49 = vld [vmem:[#allocation2 + $0x38] sm:$0xff] }
 0x135   : > { %10752 = vmatpush3.msra.mxu0 %v12486_v43  ;;  %10706 = vmatprep.mubr.msk.f32.mxu0 %vm1104_vm1, %v12831_v23  ;;  %v12849_v43 = vld [vmem:[#allocation2 + $0x48] sm:$0xff] }
 0x136   : > { %10801 = vmatprep.subr.mxu0 %v12828_v62 }
 0x138   : > { %10707 = vmatmul.mubr.msk.f32.gmra.mrb[2].mxu0 %vm1104_vm1, %v12837_v14 }
 0x139   : > { %10709 = vmatprep.mubr.msk.f32.mxu0 %vm1104_vm1, %v12841_v6 }
 0x13c   : > { %10710 = vmatmul.mubr.msk.f32.gmra.mrb[4].mxu0 %vm1104_vm1, %v12845_v49 }
 0x13d   : > { %10712 = vmatprep.mubr.msk.f32.mxu0 %vm1104_vm1, %v12849_v43 }
 0x140   : > { %10713 = vmatmul.mubr.msk.f32.gmra.mrb[6].mxu0 %vm1104_vm1, %v12853_v63 }
 0x141   : > { %10715 = vmatprep.mubr.msk.f32.mxu0 %vm1104_vm1, %v12857_v30 }
 0x144   : > { %10716 = vmatmul.mubr.msk.f32.gmra.mrb[8].mxu0 %vm1104_vm1, %v12861_v17 }
 0x145   : > { %10718 = vmatprep.mubr.msk.f32.mxu0 %vm1104_vm1, %v12865_v53 }
 0x148   : > { %10719 = vmatmul.mubr.msk.f32.gmra.mrb[10].mxu0 %vm1104_vm1, %v12869_v31 }
 0x149   : > { %10721 = vmatprep.mubr.msk.f32.mxu0 %vm1104_vm1, %v12873_v39 }
 0x14c   : > { %10722 = vmatmul.mubr.msk.f32.gmra.mrb[12].mxu0 %vm1104_vm1, %v12877_v25 }
 0x14d   : > { %10724 = vmatprep.mubr.msk.f32.mxu0 %vm1104_vm1, %v12881_v7 }
 0x150   : > { %10725 = vmatmul.mubr.msk.f32.gmra.mrb[14].mxu0 %vm1104_vm1, %v12885_v59 }
 0x151   : > { %10727 = vmatprep.mubr.msk.f32.mxu0 %vm1104_vm1, %v12889_v45 }
 0x154   : > { %10728 = vmatmul.mubr.msk.f32.gmra.mrb[16].mxu0 %vm1104_vm1, %v12893_v40 }
 0x155   : > { %10730 = vmatprep.mubr.msk.f32.mxu0 %vm1104_vm1, %v12897_v35 }
 0x158   : > { %10731 = vmatmul.mubr.msk.f32.gmra.mrb[18].mxu0 %vm1104_vm1, %v12901_v32 }
 0x159   : > { %10733 = vmatprep.mubr.msk.f32.mxu0 %vm1104_vm1, %v12905_v27 }
 0x15c   : > { %10734 = vmatmul.mubr.msk.f32.gmra.mrb[20].mxu0 %vm1104_vm1, %v12909_v24 }
 0x15d   : > { %10736 = vmatprep.mubr.msk.f32.mxu0 %vm1104_vm1, %v12913_v19 }
 0x160   : > { %10737 = vmatmul.mubr.msk.f32.gmra.mrb[22].mxu0 %vm1104_vm1, %v12917_v16 }
 0x161   : > { %10739 = vmatprep.mubr.msk.f32.mxu0 %vm1104_vm1, %v12921_v11 }
 0x164   : > { %10740 = vmatmul.mubr.msk.f32.gmra.mrb[24].mxu0 %vm1104_vm1, %v12931_v58 }
 0x165   : > { %10742 = vmatprep.mubr.msk.f32.mxu0 %vm1104_vm1, %v12936_v52 }
 0x168   : > { %10743 = vmatmul.mubr.msk.f32.gmra.mrb[26].mxu0 %vm1104_vm1, %v12947_v44 }
 0x169   : > { %10745 = vmatprep.mubr.msk.f32.mxu0 %vm1104_vm1, %v12951_v0 }
 0x16c   : > { %10746 = vmatmul.mubr.msk.f32.gmra.mrb[28].mxu0 %vm1104_vm1, %v12955_v8 }
 0x16d   : > { %10748 = vmatprep.mubr.msk.f32.mxu0 %vm1104_vm1, %v12959_v54 }
 0x170   : > { %10749 = vmatmul.mubr.msk.f32.gmra.mrb[30].mxu0 %vm1104_vm1, %v12963_v60 }
 0x171   : > { %10753 = vmatprep.mubr.msk.f32.mxu0 %vm1104_vm1, %v1902_v48  ;;  %v12984_v48 = vld [vmem:[#allocation2 + $0x32] sm:$0xff] }
 0x172   : > { %14947 = vst [vmem:[#allocation40_spill] sm:$0xff] %v12984_v48 }
 0x174   : > { %10754 = vmatmul.mubr.msk.f32.vlgmr.msra.gmra.mrb[0].mxu0 %vm1104_vm1, %v1903_v3  ;;  %v12988_v3 = vld [vmem:[#allocation2 + $0x3a] sm:$0xff] }
 0x175   : > { %10802 = vmatpush3.msra.mxu0 %v12828_v62  ;;  %10756 = vmatprep.mubr.msk.f32.mxu0 %vm1104_vm1, %v12974_v50  ;;  %14948 = vst [vmem:[#allocation41_spill] sm:$0xff] %v12988_v3  ;;  %v12992_v62 = vld [vmem:[#allocation2 + $0x4a] sm:$0xff]  ;;  %v12996_v50 = vld [vmem:[#allocation2 + $0x52] sm:$0xff] }
 0x176   : > { %10851 = vmatprep.subr.mxu0 %v12971_v46  ;;  %14949 = vst [vmem:[#allocation42_spill] sm:$0xff] %v12992_v62  ;;  %14950 = vst [vmem:[#allocation43_spill] sm:$0xff] %v12996_v50 }
 0x178   : > { %10757 = vmatmul.mubr.msk.f32.gmra.mrb[2].mxu0 %vm1104_vm1, %v12980_v55  ;;  %v13000_v55 = vld [vmem:[#allocation2 + $0x62] sm:$0xff] }
 0x179   : > { %10759 = vmatprep.mubr.msk.f32.mxu0 %vm1104_vm1, %v12984_v48  ;;  %14951 = vst [vmem:[#allocation44_spill] sm:$0xff] %v13000_v55  ;;  %v13004_v48 = vld [vmem:[#allocation2 + $0x6a] sm:$0xff] }
 0x17a   : > { %14952 = vst [vmem:[#allocation45_spill] sm:$0xff] %v13004_v48 }
 0x17c   : > { %10760 = vmatmul.mubr.msk.f32.gmra.mrb[4].mxu0 %vm1104_vm1, %v12988_v3  ;;  %v13008_v3 = vld [vmem:[#allocation2 + $0x7a] sm:$0xff] }
 0x17d   : > { %10762 = vmatprep.mubr.msk.f32.mxu0 %vm1104_vm1, %v12992_v62  ;;  %14953 = vst [vmem:[#allocation46_spill] sm:$0xff] %v13008_v3  ;;  %v13012_v62 = vld [vmem:[#allocation2 + $0x82] sm:$0xff] }
 0x17e   : > { %14954 = vst [vmem:[#allocation47_spill] sm:$0xff] %v13012_v62 }
 0x180   : > { %10763 = vmatmul.mubr.msk.f32.gmra.mrb[6].mxu0 %vm1104_vm1, %v12996_v50  ;;  %v13016_v50 = vld [vmem:[#allocation2 + $0x92] sm:$0xff] }
 0x181   : > { %10765 = vmatprep.mubr.msk.f32.mxu0 %vm1104_vm1, %v13000_v55  ;;  %14955 = vst [vmem:[#allocation48_spill] sm:$0xff] %v13016_v50  ;;  %v13020_v55 = vld [vmem:[#allocation2 + $0x9a] sm:$0xff] }
 0x182   : > { %14956 = vst [vmem:[#allocation49_spill] sm:$0xff] %v13020_v55 }
 0x184   : > { %10766 = vmatmul.mubr.msk.f32.gmra.mrb[8].mxu0 %vm1104_vm1, %v13004_v48  ;;  %v13024_v48 = vld [vmem:[#allocation2 + $0xaa] sm:$0xff] }
 0x185   : > { %10768 = vmatprep.mubr.msk.f32.mxu0 %vm1104_vm1, %v13008_v3  ;;  %14957 = vst [vmem:[#allocation50_spill] sm:$0xff] %v13024_v48  ;;  %v13028_v3 = vld [vmem:[#allocation2 + $0xb2] sm:$0xff] }
 0x186   : > { %14958 = vst [vmem:[#allocation51_spill] sm:$0xff] %v13028_v3 }
 0x188   : > { %10769 = vmatmul.mubr.msk.f32.gmra.mrb[10].mxu0 %vm1104_vm1, %v13012_v62  ;;  %v13032_v62 = vld [vmem:[#allocation2 + $0xc2] sm:$0xff] }
 0x189   : > { %10771 = vmatprep.mubr.msk.f32.mxu0 %vm1104_vm1, %v13016_v50  ;;  %14959 = vst [vmem:[#allocation52_spill] sm:$0xff] %v13032_v62  ;;  %v13036_v50 = vld [vmem:[#allocation2 + $0xca] sm:$0xff] }
 0x18a   : > { %14960 = vst [vmem:[#allocation53_spill] sm:$0xff] %v13036_v50 }
 0x18c   : > { %10772 = vmatmul.mubr.msk.f32.gmra.mrb[12].mxu0 %vm1104_vm1, %v13020_v55  ;;  %v13040_v55 = vld [vmem:[#allocation2 + $0xda] sm:$0xff] }
 0x18d   : > { %10774 = vmatprep.mubr.msk.f32.mxu0 %vm1104_vm1, %v13024_v48  ;;  %14961 = vst [vmem:[#allocation54_spill] sm:$0xff] %v13040_v55  ;;  %v13044_v48 = vld [vmem:[#allocation2 + $0xe2] sm:$0xff] }
 0x18e   : > { %14962 = vst [vmem:[#allocation55_spill] sm:$0xff] %v13044_v48 }
 0x190   : > { %10775 = vmatmul.mubr.msk.f32.gmra.mrb[14].mxu0 %vm1104_vm1, %v13028_v3  ;;  %v13048_v3 = vld [vmem:[#allocation2 + $0xf2] sm:$0xff] }
 0x191   : > { %10777 = vmatprep.mubr.msk.f32.mxu0 %vm1104_vm1, %v13032_v62  ;;  %14963 = vst [vmem:[#allocation56_spill] sm:$0xff] %v13048_v3  ;;  %v13052_v62 = vld [vmem:[#allocation2 + $0xfa] sm:$0xff] }
 0x192   : > { %14964 = vst [vmem:[#allocation57_spill] sm:$0xff] %v13052_v62 }
 0x194   : > { %10778 = vmatmul.mubr.msk.f32.gmra.mrb[16].mxu0 %vm1104_vm1, %v13036_v50  ;;  %v13056_v50 = vld [vmem:[#allocation2 + $0x10a] sm:$0xff] }
 0x195   : > { %10780 = vmatprep.mubr.msk.f32.mxu0 %vm1104_vm1, %v13040_v55  ;;  %14965 = vst [vmem:[#allocation58_spill] sm:$0xff] %v13056_v50  ;;  %v13060_v55 = vld [vmem:[#allocation2 + $0x112] sm:$0xff] }
 0x196   : > { %14966 = vst [vmem:[#allocation59_spill] sm:$0xff] %v13060_v55 }
 0x198   : > { %10781 = vmatmul.mubr.msk.f32.gmra.mrb[18].mxu0 %vm1104_vm1, %v13044_v48  ;;  %v13064_v48 = vld [vmem:[#allocation2 + $0x122] sm:$0xff] }
 0x199   : > { %10783 = vmatprep.mubr.msk.f32.mxu0 %vm1104_vm1, %v13048_v3  ;;  %14967 = vst [vmem:[#allocation60_spill] sm:$0xff] %v13064_v48  ;;  %v13068_v3 = vld [vmem:[#allocation2 + $0x12a] sm:$0xff] }
 0x19a   : > { %14968 = vst [vmem:[#allocation61_spill] sm:$0xff] %v13068_v3 }
 0x19c   : > { %10784 = vmatmul.mubr.msk.f32.gmra.mrb[20].mxu0 %vm1104_vm1, %v13052_v62  ;;  %v13072_v62 = vld [vmem:[#allocation2 + $0x13a] sm:$0xff] }
 0x19d   : > { %10786 = vmatprep.mubr.msk.f32.mxu0 %vm1104_vm1, %v13056_v50  ;;  %14969 = vst [vmem:[#allocation62_spill] sm:$0xff] %v13072_v62  ;;  %v13076_v50 = vld [vmem:[#allocation2 + $0x142] sm:$0xff] }
 0x1a0   : > { %10787 = vmatmul.mubr.msk.f32.gmra.mrb[22].mxu0 %vm1104_vm1, %v13060_v55  ;;  %v13080_v55 = vld [vmem:[#allocation2 + $0x152] sm:$0xff] }
 0x1a1   : > { %10789 = vmatprep.mubr.msk.f32.mxu0 %vm1104_vm1, %v13064_v48  ;;  %14970 = vst [vmem:[#allocation63_spill] sm:$0xff] %v13080_v55  ;;  %v13084_v48 = vld [vmem:[#allocation2 + $0x15a] sm:$0xff] }
 0x1a4   : > { %10790 = vmatmul.mubr.msk.f32.gmra.mrb[24].mxu0 %vm1104_vm1, %v13068_v3  ;;  %v13088_v3 = vld [vmem:[#allocation2 + $0x16a] sm:$0xff] }
 0x1a5   : > { %10792 = vmatprep.mubr.msk.f32.mxu0 %vm1104_vm1, %v13072_v62  ;;  %14971 = vst [vmem:[#allocation64_spill] sm:$0xff] %v13088_v3  ;;  %v13092_v62 = vld [vmem:[#allocation2 + $0x172] sm:$0xff] }
 0x1a8   : > { %10793 = vmatmul.mubr.msk.f32.gmra.mrb[26].mxu0 %vm1104_vm1, %v13076_v50 }
 0x1a9   : > { %10795 = vmatprep.mubr.msk.f32.mxu0 %vm1104_vm1, %v13080_v55  ;;  %v9319_v55 = vld [vmem:[%s14740_s5 + $0x28] sm:$0xff] }
 0x1ac   : > { %10796 = vmatmul.mubr.msk.f32.gmra.mrb[28].mxu0 %vm1104_vm1, %v13084_v48 }
 0x1ad   : > { %10798 = vmatprep.mubr.msk.f32.mxu0 %vm1104_vm1, %v13088_v3 }
 0x1b0   : > { %10799 = vmatmul.mubr.msk.f32.gmra.mrb[30].mxu0 %vm1104_vm1, %v13092_v62 }
 0x1b1   : > { %10803 = vmatprep.mubr.msk.f32.mxu0 %vm1104_vm1, %v12831_v23  ;;  %v9352_v23 = vld [vmem:[%s14740_s5 + $0x30] sm:$0xff] }
 0x1b4   : > { %10804 = vmatmul.mubr.msk.f32.vlgmr.msra.gmra.mrb[0].mxu0 %vm1104_vm1, %v12837_v14  ;;  %v13164_v14 = vld [vmem:[#allocation2 + $0x188] sm:$0xff] }
 0x1b5   : > { %10852 = vmatpush3.msra.mxu0 %v12971_v46  ;;  %10806 = vmatprep.mubr.msk.f32.mxu0 %vm1104_vm1, %v12841_v6  ;;  %v13158_v46 = vld [vmem:[#allocation2 + $0x180] sm:$0xff] }
 0x1b6   : > { %10901 = vmatprep.subr.mxu0 %v9319_v55 }
 0x1b8   : > { %10807 = vmatmul.mubr.msk.f32.gmra.mrb[2].mxu0 %vm1104_vm1, %v12845_v49 }
 0x1b9   : > { %10809 = vmatprep.mubr.msk.f32.mxu0 %vm1104_vm1, %v12849_v43 }
 0x1bc   : > { %10810 = vmatmul.mubr.msk.f32.gmra.mrb[4].mxu0 %vm1104_vm1, %v12853_v63 }
 0x1bd   : > { %10812 = vmatprep.mubr.msk.f32.mxu0 %vm1104_vm1, %v12857_v30 }
 0x1c0   : > { %10813 = vmatmul.mubr.msk.f32.gmra.mrb[6].mxu0 %vm1104_vm1, %v12861_v17 }
 0x1c1   : > { %10815 = vmatprep.mubr.msk.f32.mxu0 %vm1104_vm1, %v12865_v53 }
 0x1c4   : > { %10816 = vmatmul.mubr.msk.f32.gmra.mrb[8].mxu0 %vm1104_vm1, %v12869_v31 }
 0x1c5   : > { %10818 = vmatprep.mubr.msk.f32.mxu0 %vm1104_vm1, %v12873_v39 }
 0x1c8   : > { %10819 = vmatmul.mubr.msk.f32.gmra.mrb[10].mxu0 %vm1104_vm1, %v12877_v25 }
 0x1c9   : > { %10821 = vmatprep.mubr.msk.f32.mxu0 %vm1104_vm1, %v12881_v7 }
 0x1cc   : > { %10822 = vmatmul.mubr.msk.f32.gmra.mrb[12].mxu0 %vm1104_vm1, %v12885_v59 }
 0x1cd   : > { %10824 = vmatprep.mubr.msk.f32.mxu0 %vm1104_vm1, %v12889_v45 }
 0x1d0   : > { %10825 = vmatmul.mubr.msk.f32.gmra.mrb[14].mxu0 %vm1104_vm1, %v12893_v40 }
 0x1d1   : > { %10827 = vmatprep.mubr.msk.f32.mxu0 %vm1104_vm1, %v12897_v35 }
 0x1d4   : > { %10828 = vmatmul.mubr.msk.f32.gmra.mrb[16].mxu0 %vm1104_vm1, %v12901_v32 }
 0x1d5   : > { %10830 = vmatprep.mubr.msk.f32.mxu0 %vm1104_vm1, %v12905_v27 }
 0x1d8   : > { %10831 = vmatmul.mubr.msk.f32.gmra.mrb[18].mxu0 %vm1104_vm1, %v12909_v24 }
 0x1d9   : > { %10833 = vmatprep.mubr.msk.f32.mxu0 %vm1104_vm1, %v12913_v19 }
 0x1dc   : > { %10834 = vmatmul.mubr.msk.f32.gmra.mrb[20].mxu0 %vm1104_vm1, %v12917_v16 }
 0x1dd   : > { %10836 = vmatprep.mubr.msk.f32.mxu0 %vm1104_vm1, %v12921_v11 }
 0x1e0   : > { %10837 = vmatmul.mubr.msk.f32.gmra.mrb[22].mxu0 %vm1104_vm1, %v12931_v58 }
 0x1e1   : > { %10839 = vmatprep.mubr.msk.f32.mxu0 %vm1104_vm1, %v12936_v52 }
 0x1e4   : > { %10840 = vmatmul.mubr.msk.f32.gmra.mrb[24].mxu0 %vm1104_vm1, %v12947_v44 }
 0x1e5   : > { %10842 = vmatprep.mubr.msk.f32.mxu0 %vm1104_vm1, %v12951_v0 }
 0x1e8   : > { %10843 = vmatmul.mubr.msk.f32.gmra.mrb[26].mxu0 %vm1104_vm1, %v12955_v8 }
 0x1e9   : > { %10845 = vmatprep.mubr.msk.f32.mxu0 %vm1104_vm1, %v12959_v54 }
 0x1ec   : > { %10846 = vmatmul.mubr.msk.f32.gmra.mrb[28].mxu0 %vm1104_vm1, %v12963_v60 }
 0x1ed   : > { %10848 = vmatprep.mubr.msk.f32.mxu0 %vm1104_vm1, %v13158_v46 }
 0x1f0   : > { %10849 = vmatmul.mubr.msk.f32.gmra.mrb[30].mxu0 %vm1104_vm1, %v13164_v14 }
 0x1f1   : > { %10853 = vmatprep.mubr.msk.f32.mxu0 %vm1104_vm1, %v12536_v2  ;;  %v14973_v2 = vld [vmem:[#allocation35_spill] sm:$0xff] }
 0x1f4   : > { %10854 = vmatmul.mubr.msk.f32.vlgmr.msra.gmra.mrb[0].mxu0 %vm1104_vm1, %v12546_v4  ;;  %v13231_v4 = vld [vmem:[#allocation2 + $0x181] sm:$0xff] }
 0x1f5   : > { %10902 = vmatpush3.msra.mxu0 %v9319_v55  ;;  %10856 = vmatprep.mubr.msk.f32.mxu0 %vm1104_vm1, %v12558_v10  ;;  %v14972_v55 = vld [vmem:[#allocation34_spill] sm:$0xff]  ;;  %v13235_v10 = vld [vmem:[#allocation2 + $0x189] sm:$0xff] }
 0x1f6   : > { %10951 = vmatprep.subr.mxu0 %v9352_v23 }
 0x1f8   : > { %10857 = vmatmul.mubr.msk.f32.gmra.mrb[2].mxu0 %vm1104_vm1, %v12568_v12  ;;  %v14974_v12 = vld [vmem:[#allocation38_spill] sm:$0xff] }
 0x1f9   : > { %10859 = vmatprep.mubr.msk.f32.mxu0 %vm1104_vm1, %v12580_v18  ;;  %v9385_v18 = vld [vmem:[%s14740_s5 + $0x38] sm:$0xff] }
 0x1fc   : > { %10860 = vmatmul.mubr.msk.f32.gmra.mrb[4].mxu0 %vm1104_vm1, %v12590_v20  ;;  %v14975_v20 = vld [vmem:[#allocation39_spill] sm:$0xff] }
 0x1fd   : > { %10862 = vmatprep.mubr.msk.f32.mxu0 %vm1104_vm1, %v12602_v26  ;;  %v14976_v26 = vld [vmem:[#allocation40_spill] sm:$0xff] }
 0x200   : > { %10863 = vmatmul.mubr.msk.f32.gmra.mrb[6].mxu0 %vm1104_vm1, %v12612_v28  ;;  %v14977_v28 = vld [vmem:[#allocation41_spill] sm:$0xff] }
 0x201   : > { %10865 = vmatprep.mubr.msk.f32.mxu0 %vm1104_vm1, %v12624_v34  ;;  %v14978_v34 = vld [vmem:[#allocation42_spill] sm:$0xff] }
 0x204   : > { %10866 = vmatmul.mubr.msk.f32.gmra.mrb[8].mxu0 %vm1104_vm1, %v12634_v36  ;;  %v14979_v36 = vld [vmem:[#allocation43_spill] sm:$0xff] }
 0x205   : > { %10868 = vmatprep.mubr.msk.f32.mxu0 %vm1104_vm1, %v12646_v42  ;;  %v14980_v42 = vld [vmem:[#allocation44_spill] sm:$0xff] }
 0x208   : > { %10869 = vmatmul.mubr.msk.f32.gmra.mrb[10].mxu0 %vm1104_vm1, %v12656_v47  ;;  %v14981_v47 = vld [vmem:[#allocation45_spill] sm:$0xff] }
 0x209   : > { %10871 = vmatprep.mubr.msk.f32.mxu0 %vm1104_vm1, %v12668_v1  ;;  %v14982_v1 = vld [vmem:[#allocation46_spill] sm:$0xff] }
 0x20c   : > { %10872 = vmatmul.mubr.msk.f32.gmra.mrb[12].mxu0 %vm1104_vm1, %v12678_v9  ;;  %v14983_v9 = vld [vmem:[#allocation47_spill] sm:$0xff] }
 0x20d   : > { %10874 = vmatprep.mubr.msk.f32.mxu0 %vm1104_vm1, %v12690_v33 }
 0x210   : > { %10875 = vmatmul.mubr.msk.f32.gmra.mrb[14].mxu0 %vm1104_vm1, %v12700_v41 }
 0x211   : > { %10877 = vmatprep.mubr.msk.f32.mxu0 %vm1104_vm1, %v12712_v15 }
 0x214   : > { %10878 = vmatmul.mubr.msk.f32.gmra.mrb[16].mxu0 %vm1104_vm1, %v12722_v51 }
 0x215   : > { %10880 = vmatprep.mubr.msk.f32.mxu0 %vm1104_vm1, %v12734_v37 }
 0x218   : > { %10881 = vmatmul.mubr.msk.f32.gmra.mrb[18].mxu0 %vm1104_vm1, %v12744_v29 }
 0x219   : > { %10883 = vmatprep.mubr.msk.f32.mxu0 %vm1104_vm1, %v12756_v21 }
 0x21c   : > { %10884 = vmatmul.mubr.msk.f32.gmra.mrb[20].mxu0 %vm1104_vm1, %v12766_v13 }
 0x21d   : > { %10886 = vmatprep.mubr.msk.f32.mxu0 %vm1104_vm1, %v12778_v5 }
 0x220   : > { %10887 = vmatmul.mubr.msk.f32.gmra.mrb[22].mxu0 %vm1104_vm1, %v12788_v61 }
 0x221   : > { %10889 = vmatprep.mubr.msk.f32.mxu0 %vm1104_vm1, %v12797_v22 }
 0x224   : > { %10890 = vmatmul.mubr.msk.f32.gmra.mrb[24].mxu0 %vm1104_vm1, %v12804_v38 }
 0x225   : > { %10892 = vmatprep.mubr.msk.f32.mxu0 %vm1104_vm1, %v12808_v56 }
 0x228   : > { %10893 = vmatmul.mubr.msk.f32.gmra.mrb[26].mxu0 %vm1104_vm1, %v12812_v57 }
 0x229   : > { %10895 = vmatprep.mubr.msk.f32.mxu0 %vm1104_vm1, %v14972_v55 }
 0x22c   : > { %10896 = vmatmul.mubr.msk.f32.gmra.mrb[28].mxu0 %vm1104_vm1, %v14973_v2 }
 0x22d   : > { %10898 = vmatprep.mubr.msk.f32.mxu0 %vm1104_vm1, %v13231_v4 }
 0x230   : > { %10899 = vmatmul.mubr.msk.f32.gmra.mrb[30].mxu0 %vm1104_vm1, %v13235_v10 }
 0x231   : > { %10903 = vmatprep.mubr.msk.f32.mxu0 %vm1104_vm1, %v14974_v12  ;;  %v14985_v12 = vld [vmem:[#allocation49_spill] sm:$0xff] }
 0x234   : > { %10904 = vmatmul.mubr.msk.f32.vlgmr.msra.gmra.mrb[0].mxu0 %vm1104_vm1, %v14975_v20  ;;  %v14986_v20 = vld [vmem:[#allocation50_spill] sm:$0xff] }
 0x235   : > { %10952 = vmatpush3.msra.mxu0 %v9352_v23  ;;  %10906 = vmatprep.mubr.msk.f32.mxu0 %vm1104_vm1, %v14976_v26  ;;  %v14984_v23 = vld [vmem:[#allocation48_spill] sm:$0xff] }
 0x236   : > { %11001 = vmatprep.subr.mxu0 %v9385_v18 }
 0x238   : > { %10907 = vmatmul.mubr.msk.f32.gmra.mrb[2].mxu0 %vm1104_vm1, %v14977_v28 }
 0x239   : > { %10909 = vmatprep.mubr.msk.f32.mxu0 %vm1104_vm1, %v14978_v34 }
 0x23c   : > { %10910 = vmatmul.mubr.msk.f32.gmra.mrb[4].mxu0 %vm1104_vm1, %v14979_v36  ;;  %v14987_v36 = vld [vmem:[#allocation51_spill] sm:$0xff] }
 0x23d   : > { %10912 = vmatprep.mubr.msk.f32.mxu0 %vm1104_vm1, %v14980_v42  ;;  %v14988_v42 = vld [vmem:[#allocation52_spill] sm:$0xff] }
 0x240   : > { %10913 = vmatmul.mubr.msk.f32.gmra.mrb[6].mxu0 %vm1104_vm1, %v14981_v47  ;;  %v14989_v47 = vld [vmem:[#allocation53_spill] sm:$0xff] }
 0x241   : > { %10915 = vmatprep.mubr.msk.f32.mxu0 %vm1104_vm1, %v14982_v1  ;;  %v14990_v1 = vld [vmem:[#allocation54_spill] sm:$0xff] }
 0x244   : > { %10916 = vmatmul.mubr.msk.f32.gmra.mrb[8].mxu0 %vm1104_vm1, %v14983_v9  ;;  %v14991_v9 = vld [vmem:[#allocation55_spill] sm:$0xff] }
 0x245   : > { %10918 = vmatprep.mubr.msk.f32.mxu0 %vm1104_vm1, %v14984_v23  ;;  %v14992_v23 = vld [vmem:[#allocation56_spill] sm:$0xff] }
 0x248   : > { %10919 = vmatmul.mubr.msk.f32.gmra.mrb[10].mxu0 %vm1104_vm1, %v14985_v12  ;;  %v14993_v12 = vld [vmem:[#allocation57_spill] sm:$0xff] }
 0x249   : > { %10921 = vmatprep.mubr.msk.f32.mxu0 %vm1104_vm1, %v14986_v20  ;;  %v14994_v20 = vld [vmem:[#allocation58_spill] sm:$0xff] }
 0x24c   : > { %10922 = vmatmul.mubr.msk.f32.gmra.mrb[12].mxu0 %vm1104_vm1, %v14987_v36  ;;  %v14995_v36 = vld [vmem:[#allocation59_spill] sm:$0xff] }
 0x24d   : > { %10924 = vmatprep.mubr.msk.f32.mxu0 %vm1104_vm1, %v14988_v42  ;;  %v14996_v42 = vld [vmem:[#allocation60_spill] sm:$0xff] }
 0x250   : > { %10925 = vmatmul.mubr.msk.f32.gmra.mrb[14].mxu0 %vm1104_vm1, %v14989_v47  ;;  %v14997_v47 = vld [vmem:[#allocation61_spill] sm:$0xff] }
 0x251   : > { %10927 = vmatprep.mubr.msk.f32.mxu0 %vm1104_vm1, %v14990_v1  ;;  %v14998_v1 = vld [vmem:[#allocation62_spill] sm:$0xff] }
 0x254   : > { %10928 = vmatmul.mubr.msk.f32.gmra.mrb[16].mxu0 %vm1104_vm1, %v14991_v9 }
 0x255   : > { %10930 = vmatprep.mubr.msk.f32.mxu0 %vm1104_vm1, %v14992_v23  ;;  %v14999_v23 = vld [vmem:[#allocation63_spill] sm:$0xff] }
 0x258   : > { %10931 = vmatmul.mubr.msk.f32.gmra.mrb[18].mxu0 %vm1104_vm1, %v14993_v12 }
 0x259   : > { %10933 = vmatprep.mubr.msk.f32.mxu0 %vm1104_vm1, %v14994_v20 }
 0x25c   : > { %10934 = vmatmul.mubr.msk.f32.gmra.mrb[20].mxu0 %vm1104_vm1, %v14995_v36 }
 0x25d   : > { %10936 = vmatprep.mubr.msk.f32.mxu0 %vm1104_vm1, %v14996_v42  ;;  %v13302_v42 = vld [vmem:[#allocation2 + $0x182] sm:$0xff] }
 0x260   : > { %10937 = vmatmul.mubr.msk.f32.gmra.mrb[22].mxu0 %vm1104_vm1, %v14997_v47 }
 0x261   : > { %10939 = vmatprep.mubr.msk.f32.mxu0 %vm1104_vm1, %v14998_v1  ;;  %v13306_v1 = vld [vmem:[#allocation2 + $0x18a] sm:$0xff] }
 0x264   : > { %10940 = vmatmul.mubr.msk.f32.gmra.mrb[24].mxu0 %vm1104_vm1, %v13076_v50 }
 0x265   : > { %10942 = vmatprep.mubr.msk.f32.mxu0 %vm1104_vm1, %v14999_v23 }
 0x268   : > { %10943 = vmatmul.mubr.msk.f32.gmra.mrb[26].mxu0 %vm1104_vm1, %v13084_v48 }
 0x269   : > { %10945 = vmatprep.mubr.msk.f32.mxu0 %vm1104_vm1, %v13088_v3  ;;  %v9418_v3 = vld [vmem:[%s14740_s5 + $0x40] sm:$0xff] }
 0x26c   : > { %10946 = vmatmul.mubr.msk.f32.gmra.mrb[28].mxu0 %vm1104_vm1, %v13092_v62 }
 0x26d   : > { %10948 = vmatprep.mubr.msk.f32.mxu0 %vm1104_vm1, %v13302_v42 }
 0x270   : > { %10949 = vmatmul.mubr.msk.f32.gmra.mrb[30].mxu0 %vm1104_vm1, %v13306_v1 }
 0x271   : > { %10953 = vmatprep.mubr.msk.f32.mxu0 %vm1104_vm1, %v12841_v6  ;;  %v12220_v6 = vld [vmem:[%s12350_s18 + $0x38] sm:$0xff] }
 0x274   : > { %10954 = vmatmul.mubr.msk.f32.vlgmr.msra.gmra.mrb[0].mxu0 %vm1104_vm1, %v12845_v49  ;;  %v3848_v49 = vld [vmem:[#allocation2 + $0xa9] sm:$0xff] }
 0x275   : > { %11002 = vmatpush3.msra.mxu0 %v9385_v18  ;;  %10956 = vmatprep.mubr.msk.f32.mxu0 %vm1104_vm1, %v12849_v43  ;;  %v12221_v43 = vld [vmem:[%s12350_s18 + $0x40] sm:$0xff]  ;;  %v12240_v18 = vld [vmem:[%s12350_s18 + $0xd8] sm:$0xff] }
 0x276   : > { %11051 = vmatprep.subr.mxu0 %v9418_v3 }
 0x278   : > { %10957 = vmatmul.mubr.msk.f32.gmra.mrb[2].mxu0 %vm1104_vm1, %v12853_v63  ;;  %v3847_v63 = vld [vmem:[#allocation2 + $0x99] sm:$0xff] }
 0x279   : > { %10959 = vmatprep.mubr.msk.f32.mxu0 %vm1104_vm1, %v12857_v30  ;;  %v3841_v30 = vld [vmem:[#allocation2 + $0x51] sm:$0xff] }
 0x27c   : > { %10960 = vmatmul.mubr.msk.f32.gmra.mrb[4].mxu0 %vm1104_vm1, %v12861_v17  ;;  %v12219_v17 = vld [vmem:[%s12350_s18 + $0x30] sm:$0xff] }
 0x27d   : > { %10962 = vmatprep.mubr.msk.f32.mxu0 %vm1104_vm1, %v12865_v53  ;;  %v12216_v53 = vld [vmem:[%s12350_s18 + $0x18] sm:$0xff] }
 0x280   : > { %10963 = vmatmul.mubr.msk.f32.gmra.mrb[6].mxu0 %vm1104_vm1, %v12869_v31  ;;  %v3846_v31 = vld [vmem:[#allocation2 + $0x91] sm:$0xff] }
 0x281   : > { %10965 = vmatprep.mubr.msk.f32.mxu0 %vm1104_vm1, %v12873_v39  ;;  %v12218_v39 = vld [vmem:[%s12350_s18 + $0x28] sm:$0xff] }
 0x284   : > { %10966 = vmatmul.mubr.msk.f32.gmra.mrb[8].mxu0 %vm1104_vm1, %v12877_v25  ;;  %v3845_v25 = vld [vmem:[#allocation2 + $0x81] sm:$0xff] }
 0x285   : > { %10968 = vmatprep.mubr.msk.f32.mxu0 %vm1104_vm1, %v12881_v7  ;;  %v12217_v7 = vld [vmem:[%s12350_s18 + $0x20] sm:$0xff] }
 0x288   : > { %10969 = vmatmul.mubr.msk.f32.gmra.mrb[10].mxu0 %vm1104_vm1, %v12885_v59  ;;  %v3844_v59 = vld [vmem:[#allocation2 + $0x79] sm:$0xff] }
 0x289   : > { %10971 = vmatprep.mubr.msk.f32.mxu0 %vm1104_vm1, %v12889_v45  ;;  %v3843_v45 = vld [vmem:[#allocation2 + $0x69] sm:$0xff] }
 0x28c   : > { %10972 = vmatmul.mubr.msk.f32.gmra.mrb[12].mxu0 %vm1104_vm1, %v12893_v40  ;;  %v12215_v40 = vld [vmem:[%s12350_s18 + $0x10] sm:$0xff] }
 0x28d   : > { %10974 = vmatprep.mubr.msk.f32.mxu0 %vm1104_vm1, %v12897_v35  ;;  %v3842_v35 = vld [vmem:[#allocation2 + $0x61] sm:$0xff] }
 0x290   : > { %10975 = vmatmul.mubr.msk.f32.gmra.mrb[14].mxu0 %vm1104_vm1, %v12901_v32  ;;  %v12214_v32 = vld [vmem:[%s12350_s18 + $0x8] sm:$0xff] }
 0x291   : > { %10977 = vmatprep.mubr.msk.f32.mxu0 %vm1104_vm1, %v12905_v27  ;;  %v3840_v27 = vld [vmem:[#allocation2 + $0x49] sm:$0xff] }
 0x294   : > { %10978 = vmatmul.mubr.msk.f32.gmra.mrb[16].mxu0 %vm1104_vm1, %v12909_v24  ;;  %v9452_v24 = vld [vmem:[%s14742_s7 + $0x8] sm:$0xff] }
 0x295   : > { %10980 = vmatprep.mubr.msk.f32.mxu0 %vm1104_vm1, %v12913_v19  ;;  %v3839_v19 = vld [vmem:[#allocation2 + $0x39] sm:$0xff] }
 0x298   : > { %10981 = vmatmul.mubr.msk.f32.gmra.mrb[18].mxu0 %vm1104_vm1, %v12917_v16 }
 0x299   : > { %10983 = vmatprep.mubr.msk.f32.mxu0 %vm1104_vm1, %v12921_v11  ;;  %v3838_v11 = vld [vmem:[#allocation2 + $0x31] sm:$0xff] }
 0x29c   : > { %10984 = vmatmul.mubr.msk.f32.gmra.mrb[20].mxu0 %vm1104_vm1, %v12931_v58  ;;  %v3481_v58 = vld [vmem:[#allocation2 + $0x198] sm:$0xff] }
 0x29d   : > { %10986 = vmatprep.mubr.msk.f32.mxu0 %vm1104_vm1, %v12936_v52  ;;  %v3482_v52 = vld [vmem:[#allocation2 + $0x1a0] sm:$0xff] }
 0x2a0   : > { %10987 = vmatmul.mubr.msk.f32.gmra.mrb[22].mxu0 %vm1104_vm1, %v12947_v44  ;;  %v3849_v44 = vld [vmem:[#allocation2 + $0xb1] sm:$0xff] }
 0x2a1   : > { %10989 = vmatprep.mubr.msk.f32.mxu0 %vm1104_vm1, %v12951_v0  ;;  %v12222_v0 = vld [vmem:[%s12350_s18 + $0x48] sm:$0xff] }
 0x2a4   : > { %10990 = vmatmul.mubr.msk.f32.gmra.mrb[24].mxu0 %vm1104_vm1, %v12955_v8  ;;  %v12223_v8 = vld [vmem:[%s12350_s18 + $0x50] sm:$0xff] }
 0x2a5   : > { %10992 = vmatprep.mubr.msk.f32.mxu0 %vm1104_vm1, %v12959_v54  ;;  %v838_v54 = vld [vmem:[%s14738_s3] sm:$0xff] }
 0x2a8   : > { %10993 = vmatmul.mubr.msk.f32.gmra.mrb[26].mxu0 %vm1104_vm1, %v12963_v60  ;;  %v839_v60 = vld [vmem:[%s14738_s3 + $0x8] sm:$0xff] }
 0x2a9   : > { %10995 = vmatprep.mubr.msk.f32.mxu0 %vm1104_vm1, %v13158_v46  ;;  %v11655_v16 = vpack.c.bf16 %v839_v60, %v838_v54  ;;  %v12225_v46 = vld [vmem:[%s12350_s18 + $0x60] sm:$0xff] }
 0x2aa   : > { %v15002_v54 = vld [vmem:[#allocation45_spill] sm:$0xff]  ;;  %v15003_v60 = vld [vmem:[#allocation46_spill] sm:$0xff] }
 0x2ab   : > { %11656 = vmatprep.subr.bf16.mxu1 %v11655_v16 }
 0x2ac   : > { %10996 = vmatmul.mubr.msk.f32.gmra.mrb[28].mxu0 %vm1104_vm1, %v13164_v14  ;;  %11658 = vmatpush3.bf16.msra.mxu1 %v11655_v16  ;;  %v12226_v14 = vld [vmem:[%s12350_s18 + $0x68] sm:$0xff]  ;;  %v15005_v16 = vld [vmem:[#allocation48_spill] sm:$0xff] }
 0x2ad   : > { %10998 = vmatprep.mubr.msk.f32.mxu0 %vm1104_vm1, %v3481_v58  ;;  %11101 = vmatprep.subr.mxu1 %v9452_v24  ;;  %v12242_v58 = vld [vmem:[%s12350_s18 + $0xe8] sm:$0xff] }
 0x2af   : > { %10604 = vmatmul.mubr.msk.f32.vlgmr.msra.gmra.mrb[32].mxu1 %vm484_vm0, %v12214_v32  ;;  %v15012_v32 = vld [vmem:[#allocation56_spill] sm:$0xff] }
 0x2b0   : > { %10999 = vmatmul.mubr.msk.f32.gmra.mrb[30].mxu0 %vm1104_vm1, %v3482_v52  ;;  %11102 = vmatpush3.msra.mxu1 %v9452_v24  ;;  %v12243_v52 = vld [vmem:[%s12350_s18 + $0xf0] sm:$0xff] }
 0x2b1   : > { %11003 = vmatprep.mubr.msk.f32.mxu0 %vm1104_vm1, %v3838_v11  ;;  %10606 = vmatprep.mubr.msk.f32.mxu1 %vm484_vm0, %v12215_v40  ;;  %v15001_v11 = vld [vmem:[#allocation44_spill] sm:$0xff]  ;;  %v15014_v40 = vld [vmem:[#allocation62_spill] sm:$0xff] }
 0x2b2   : > { %v15009_v24 = vld [vmem:[#allocation52_spill] sm:$0xff] }
 0x2b3   : > { %10607 = vmatmul.mubr.msk.f32.gmra.mrb[34].mxu1 %vm484_vm0, %v12216_v53 }
 0x2b4   : > { %11004 = vmatmul.mubr.msk.f32.vlgmr.msra.gmra.mrb[0].mxu0 %vm1104_vm1, %v3839_v19  ;;  %10609 = vmatprep.mubr.msk.f32.mxu1 %vm484_vm0, %v12217_v7  ;;  %v15008_v19 = vld [vmem:[#allocation51_spill] sm:$0xff] }
 0x2b5   : > { %11052 = vmatpush3.msra.mxu0 %v9418_v3  ;;  %11006 = vmatprep.mubr.msk.f32.mxu0 %vm1104_vm1, %v3840_v27  ;;  %v12224_v3 = vld [vmem:[%s12350_s18 + $0x58] sm:$0xff] }
 0x2b6   : > { %v15010_v27 = vld [vmem:[#allocation53_spill] sm:$0xff] }
 0x2b7   : > { %10610 = vmatmul.mubr.msk.f32.gmra.mrb[36].mxu1 %vm484_vm0, %v12218_v39 }
 0x2b8   : > { %11007 = vmatmul.mubr.msk.f32.gmra.mrb[2].mxu0 %vm1104_vm1, %v3841_v30  ;;  %10612 = vmatprep.mubr.msk.f32.mxu1 %vm484_vm0, %v12219_v17  ;;  %v15011_v30 = vld [vmem:[#allocation54_spill] sm:$0xff] }
 0x2b9   : > { %11009 = vmatprep.mubr.msk.f32.mxu0 %vm1104_vm1, %v3842_v35  ;;  %v15013_v35 = vld [vmem:[#allocation60_spill] sm:$0xff] }
 0x2bb   : > { %10613 = vmatmul.mubr.msk.f32.gmra.mrb[38].mxu1 %vm484_vm0, %v12220_v6 }
 0x2bc   : > { %11010 = vmatmul.mubr.msk.f32.gmra.mrb[4].mxu0 %vm1104_vm1, %v3843_v45  ;;  %10615 = vmatprep.mubr.msk.f32.mxu1 %vm484_vm0, %v12221_v43 }
 0x2bd   : > { %11012 = vmatprep.mubr.msk.f32.mxu0 %vm1104_vm1, %v3844_v59 }
 0x2bf   : > { %10616 = vmatmul.mubr.msk.f32.gmra.mrb[40].mxu1 %vm484_vm0, %v12222_v0 }
 0x2c0   : > { %11013 = vmatmul.mubr.msk.f32.gmra.mrb[6].mxu0 %vm1104_vm1, %v3845_v25  ;;  %10618 = vmatprep.mubr.msk.f32.mxu1 %vm484_vm0, %v12223_v8 }
 0x2c1   : > { %11015 = vmatprep.mubr.msk.f32.mxu0 %vm1104_vm1, %v3846_v31 }
 0x2c3   : > { %10619 = vmatmul.mubr.msk.f32.gmra.mrb[42].mxu1 %vm484_vm0, %v12224_v3 }
 0x2c4   : > { %11016 = vmatmul.mubr.msk.f32.gmra.mrb[8].mxu0 %vm1104_vm1, %v3847_v63  ;;  %10621 = vmatprep.mubr.msk.f32.mxu1 %vm484_vm0, %v12225_v46 }
 0x2c5   : > { %11018 = vmatprep.mubr.msk.f32.mxu0 %vm1104_vm1, %v3848_v49 }
 0x2c7   : > { %10622 = vmatmul.mubr.msk.f32.gmra.mrb[44].mxu1 %vm484_vm0, %v12226_v14 }
 0x2c8   : > { %11019 = vmatmul.mubr.msk.f32.gmra.mrb[10].mxu0 %vm1104_vm1, %v3849_v44 }
 0x2c9   : > { %11021 = vmatprep.mubr.msk.f32.mxu0 %vm1104_vm1, %v12690_v33  ;;  %v12227_v33 = vld [vmem:[%s12350_s18 + $0x70] sm:$0xff] }
 0x2ca   : > { %10624 = vmatprep.mubr.msk.f32.mxu1 %vm484_vm0, %v12227_v33 }
 0x2cc   : > { %11022 = vmatmul.mubr.msk.f32.gmra.mrb[12].mxu0 %vm1104_vm1, %v12700_v41  ;;  %v12228_v41 = vld [vmem:[%s12350_s18 + $0x78] sm:$0xff] }
 0x2cd   : > { %11024 = vmatprep.mubr.msk.f32.mxu0 %vm1104_vm1, %v12712_v15  ;;  %10625 = vmatmul.mubr.msk.f32.gmra.mrb[46].mxu1 %vm484_vm0, %v12228_v41  ;;  %v12229_v15 = vld [vmem:[%s12350_s18 + $0x80] sm:$0xff] }
 0x2ce   : > { %10627 = vmatprep.mubr.msk.f32.mxu1 %vm484_vm0, %v12229_v15 }
 0x2d0   : > { %11025 = vmatmul.mubr.msk.f32.gmra.mrb[14].mxu0 %vm1104_vm1, %v12722_v51  ;;  %v12230_v51 = vld [vmem:[%s12350_s18 + $0x88] sm:$0xff] }
 0x2d1   : > { %11027 = vmatprep.mubr.msk.f32.mxu0 %vm1104_vm1, %v12734_v37  ;;  %10628 = vmatmul.mubr.msk.f32.gmra.mrb[48].mxu1 %vm484_vm0, %v12230_v51  ;;  %v12231_v37 = vld [vmem:[%s12350_s18 + $0x90] sm:$0xff] }
 0x2d2   : > { %10630 = vmatprep.mubr.msk.f32.mxu1 %vm484_vm0, %v12231_v37 }
 0x2d4   : > { %11028 = vmatmul.mubr.msk.f32.gmra.mrb[16].mxu0 %vm1104_vm1, %v12744_v29  ;;  %v12232_v29 = vld [vmem:[%s12350_s18 + $0x98] sm:$0xff] }
 0x2d5   : > { %11030 = vmatprep.mubr.msk.f32.mxu0 %vm1104_vm1, %v12756_v21  ;;  %10631 = vmatmul.mubr.msk.f32.gmra.mrb[50].mxu1 %vm484_vm0, %v12232_v29  ;;  %v12233_v21 = vld [vmem:[%s12350_s18 + $0xa0] sm:$0xff] }
 0x2d6   : > { %10633 = vmatprep.mubr.msk.f32.mxu1 %vm484_vm0, %v12233_v21 }
 0x2d8   : > { %11031 = vmatmul.mubr.msk.f32.gmra.mrb[18].mxu0 %vm1104_vm1, %v12766_v13  ;;  %v12234_v13 = vld [vmem:[%s12350_s18 + $0xa8] sm:$0xff] }
 0x2d9   : > { %11033 = vmatprep.mubr.msk.f32.mxu0 %vm1104_vm1, %v12778_v5  ;;  %10634 = vmatmul.mubr.msk.f32.gmra.mrb[52].mxu1 %vm484_vm0, %v12234_v13  ;;  %v12235_v5 = vld [vmem:[%s12350_s18 + $0xb0] sm:$0xff] }
 0x2da   : > { %10636 = vmatprep.mubr.msk.f32.mxu1 %vm484_vm0, %v12235_v5 }
 0x2dc   : > { %11034 = vmatmul.mubr.msk.f32.gmra.mrb[20].mxu0 %vm1104_vm1, %v12788_v61  ;;  %v12236_v61 = vld [vmem:[%s12350_s18 + $0xb8] sm:$0xff] }
 0x2dd   : > { %11036 = vmatprep.mubr.msk.f32.mxu0 %vm1104_vm1, %v12797_v22  ;;  %10637 = vmatmul.mubr.msk.f32.gmra.mrb[54].mxu1 %vm484_vm0, %v12236_v61  ;;  %v12237_v22 = vld [vmem:[%s12350_s18 + $0xc0] sm:$0xff] }
 0x2de   : > { %10639 = vmatprep.mubr.msk.f32.mxu1 %vm484_vm0, %v12237_v22 }
 0x2e0   : > { %11037 = vmatmul.mubr.msk.f32.gmra.mrb[22].mxu0 %vm1104_vm1, %v12804_v38  ;;  %v12238_v38 = vld [vmem:[%s12350_s18 + $0xc8] sm:$0xff] }
 0x2e1   : > { %11039 = vmatprep.mubr.msk.f32.mxu0 %vm1104_vm1, %v12808_v56  ;;  %10640 = vmatmul.mubr.msk.f32.gmra.mrb[56].mxu1 %vm484_vm0, %v12238_v38  ;;  %v12239_v56 = vld [vmem:[%s12350_s18 + $0xd0] sm:$0xff] }
 0x2e2   : > { %10642 = vmatprep.mubr.msk.f32.mxu1 %vm484_vm0, %v12239_v56 }
 0x2e4   : > { %11040 = vmatmul.mubr.msk.f32.gmra.mrb[24].mxu0 %vm1104_vm1, %v12812_v57  ;;  %v3868_v57 = vld [vmem:[#allocation2 + $0x199] sm:$0xff] }
 0x2e5   : > { %11042 = vmatprep.mubr.msk.f32.mxu0 %vm1104_vm1, %v14972_v55  ;;  %10643 = vmatmul.mubr.msk.f32.gmra.mrb[58].mxu1 %vm484_vm0, %v12240_v18  ;;  %v12241_v55 = vld [vmem:[%s12350_s18 + $0xe0] sm:$0xff] }
 0x2e6   : > { %10645 = vmatprep.mubr.msk.f32.mxu1 %vm484_vm0, %v12241_v55 }
 0x2e8   : > { %11043 = vmatmul.mubr.msk.f32.gmra.mrb[26].mxu0 %vm1104_vm1, %v14973_v2  ;;  %v3869_v2 = vld [vmem:[#allocation2 + $0x1a1] sm:$0xff] }
 0x2e9   : > { %11045 = vmatprep.mubr.msk.f32.mxu0 %vm1104_vm1, %v13231_v4  ;;  %10646 = vmatmul.mubr.msk.f32.gmra.mrb[60].mxu1 %vm484_vm0, %v12242_v58  ;;  %v12244_v4 = vld [vmem:[%s12350_s18 + $0xf8] sm:$0xff]  ;;  %s14635_s18 = scalar_lea.vmem %s14748_s13, %s9817_s15 }
 0x2ea   : > { %10648 = vmatprep.mubr.msk.f32.mxu1 %vm484_vm0, %v12243_v52 }
 0x2ec   : > { %11046 = vmatmul.mubr.msk.f32.gmra.mrb[28].mxu0 %vm1104_vm1, %v13235_v10  ;;  %v15000_v10 = vld [vmem:[#allocation43_spill] sm:$0xff] }
 0x2ed   : > { %11048 = vmatprep.mubr.msk.f32.mxu0 %vm1104_vm1, %v3868_v57  ;;  %10649 = vmatmul.mubr.msk.f32.gmra.mrb[62].mxu1 %vm484_vm0, %v12244_v4 }
 0x2f0   : > { %11049 = vmatmul.mubr.msk.f32.gmra.mrb[30].mxu0 %vm1104_vm1, %v3869_v2 }
 0x2f1   : > { %11053 = vmatprep.mubr.msk.f32.mxu0 %vm1104_vm1, %v14976_v26  ;;  %v15004_v26 = vld [vmem:[#allocation47_spill] sm:$0xff] }
 0x2f4   : > { %11054 = vmatmul.mubr.msk.f32.vlgmr.msra.gmra.mrb[0].mxu0 %vm1104_vm1, %v14977_v28  ;;  %v15006_v28 = vld [vmem:[#allocation49_spill] sm:$0xff] }
 0x2f5   : > { %11056 = vmatprep.mubr.msk.f32.mxu0 %vm1104_vm1, %v14978_v34  ;;  %v15007_v34 = vld [vmem:[#allocation50_spill] sm:$0xff] }
 0x2f8   : > { %11057 = vmatmul.mubr.msk.f32.gmra.mrb[2].mxu0 %vm1104_vm1, %v15000_v10 }
 0x2f9   : > { %11059 = vmatprep.mubr.msk.f32.mxu0 %vm1104_vm1, %v15001_v11 }
 0x2fc   : > { %11060 = vmatmul.mubr.msk.f32.gmra.mrb[4].mxu0 %vm1104_vm1, %v15002_v54 }
 0x2fd   : > { %11062 = vmatprep.mubr.msk.f32.mxu0 %vm1104_vm1, %v15003_v60 }
 0x300   : > { %11063 = vmatmul.mubr.msk.f32.gmra.mrb[6].mxu0 %vm1104_vm1, %v15004_v26 }
 0x301   : > { %11065 = vmatprep.mubr.msk.f32.mxu0 %vm1104_vm1, %v15005_v16 }
 0x304   : > { %11066 = vmatmul.mubr.msk.f32.gmra.mrb[8].mxu0 %vm1104_vm1, %v15006_v28 }
 0x305   : > { %11068 = vmatprep.mubr.msk.f32.mxu0 %vm1104_vm1, %v15007_v34 }
 0x308   : > { %11069 = vmatmul.mubr.msk.f32.gmra.mrb[10].mxu0 %vm1104_vm1, %v15008_v19 }
 0x309   : > { %11071 = vmatprep.mubr.msk.f32.mxu0 %vm1104_vm1, %v15009_v24  ;;  %v13635_v24 = vld [vmem:[%s14739_s4] ss:$0 sm:$0xff] }
 0x30c   : > { %11072 = vmatmul.mubr.msk.f32.gmra.mrb[12].mxu0 %vm1104_vm1, %v15010_v27 }
 0x30d   : > { %11074 = vmatprep.mubr.msk.f32.mxu0 %vm1104_vm1, %v15011_v30 }
 0x310   : > { %11075 = vmatmul.mubr.msk.f32.gmra.mrb[14].mxu0 %vm1104_vm1, %v14991_v9  ;;  %v15015_v9 = vld [vmem:[#allocation64_spill] sm:$0xff] }
 0x311   : > { %11077 = vmatprep.mubr.msk.f32.mxu0 %vm1104_vm1, %v15012_v32 }
 0x314   : > { %11078 = vmatmul.mubr.msk.f32.gmra.mrb[16].mxu0 %vm1104_vm1, %v14993_v12 }
 0x315   : > { %11080 = vmatprep.mubr.msk.f32.mxu0 %vm1104_vm1, %v14994_v20 }
 0x318   : > { %11081 = vmatmul.mubr.msk.f32.gmra.mrb[18].mxu0 %vm1104_vm1, %v14995_v36  ;;  %v4255_v36 = vld [vmem:[#allocation2 + $0x19a] sm:$0xff] }
 0x319   : > { %11083 = vmatprep.mubr.msk.f32.mxu0 %vm1104_vm1, %v15013_v35 }
 0x31c   : > { %11084 = vmatmul.mubr.msk.f32.gmra.mrb[20].mxu0 %vm1104_vm1, %v14997_v47  ;;  %v4748_v47 = vld [vmem:[#allocation2 + $0x1] sm:$0xff] }
 0x31d   : > { %11086 = vmatprep.mubr.msk.f32.mxu0 %vm1104_vm1, %v15014_v40  ;;  %11103 = vmatprep.mubr.msk.f32.mxu1 %vm1104_vm1, %v4748_v47 }
 0x320   : > { %11087 = vmatmul.mubr.msk.f32.gmra.mrb[22].mxu0 %vm1104_vm1, %v13076_v50  ;;  %v4256_v50 = vld [vmem:[#allocation2 + $0x1a2] sm:$0xff] }
 0x321   : > { %11089 = vmatprep.mubr.msk.f32.mxu0 %vm1104_vm1, %v14999_v23 }
 0x324   : > { %11090 = vmatmul.mubr.msk.f32.gmra.mrb[24].mxu0 %vm1104_vm1, %v13084_v48  ;;  %v4749_v48 = vld [vmem:[#allocation2 + $0x9] sm:$0xff] }
 0x325   : > { %11092 = vmatprep.mubr.msk.f32.mxu0 %vm1104_vm1, %v15015_v9  ;;  %11104 = vmatmul.mubr.msk.f32.vlgmr.msra.gmra.mrb[64].mxu1 %vm1104_vm1, %v4749_v48 }
 0x328   : > { %11093 = vmatmul.mubr.msk.f32.gmra.mrb[26].mxu0 %vm1104_vm1, %v13092_v62  ;;  %v4747_v62 = vld [vmem:[%s14742_s7] sm:$0xff] }
 0x329   : > { %11095 = vmatprep.mubr.msk.f32.mxu0 %vm1104_vm1, %v13302_v42  ;;  %11151 = vmatprep.subr.mxu1 %v4747_v62  ;;  %v13566_v42 = vld [vmem:[%s14742_s7 + $0x10] sm:$0xff] }
 0x32a   : > { %11152 = vmatpush3.msra.mxu1 %v4747_v62 }
 0x32b   : > { %11201 = vmatprep.subr.mxu1 %v13566_v42 }
 0x32c   : > { %11096 = vmatmul.mubr.msk.f32.gmra.mrb[28].mxu0 %vm1104_vm1, %v13306_v1  ;;  %v13572_v1 = vld [vmem:[%s14741_s6] ss:$0 sm:$0xff] }
 0x32d   : > { %11098 = vmatprep.mubr.msk.f32.mxu0 %vm1104_vm1, %v4255_v36 }
 0x330   : > { %11099 = vmatmul.mubr.msk.f32.gmra.mrb[30].mxu0 %vm1104_vm1, %v4256_v50 }
 0x382   : > { %v10605_v19 = vpop.f32.mrb[32].mxu1 }
 0x383   : > { %v919_v32 = vadd.f32 %v10605_v19, %v13635_v24  ;;  %v913_v35 = vpop.f32.mrb[33].mxu1 }
 0x384   : > { %v914_v50 = vadd.f32 %v13635_v24, %v913_v35 }
 0x3c7   : > { %v11055_v23 = vpop.f32.mrb[0].mxu0 }
 0x3c8   : > { %v4620_v12 = vadd.f32 %v11055_v23, %v13572_v1  ;;  %v4421_v20 = vpop.f32.mrb[1].mxu0  ;;  %v1073_v23 = vmax.f32 %v919_v32, 0.0 }
 0x3c9   : > { %v4619_v45 = vadd.f32 %v13572_v1, %v4421_v20  ;;  %v10608_v20 = vpop.f32.mrb[34].mxu1 }
 0x3ca   : > { %v4652_v53 = vmax.f32 %v4620_v12, 0.0  ;;  %v1072_v12 = vmax.f32 %v914_v50, 0.0 }
 0x3cb   : > { %v4651_v59 = vmax.f32 %v4619_v45, 0.0  ;;  %v11058_v7 = vpop.f32.mrb[2].mxu0 }
 0x3cc   : > { %4684 = vst.msk [vmem:[#allocation2 + $0x21] sm:$0xff] %vm1104_vm1, %v4652_v53  ;;  %v4622_v25 = vadd.f32 %v11058_v7, %v13572_v1  ;;  %v4431_v39 = vpop.f32.mrb[3].mxu0  ;;  %v923_v7 = vpop.f32.mrb[35].mxu1  ;;  %11553 = vmatprep.mubr.msk.f32.mxu0 %vm1104_vm1, %v1072_v12 }
 0x3cd   : > { %4683 = vst.msk [vmem:[#allocation2 + $0x19] sm:$0xff] %vm1104_vm1, %v4651_v59  ;;  %v4621_v31 = vadd.f32 %v13572_v1, %v4431_v39  ;;  %v929_v59 = vadd.f32 %v10608_v20, %v13635_v24 }
 0x3ce   : > { %v4654_v17 = vmax.f32 %v4622_v25, 0.0  ;;  %v8279_v25 = vld [vmem:[%s14745_s10] sm:$0xff] }
 0x3cf   : > { %v4653_v63 = vmax.f32 %v4621_v31, 0.0  ;;  %v11061_v6 = vpop.f32.mrb[4].mxu0  ;;  %11551 = vmatprep.subr.mxu0 %v8279_v25 }
 0x3d0   : > { %4686 = vst.msk [vmem:[#allocation2 + $0x39] sm:$0xff] %vm1104_vm1, %v4654_v17  ;;  %v4624_v49 = vadd.f32 %v11061_v6, %v13572_v1  ;;  %v4441_v43 = vpop.f32.mrb[5].mxu0  ;;  %11552 = vmatpush3.msra.mxu0 %v8279_v25 }
 0x3d1   : > { %4685 = vst.msk [vmem:[#allocation2 + $0x31] sm:$0xff] %vm1104_vm1, %v4653_v63  ;;  %v4623_v44 = vadd.f32 %v13572_v1, %v4441_v43  ;;  %v924_v63 = vadd.f32 %v13635_v24, %v923_v7  ;;  %11554 = vmatmul.mubr.msk.f32.vlgmr.msra.gmra.mrb[32].mxu0 %vm1104_vm1, %v1073_v23 }
 0x3d2   : > { %v4656_v0 = vmax.f32 %v4624_v49, 0.0 }
 0x3d3   : > { %v4655_v8 = vmax.f32 %v4623_v44, 0.0  ;;  %v11064_v3 = vpop.f32.mrb[6].mxu0  ;;  %v13592_v15 = vld [vmem:[#allocation2 + $0x21] sm:$0xff]  ;;  %v1075_v44 = vmax.f32 %v929_v59, 0.0 }
 0x3d4   : > { %4688 = vst.msk [vmem:[#allocation2 + $0x51] sm:$0xff] %vm1104_vm1, %v4656_v0  ;;  %v4626_v46 = vadd.f32 %v11064_v3, %v13572_v1  ;;  %v4451_v14 = vpop.f32.mrb[7].mxu0  ;;  %v13586_v33 = vld [vmem:[#allocation2 + $0x19] sm:$0xff]  ;;  %v1074_v0 = vmax.f32 %v924_v63, 0.0 }
 0x3d5   : > { %4687 = vst.msk [vmem:[#allocation2 + $0x49] sm:$0xff] %vm1104_vm1, %v4655_v8  ;;  %v4625_v41 = vadd.f32 %v13572_v1, %v4451_v14  ;;  %11106 = vmatprep.mubr.msk.f32.mxu1 %vm1104_vm1, %v13586_v33  ;;  %v10611_v8 = vpop.f32.mrb[36].mxu1 }
 0x3d6   : > { %v4658_v51 = vmax.f32 %v4626_v46, 0.0  ;;  %11107 = vmatmul.mubr.msk.f32.gmra.mrb[66].mxu1 %vm1104_vm1, %v13592_v15  ;;  %v939_v14 = vadd.f32 %v10611_v8, %v13635_v24  ;;  %11556 = vmatprep.mubr.msk.f32.mxu0 %vm1104_vm1, %v1074_v0 }
 0x3d7   : > { %v4657_v37 = vmax.f32 %v4625_v41, 0.0  ;;  %v11067_v29 = vpop.f32.mrb[8].mxu0  ;;  %v13604_v22 = vld [vmem:[#allocation2 + $0x39] sm:$0xff]  ;;  %v933_v41 = vpop.f32.mrb[37].mxu1  ;;  %11557 = vmatmul.mubr.msk.f32.gmra.mrb[34].mxu0 %vm1104_vm1, %v1075_v44 }
 0x3d8   : > { %4690 = vst.msk [vmem:[#allocation2 + $0x69] sm:$0xff] %vm1104_vm1, %v4658_v51  ;;  %v4628_v21 = vadd.f32 %v11067_v29, %v13572_v1  ;;  %v4461_v13 = vpop.f32.mrb[9].mxu0  ;;  %v13598_v5 = vld [vmem:[#allocation2 + $0x31] sm:$0xff] }
 0x3d9   : > { %4689 = vst.msk [vmem:[#allocation2 + $0x61] sm:$0xff] %vm1104_vm1, %v4657_v37  ;;  %v4627_v61 = vadd.f32 %v13572_v1, %v4461_v13  ;;  %11109 = vmatprep.mubr.msk.f32.mxu1 %vm1104_vm1, %v13598_v5 }
 0x3da   : > { %v4660_v38 = vmax.f32 %v4628_v21, 0.0  ;;  %11110 = vmatmul.mubr.msk.f32.gmra.mrb[68].mxu1 %vm1104_vm1, %v13604_v22  ;;  %v934_v21 = vadd.f32 %v13635_v24, %v933_v41 }
 0x3db   : > { %v4659_v56 = vmax.f32 %v4627_v61, 0.0  ;;  %v11070_v57 = vpop.f32.mrb[10].mxu0  ;;  %v13616_v52 = vld [vmem:[#allocation2 + $0x51] sm:$0xff] }
 0x3dc   : > { %4692 = vst.msk [vmem:[#allocation2 + $0x81] sm:$0xff] %vm1104_vm1, %v4660_v38  ;;  %v4630_v18 = vadd.f32 %v11070_v57, %v13572_v1  ;;  %v4471_v55 = vpop.f32.mrb[11].mxu0  ;;  %v13610_v2 = vld [vmem:[#allocation2 + $0x49] sm:$0xff]  ;;  %v1076_v57 = vmax.f32 %v934_v21, 0.0 }
 0x3dd   : > { %4691 = vst.msk [vmem:[#allocation2 + $0x79] sm:$0xff] %vm1104_vm1, %v4659_v56  ;;  %v4629_v58 = vadd.f32 %v13572_v1, %v4471_v55  ;;  %11112 = vmatprep.mubr.msk.f32.mxu1 %vm1104_vm1, %v13610_v2  ;;  %v1077_v56 = vmax.f32 %v939_v14, 0.0 }
 0x3de   : > { %v4662_v4 = vmax.f32 %v4630_v18, 0.0  ;;  %11113 = vmatmul.mubr.msk.f32.gmra.mrb[70].mxu1 %vm1104_vm1, %v13616_v52  ;;  %v10614_v18 = vpop.f32.mrb[38].mxu1  ;;  %11559 = vmatprep.mubr.msk.f32.mxu0 %vm1104_vm1, %v1076_v57 }
 0x3df   : > { %v4661_v10 = vmax.f32 %v4629_v58, 0.0  ;;  %v11073_v11 = vpop.f32.mrb[12].mxu0  ;;  %v13628_v28 = vld [vmem:[#allocation2 + $0x69] sm:$0xff]  ;;  %11560 = vmatmul.mubr.msk.f32.gmra.mrb[36].mxu0 %vm1104_vm1, %v1077_v56 }
 0x3e0   : > { %4694 = vst.msk [vmem:[#allocation2 + $0x99] sm:$0xff] %vm1104_vm1, %v4662_v4  ;;  %v4632_v54 = vadd.f32 %v11073_v11, %v13572_v1  ;;  %v4481_v60 = vpop.f32.mrb[13].mxu0  ;;  %v13622_v26 = vld [vmem:[#allocation2 + $0x61] sm:$0xff]  ;;  %v949_v4 = vadd.f32 %v10614_v18, %v13635_v24 }
 0x3e1   : > { %4693 = vst.msk [vmem:[#allocation2 + $0x91] sm:$0xff] %vm1104_vm1, %v4661_v10  ;;  %v4631_v16 = vadd.f32 %v13572_v1, %v4481_v60  ;;  %11115 = vmatprep.mubr.msk.f32.mxu1 %vm1104_vm1, %v13622_v26  ;;  %v943_v10 = vpop.f32.mrb[39].mxu1 }
 0x3e2   : > { %v4664_v34 = vmax.f32 %v4632_v54, 0.0  ;;  %11116 = vmatmul.mubr.msk.f32.gmra.mrb[72].mxu1 %vm1104_vm1, %v13628_v28  ;;  %v10617_v35 = vpop.f32.mrb[40].mxu1 }
 0x3e3   : > { %v4663_v27 = vmax.f32 %v4631_v16, 0.0  ;;  %v11076_v30 = vpop.f32.mrb[14].mxu0  ;;  %v13647_v48 = vld [vmem:[#allocation2 + $0x81] sm:$0xff]  ;;  %v944_v16 = vadd.f32 %v13635_v24, %v943_v10  ;;  %v959_v50 = vadd.f32 %v10617_v35, %v13635_v24 }
 0x3e4   : > { %4696 = vst.msk [vmem:[#allocation2 + $0xb1] sm:$0xff] %vm1104_vm1, %v4664_v34  ;;  %v4634_v40 = vadd.f32 %v11076_v30, %v13572_v1  ;;  %v4491_v9 = vpop.f32.mrb[15].mxu0  ;;  %v13640_v36 = vld [vmem:[#allocation2 + $0x79] sm:$0xff]  ;;  %v1079_v30 = vmax.f32 %v949_v4, 0.0 }
 0x3e5   : > { %4695 = vst.msk [vmem:[#allocation2 + $0xa9] sm:$0xff] %vm1104_vm1, %v4663_v27  ;;  %v4633_v47 = vadd.f32 %v13572_v1, %v4491_v9  ;;  %11118 = vmatprep.mubr.msk.f32.mxu1 %vm1104_vm1, %v13640_v36  ;;  %v1078_v32 = vmax.f32 %v944_v16, 0.0  ;;  %v1081_v7 = vmax.f32 %v959_v50, 0.0 }
 0x3e6   : > { %v4666_v62 = vmax.f32 %v4634_v40, 0.0  ;;  %11119 = vmatmul.mubr.msk.f32.gmra.mrb[74].mxu1 %vm1104_vm1, %v13647_v48 }
 0x3e7   : > { %v4665_v45 = vmax.f32 %v4633_v47, 0.0  ;;  %v11079_v53 = vpop.f32.mrb[16].mxu0  ;;  %v13665_v49 = vld [vmem:[#allocation2 + $0x99] sm:$0xff]  ;;  %v953_v47 = vpop.f32.mrb[41].mxu1  ;;  %11562 = vmatprep.mubr.msk.f32.mxu0 %vm1104_vm1, %v1078_v32 }
 0x3e8   : > { %4698 = vst.msk [vmem:[#allocation2 + $0xc9] sm:$0xff] %vm1104_vm1, %v4666_v62  ;;  %v4636_v39 = vadd.f32 %v11079_v53, %v13572_v1  ;;  %v4501_v31 = vpop.f32.mrb[17].mxu0  ;;  %v13657_v17 = vld [vmem:[#allocation2 + $0x91] sm:$0xff]  ;;  %v954_v20 = vadd.f32 %v13635_v24, %v953_v47  ;;  %11563 = vmatmul.mubr.msk.f32.gmra.mrb[38].mxu0 %vm1104_vm1, %v1079_v30 }
 0x3e9   : > { %4697 = vst.msk [vmem:[#allocation2 + $0xc1] sm:$0xff] %vm1104_vm1, %v4665_v45  ;;  %v4635_v6 = vadd.f32 %v13572_v1, %v4501_v31  ;;  %11121 = vmatprep.mubr.msk.f32.mxu1 %vm1104_vm1, %v13657_v17 }
 0x3ea   : > { %v4668_v43 = vmax.f32 %v4636_v39, 0.0  ;;  %11122 = vmatmul.mubr.msk.f32.gmra.mrb[76].mxu1 %vm1104_vm1, %v13665_v49  ;;  %v1080_v25 = vmax.f32 %v954_v20, 0.0  ;;  %v10620_v39 = vpop.f32.mrb[42].mxu1 }
 0x3eb   : > { %v4667_v3 = vmax.f32 %v4635_v6, 0.0  ;;  %v11082_v46 = vpop.f32.mrb[18].mxu0  ;;  %v13681_v61 = vld [vmem:[#allocation2 + $0xb1] sm:$0xff]  ;;  %v969_v6 = vadd.f32 %v10620_v39, %v13635_v24 }
 0x3ec   : > { %4700 = vst.msk [vmem:[#allocation2 + $0xe1] sm:$0xff] %vm1104_vm1, %v4668_v43  ;;  %v4638_v51 = vadd.f32 %v11082_v46, %v13572_v1  ;;  %v4511_v37 = vpop.f32.mrb[19].mxu0  ;;  %v13673_v29 = vld [vmem:[#allocation2 + $0xa9] sm:$0xff]  ;;  %v963_v43 = vpop.f32.mrb[43].mxu1  ;;  %11565 = vmatprep.mubr.msk.f32.mxu0 %vm1104_vm1, %v1080_v25 }
 0x3ed   : > { %4699 = vst.msk [vmem:[#allocation2 + $0xd9] sm:$0xff] %vm1104_vm1, %v4667_v3  ;;  %v4637_v13 = vadd.f32 %v13572_v1, %v4511_v37  ;;  %11124 = vmatprep.mubr.msk.f32.mxu1 %vm1104_vm1, %v13673_v29  ;;  %v964_v3 = vadd.f32 %v13635_v24, %v963_v43  ;;  %11566 = vmatmul.mubr.msk.f32.gmra.mrb[40].mxu0 %vm1104_vm1, %v1081_v7  ;;  %v10623_v21 = vpop.f32.mrb[44].mxu1 }
 0x3ee   : > { %v4670_v38 = vmax.f32 %v4638_v51, 0.0  ;;  %11125 = vmatmul.mubr.msk.f32.gmra.mrb[78].mxu1 %vm1104_vm1, %v13681_v61  ;;  %v1083_v51 = vmax.f32 %v969_v6, 0.0  ;;  %v979_v56 = vadd.f32 %v10623_v21, %v13635_v24  ;;  %v973_v57 = vpop.f32.mrb[45].mxu1 }
 0x3ef   : > { %v4669_v55 = vmax.f32 %v4637_v13, 0.0  ;;  %v11085_v58 = vpop.f32.mrb[20].mxu0  ;;  %v13697_v19 = vld [vmem:[#allocation2 + $0xc9] sm:$0xff]  ;;  %v1082_v37 = vmax.f32 %v964_v3, 0.0  ;;  %v974_v4 = vadd.f32 %v13635_v24, %v973_v57 }
 0x3f0   : > { %4702 = vst.msk [vmem:[#allocation2 + $0xf9] sm:$0xff] %vm1104_vm1, %v4670_v38  ;;  %v4640_v11 = vadd.f32 %v11085_v58, %v13572_v1  ;;  %v4521_v54 = vpop.f32.mrb[21].mxu0  ;;  %v13689_v60 = vld [vmem:[#allocation2 + $0xc1] sm:$0xff]  ;;  %v1085_v16 = vmax.f32 %v979_v56, 0.0 }
 0x3f1   : > { %4701 = vst.msk [vmem:[#allocation2 + $0xf1] sm:$0xff] %vm1104_vm1, %v4669_v55  ;;  %v4639_v34 = vadd.f32 %v13572_v1, %v4521_v54  ;;  %11127 = vmatprep.mubr.msk.f32.mxu1 %vm1104_vm1, %v13689_v60  ;;  %11568 = vmatprep.mubr.msk.f32.mxu0 %vm1104_vm1, %v1082_v37 }
 0x3f2   : > { %v4672_v27 = vmax.f32 %v4640_v11, 0.0  ;;  %11128 = vmatmul.mubr.msk.f32.gmra.mrb[80].mxu1 %vm1104_vm1, %v13697_v19  ;;  %11569 = vmatmul.mubr.msk.f32.gmra.mrb[42].mxu0 %vm1104_vm1, %v1083_v51 }
 0x3f3   : > { %v4671_v40 = vmax.f32 %v4639_v34, 0.0  ;;  %v11088_v9 = vpop.f32.mrb[22].mxu0  ;;  %v13713_v53 = vld [vmem:[#allocation2 + $0xe1] sm:$0xff]  ;;  %v1084_v34 = vmax.f32 %v974_v4, 0.0 }
 0x3f4   : > { %4704 = vst.msk [vmem:[#allocation2 + $0x111] sm:$0xff] %vm1104_vm1, %v4672_v27  ;;  %v4642_v62 = vadd.f32 %v11088_v9, %v13572_v1  ;;  %v4531_v23 = vpop.f32.mrb[23].mxu0  ;;  %v13705_v12 = vld [vmem:[#allocation2 + $0xd9] sm:$0xff]  ;;  %v10626_v27 = vpop.f32.mrb[46].mxu1 }
 0x3f5   : > { %4703 = vst.msk [vmem:[#allocation2 + $0x109] sm:$0xff] %vm1104_vm1, %v4671_v40  ;;  %v4641_v45 = vadd.f32 %v13572_v1, %v4531_v23  ;;  %11130 = vmatprep.mubr.msk.f32.mxu1 %vm1104_vm1, %v13705_v12  ;;  %v989_v35 = vadd.f32 %v10626_v27, %v13635_v24  ;;  %v983_v40 = vpop.f32.mrb[47].mxu1  ;;  %11571 = vmatprep.mubr.msk.f32.mxu0 %vm1104_vm1, %v1084_v34 }
 0x3f6   : > { %v4674_v59 = vmax.f32 %v4642_v62, 0.0  ;;  %11131 = vmatmul.mubr.msk.f32.gmra.mrb[82].mxu1 %vm1104_vm1, %v13713_v53  ;;  %v984_v62 = vadd.f32 %v13635_v24, %v983_v40  ;;  %11572 = vmatmul.mubr.msk.f32.gmra.mrb[44].mxu0 %vm1104_vm1, %v1085_v16  ;;  %v10629_v25 = vpop.f32.mrb[48].mxu1 }
 0x3f7   : > { %v4673_v31 = vmax.f32 %v4641_v45, 0.0  ;;  %v11091_v63 = vpop.f32.mrb[24].mxu0  ;;  %v13729_v14 = vld [vmem:[#allocation2 + $0xf9] sm:$0xff]  ;;  %v993_v6 = vpop.f32.mrb[49].mxu1 }
 0x3f8   : > { %4706 = vst.msk [vmem:[#allocation2 + $0x129] sm:$0xff] %vm1104_vm1, %v4674_v59  ;;  %v4644_v44 = vadd.f32 %v11091_v63, %v13572_v1  ;;  %v4541_v0 = vpop.f32.mrb[25].mxu0  ;;  %v13721_v8 = vld [vmem:[#allocation2 + $0xf1] sm:$0xff]  ;;  %v1087_v59 = vmax.f32 %v989_v35, 0.0  ;;  %v1086_v7 = vmax.f32 %v984_v62, 0.0  ;;  %v999_v63 = vadd.f32 %v10629_v25, %v13635_v24  ;;  %v4716_v62 = vld [vmem:[#allocation2 + $0x8] sm:$0xff] }
 0x3f9   : > { %4705 = vst.msk [vmem:[#allocation2 + $0x121] sm:$0xff] %vm1104_vm1, %v4673_v31  ;;  %v4643_v46 = vadd.f32 %v13572_v1, %v4541_v0  ;;  %11133 = vmatprep.mubr.msk.f32.mxu1 %vm1104_vm1, %v13721_v8  ;;  %v994_v3 = vadd.f32 %v13635_v24, %v993_v6  ;;  %v13818_v25 = vld [vmem:[#allocation2 + $0x18] sm:$0xff] }
 0x3fa   : > { %v4676_v41 = vmax.f32 %v4644_v44, 0.0  ;;  %11134 = vmatmul.mubr.msk.f32.gmra.mrb[84].mxu1 %vm1104_vm1, %v13729_v14  ;;  %11574 = vmatprep.mubr.msk.f32.mxu0 %vm1104_vm1, %v1086_v7  ;;  %v1089_v37 = vmax.f32 %v999_v63, 0.0  ;;  %v13815_v7 = vld [vmem:[%s14742_s7 + $0x18] sm:$0xff] }
 0x3fb   : > { %v4675_v13 = vmax.f32 %v4643_v46, 0.0  ;;  %v11094_v38 = vpop.f32.mrb[26].mxu0  ;;  %v13745_v11 = vld [vmem:[#allocation2 + $0x111] sm:$0xff]  ;;  %v1088_v21 = vmax.f32 %v994_v3, 0.0  ;;  %11575 = vmatmul.mubr.msk.f32.gmra.mrb[46].mxu0 %vm1104_vm1, %v1087_v59 }
 0x3fc   : > { %4708 = vst.msk [vmem:[#allocation2 + $0x141] sm:$0xff] %vm1104_vm1, %v4676_v41  ;;  %v4646_v18 = vadd.f32 %v11094_v38, %v13572_v1  ;;  %v4551_v55 = vpop.f32.mrb[27].mxu0  ;;  %v13737_v58 = vld [vmem:[#allocation2 + $0x109] sm:$0xff] }
 0x3fd   : > { %4707 = vst.msk [vmem:[#allocation2 + $0x139] sm:$0xff] %vm1104_vm1, %v4675_v13  ;;  %v4645_v10 = vadd.f32 %v13572_v1, %v4551_v55  ;;  %11136 = vmatprep.mubr.msk.f32.mxu1 %vm1104_vm1, %v13737_v58  ;;  %v10632_v13 = vpop.f32.mrb[50].mxu1  ;;  %11577 = vmatprep.mubr.msk.f32.mxu0 %vm1104_vm1, %v1088_v21 }
 0x3fe   : > { %v4678_v54 = vmax.f32 %v4646_v18, 0.0  ;;  %11137 = vmatmul.mubr.msk.f32.gmra.mrb[86].mxu1 %vm1104_vm1, %v13745_v11  ;;  %v1009_v56 = vadd.f32 %v10632_v13, %v13635_v24  ;;  %v1003_v57 = vpop.f32.mrb[51].mxu1 }
 0x3ff   : > { %v4677_v30 = vmax.f32 %v4645_v10, 0.0  ;;  %v11097_v32 = vpop.f32.mrb[28].mxu0  ;;  %v13761_v20 = vld [vmem:[#allocation2 + $0x129] sm:$0xff]  ;;  %v1004_v18 = vadd.f32 %v13635_v24, %v1003_v57  ;;  %11578 = vmatmul.mubr.msk.f32.gmra.mrb[48].mxu0 %vm1104_vm1, %v1089_v37 }
 0x400   : > { %4710 = vst.msk [vmem:[#allocation2 + $0x159] sm:$0xff] %vm1104_vm1, %v4678_v54  ;;  %v4648_v9 = vadd.f32 %v11097_v32, %v13572_v1  ;;  %v4561_v50 = vpop.f32.mrb[29].mxu0  ;;  %v13753_v47 = vld [vmem:[#allocation2 + $0x121] sm:$0xff]  ;;  %v1091_v4 = vmax.f32 %v1009_v56, 0.0  ;;  %v10635_v54 = vpop.f32.mrb[52].mxu1  ;;  %v13839_v56 = vld [vmem:[#allocation2 + $0x38] sm:$0xff] }
 0x401   : > { %4709 = vst.msk [vmem:[#allocation2 + $0x151] sm:$0xff] %vm1104_vm1, %v4677_v30  ;;  %v4647_v23 = vadd.f32 %v13572_v1, %v4561_v50  ;;  %11139 = vmatprep.mubr.msk.f32.mxu1 %vm1104_vm1, %v13753_v47  ;;  %v1090_v10 = vmax.f32 %v1004_v18, 0.0  ;;  %v1019_v16 = vadd.f32 %v10635_v54, %v13635_v24  ;;  %v1013_v34 = vpop.f32.mrb[53].mxu1  ;;  %v4715_v30 = vld [vmem:[#allocation2] sm:$0xff]  ;;  %v13844_v57 = vld [vmem:[#allocation2 + $0x48] sm:$0xff] }
 0x402   : > { %v4680_v45 = vmax.f32 %v4648_v9, 0.0  ;;  %11140 = vmatmul.mubr.msk.f32.gmra.mrb[88].mxu1 %vm1104_vm1, %v13761_v20  ;;  %v1014_v32 = vadd.f32 %v13635_v24, %v1013_v34  ;;  %v10638_v50 = vpop.f32.mrb[54].mxu1 }
 0x403   : > { %v4679_v39 = vmax.f32 %v4647_v23, 0.0  ;;  %v11100_v31 = vpop.f32.mrb[30].mxu0  ;;  %v13777_v41 = vld [vmem:[#allocation2 + $0x141] sm:$0xff]  ;;  %11580 = vmatprep.mubr.msk.f32.mxu0 %vm1104_vm1, %v1090_v10  ;;  %v1093_v40 = vmax.f32 %v1019_v16, 0.0  ;;  %v1029_v23 = vadd.f32 %v10638_v50, %v13635_v24 }
 0x404   : > { %4712 = vst.msk [vmem:[#allocation2 + $0x171] sm:$0xff] %vm1104_vm1, %v4680_v45  ;;  %v4650_v43 = vadd.f32 %v11100_v31, %v13572_v1  ;;  %v4571_v44 = vpop.f32.mrb[31].mxu0  ;;  %v13769_v0 = vld [vmem:[#allocation2 + $0x139] sm:$0xff]  ;;  %v1092_v9 = vmax.f32 %v1014_v32, 0.0  ;;  %11581 = vmatmul.mubr.msk.f32.gmra.mrb[50].mxu0 %vm1104_vm1, %v1091_v4  ;;  %v1023_v45 = vpop.f32.mrb[55].mxu1 }
 0x405   : > { %4711 = vst.msk [vmem:[#allocation2 + $0x169] sm:$0xff] %vm1104_vm1, %v4679_v39  ;;  %v4649_v46 = vadd.f32 %v13572_v1, %v4571_v44  ;;  %11142 = vmatprep.mubr.msk.f32.mxu1 %vm1104_vm1, %v13769_v0  ;;  %v1024_v59 = vadd.f32 %v13635_v24, %v1023_v45  ;;  %v1095_v39 = vmax.f32 %v1029_v23, 0.0  ;;  %v10641_v63 = vpop.f32.mrb[56].mxu1  ;;  %v13827_v44 = vld [vmem:[#allocation2 + $0x20] sm:$0xff] }
 0x406   : > { %v4682_v51 = vmax.f32 %v4650_v43, 0.0  ;;  %11143 = vmatmul.mubr.msk.f32.gmra.mrb[90].mxu1 %vm1104_vm1, %v13777_v41  ;;  %11583 = vmatprep.mubr.msk.f32.mxu0 %vm1104_vm1, %v1092_v9  ;;  %v1039_v6 = vadd.f32 %v10641_v63, %v13635_v24  ;;  %v1033_v43 = vpop.f32.mrb[57].mxu1  ;;  %v13856_v32 = vld [vmem:[#allocation2 + $0x60] sm:$0xff] }
 0x407   : > { %v4681_v38 = vmax.f32 %v4649_v46, 0.0  ;;  %v13791_v55 = vld [vmem:[#allocation2 + $0x159] sm:$0xff]  ;;  %v1094_v31 = vmax.f32 %v1024_v59, 0.0  ;;  %v1034_v3 = vadd.f32 %v13635_v24, %v1033_v43  ;;  %v13832_v46 = vld [vmem:[#allocation2 + $0x30] sm:$0xff]  ;;  %v13864_v59 = vld [vmem:[#allocation2 + $0x68] sm:$0xff] }
 0x408   : > { %4714 = vst.msk [vmem:[#allocation2 + $0x189] sm:$0xff] %vm1104_vm1, %v4682_v51  ;;  %v13784_v1 = vld [vmem:[#allocation2 + $0x151] sm:$0xff]  ;;  %11584 = vmatmul.mubr.msk.f32.gmra.mrb[52].mxu0 %vm1104_vm1, %v1093_v40  ;;  %v10644_v51 = vpop.f32.mrb[58].mxu1 }
 0x409   : > { %4713 = vst.msk [vmem:[#allocation2 + $0x181] sm:$0xff] %vm1104_vm1, %v4681_v38  ;;  %11145 = vmatprep.mubr.msk.f32.mxu1 %vm1104_vm1, %v13784_v1  ;;  %11586 = vmatprep.mubr.msk.f32.mxu0 %vm1104_vm1, %v1094_v31  ;;  %v1096_v37 = vmax.f32 %v1034_v3, 0.0  ;;  %v1049_v21 = vadd.f32 %v10644_v51, %v13635_v24  ;;  %v1043_v13 = vpop.f32.mrb[59].mxu1  ;;  %v13883_v43 = vld [vmem:[#allocation2 + $0x98] sm:$0xff]  ;;  %v13887_v3 = vld [vmem:[#allocation2 + $0xa8] sm:$0xff]  ;;  %v13895_v51 = vld [vmem:[#allocation2 + $0xc0] sm:$0xff] }
 0x40a   : > { %11146 = vmatmul.mubr.msk.f32.gmra.mrb[92].mxu1 %vm1104_vm1, %v13791_v55  ;;  %v1044_v38 = vadd.f32 %v13635_v24, %v1043_v13  ;;  %v10647_v10 = vpop.f32.mrb[60].mxu1  ;;  %v13907_v13 = vld [vmem:[#allocation2 + $0xe0] sm:$0xff] }
 0x40b   : > { %v13803_v35 = vld [vmem:[#allocation2 + $0x171] sm:$0xff]  ;;  %v1099_v18 = vmax.f32 %v1049_v21, 0.0  ;;  %v1059_v54 = vadd.f32 %v10647_v10, %v13635_v24  ;;  %v1053_v16 = vpop.f32.mrb[61].mxu1 }
 0x40c   : > { %v13797_v27 = vld [vmem:[#allocation2 + $0x169] sm:$0xff]  ;;  %15017 = vst [vmem:[#allocation35_spill] sm:$0xff] %v13803_v35  ;;  %11587 = vmatmul.mubr.msk.f32.gmra.mrb[54].mxu0 %vm1104_vm1, %v1095_v39  ;;  %v1098_v4 = vmax.f32 %v1044_v38, 0.0  ;;  %v1054_v34 = vadd.f32 %v13635_v24, %v1053_v16  ;;  %v10650_v50 = vpop.f32.mrb[62].mxu1  ;;  %v13868_v39 = vld [vmem:[#allocation2 + $0x78] sm:$0xff] }
 0x40d   : > { %15016 = vst [vmem:[#allocation34_spill] sm:$0xff] %v13797_v27  ;;  %11148 = vmatprep.mubr.msk.f32.mxu1 %vm1104_vm1, %v13797_v27  ;;  %11589 = vmatprep.mubr.msk.f32.mxu0 %vm1104_vm1, %v1096_v37  ;;  %v1101_v40 = vmax.f32 %v1059_v54, 0.0  ;;  %v1063_v23 = vpop.f32.mrb[63].mxu1  ;;  %v13899_v37 = vld [vmem:[#allocation2 + $0xc8] sm:$0xff]  ;;  %v13903_v21 = vld [vmem:[#allocation2 + $0xd8] sm:$0xff]  ;;  %v13911_v38 = vld [vmem:[#allocation2 + $0xf0] sm:$0xff] }
 0x40e   : > { %11149 = vmatmul.mubr.msk.f32.gmra.mrb[94].mxu1 %vm1104_vm1, %v13803_v35  ;;  %v1100_v9 = vmax.f32 %v1054_v34, 0.0  ;;  %v1064_v45 = vadd.f32 %v13635_v24, %v1063_v23  ;;  %v13923_v10 = vld [vmem:[#allocation2 + $0x110] sm:$0xff]  ;;  %v13927_v54 = vld [vmem:[#allocation2 + $0x120] sm:$0xff]  ;;  %v13931_v16 = vld [vmem:[#allocation2 + $0x128] sm:$0xff] }
 0x40f   : > { %11153 = vmatprep.mubr.msk.f32.mxu1 %vm1104_vm1, %v4715_v30  ;;  %v13852_v30 = vld [vmem:[#allocation2 + $0x50] sm:$0xff]  ;;  %v13935_v34 = vld [vmem:[#allocation2 + $0x138] sm:$0xff]  ;;  %v5424_v23 = vld [vmem:[#allocation2 + $0x2] sm:$0xff] }
 0x410   : > { %v1102_v63 = vmax.f32 %v1064_v45, 0.0  ;;  %v13955_v45 = vld [vmem:[#allocation2 + $0x170] sm:$0xff]  ;;  %v13966_v35 = vld [vmem:[#allocation2 + $0x1a] sm:$0xff]  ;;  %v13972_v27 = vld [vmem:[#allocation2 + $0x22] sm:$0xff] }
 0x411   : > { %15018 = vst [vmem:[#allocation38_spill] sm:$0xff] %v13966_v35  ;;  %15019 = vst [vmem:[#allocation39_spill] sm:$0xff] %v13972_v27 }
 0x412   : > { %11154 = vmatmul.mubr.msk.f32.vlgmr.msra.gmra.mrb[64].mxu1 %vm1104_vm1, %v4716_v62  ;;  %v1069_v62 = vadd.f32 %v10650_v50, %v13635_v24  ;;  %v13878_v24 = vld [vmem:[#allocation2 + $0x90] sm:$0xff]  ;;  %v13947_v50 = vld [vmem:[#allocation2 + $0x158] sm:$0xff] }
 0x413   : > { %11202 = vmatpush3.msra.mxu1 %v13566_v42  ;;  %11156 = vmatprep.mubr.msk.f32.mxu1 %vm1104_vm1, %v13818_v25  ;;  %v1097_v42 = vmax.f32 %v1039_v6, 0.0  ;;  %v13874_v6 = vld [vmem:[#allocation2 + $0x80] sm:$0xff] }
 0x414   : > { %11251 = vmatprep.subr.mxu1 %v13815_v7  ;;  %v1103_v31 = vmax.f32 %v1069_v62, 0.0  ;;  %v13951_v62 = vld [vmem:[#allocation2 + $0x168] sm:$0xff] }
 0x415   : > { %11590 = vmatmul.mubr.msk.f32.gmra.mrb[56].mxu0 %vm1104_vm1, %v1097_v42  ;;  %v13891_v42 = vld [vmem:[#allocation2 + $0xb0] sm:$0xff] }
 0x416   : > { %11157 = vmatmul.mubr.msk.f32.gmra.mrb[66].mxu1 %vm1104_vm1, %v13827_v44  ;;  %11592 = vmatprep.mubr.msk.f32.mxu0 %vm1104_vm1, %v1098_v4  ;;  %v13919_v4 = vld [vmem:[#allocation2 + $0x108] sm:$0xff] }
 0x417   : > { %11159 = vmatprep.mubr.msk.f32.mxu1 %vm1104_vm1, %v13832_v46 }
 0x419   : > { %11593 = vmatmul.mubr.msk.f32.gmra.mrb[58].mxu0 %vm1104_vm1, %v1099_v18  ;;  %v13915_v18 = vld [vmem:[#allocation2 + $0xf8] sm:$0xff] }
 0x41a   : > { %11160 = vmatmul.mubr.msk.f32.gmra.mrb[68].mxu1 %vm1104_vm1, %v13839_v56  ;;  %11595 = vmatprep.mubr.msk.f32.mxu0 %vm1104_vm1, %v1100_v9  ;;  %v13943_v9 = vld [vmem:[#allocation2 + $0x150] sm:$0xff] }
 0x41b   : > { %11162 = vmatprep.mubr.msk.f32.mxu1 %vm1104_vm1, %v13844_v57 }
 0x41d   : > { %11596 = vmatmul.mubr.msk.f32.gmra.mrb[60].mxu0 %vm1104_vm1, %v1101_v40  ;;  %v13939_v40 = vld [vmem:[#allocation2 + $0x140] sm:$0xff] }
 0x41e   : > { %11163 = vmatmul.mubr.msk.f32.gmra.mrb[70].mxu1 %vm1104_vm1, %v13852_v30  ;;  %11598 = vmatprep.mubr.msk.f32.mxu0 %vm1104_vm1, %v1102_v63  ;;  %v13963_v63 = vld [vmem:[%s14742_s7 + $0x20] sm:$0xff] }
 0x41f   : > { %11165 = vmatprep.mubr.msk.f32.mxu1 %vm1104_vm1, %v13856_v32 }
 0x421   : > { %11599 = vmatmul.mubr.msk.f32.gmra.mrb[62].mxu0 %vm1104_vm1, %v1103_v31  ;;  %v5425_v31 = vld [vmem:[#allocation2 + $0xa] sm:$0xff] }
 0x422   : > { %11166 = vmatmul.mubr.msk.f32.gmra.mrb[72].mxu1 %vm1104_vm1, %v13864_v59 }
 0x423   : > { %11168 = vmatprep.mubr.msk.f32.mxu1 %vm1104_vm1, %v13868_v39 }
 0x426   : > { %11169 = vmatmul.mubr.msk.f32.gmra.mrb[74].mxu1 %vm1104_vm1, %v13874_v6 }
 0x427   : > { %11171 = vmatprep.mubr.msk.f32.mxu1 %vm1104_vm1, %v13878_v24 }
 0x42a   : > { %11172 = vmatmul.mubr.msk.f32.gmra.mrb[76].mxu1 %vm1104_vm1, %v13883_v43 }
 0x42b   : > { %11174 = vmatprep.mubr.msk.f32.mxu1 %vm1104_vm1, %v13887_v3 }
 0x42e   : > { %11175 = vmatmul.mubr.msk.f32.gmra.mrb[78].mxu1 %vm1104_vm1, %v13891_v42 }
 0x42f   : > { %11177 = vmatprep.mubr.msk.f32.mxu1 %vm1104_vm1, %v13895_v51 }
 0x432   : > { %11178 = vmatmul.mubr.msk.f32.gmra.mrb[80].mxu1 %vm1104_vm1, %v13899_v37 }
 0x433   : > { %11180 = vmatprep.mubr.msk.f32.mxu1 %vm1104_vm1, %v13903_v21 }
 0x436   : > { %11181 = vmatmul.mubr.msk.f32.gmra.mrb[82].mxu1 %vm1104_vm1, %v13907_v13 }
 0x437   : > { %11183 = vmatprep.mubr.msk.f32.mxu1 %vm1104_vm1, %v13911_v38 }
 0x43a   : > { %11184 = vmatmul.mubr.msk.f32.gmra.mrb[84].mxu1 %vm1104_vm1, %v13915_v18 }
 0x43b   : > { %11186 = vmatprep.mubr.msk.f32.mxu1 %vm1104_vm1, %v13919_v4 }
 0x43e   : > { %11187 = vmatmul.mubr.msk.f32.gmra.mrb[86].mxu1 %vm1104_vm1, %v13923_v10 }
 0x43f   : > { %11189 = vmatprep.mubr.msk.f32.mxu1 %vm1104_vm1, %v13927_v54 }
 0x442   : > { %11190 = vmatmul.mubr.msk.f32.gmra.mrb[88].mxu1 %vm1104_vm1, %v13931_v16 }
 0x443   : > { %11192 = vmatprep.mubr.msk.f32.mxu1 %vm1104_vm1, %v13935_v34 }
 0x446   : > { %11193 = vmatmul.mubr.msk.f32.gmra.mrb[90].mxu1 %vm1104_vm1, %v13939_v40 }
 0x447   : > { %11195 = vmatprep.mubr.msk.f32.mxu1 %vm1104_vm1, %v13943_v9 }
 0x44a   : > { %11196 = vmatmul.mubr.msk.f32.gmra.mrb[92].mxu1 %vm1104_vm1, %v13947_v50 }
 0x44b   : > { %11198 = vmatprep.mubr.msk.f32.mxu1 %vm1104_vm1, %v13951_v62 }
 0x44e   : > { %11199 = vmatmul.mubr.msk.f32.gmra.mrb[94].mxu1 %vm1104_vm1, %v13955_v45 }
 0x44f   : > { %11203 = vmatprep.mubr.msk.f32.mxu1 %vm1104_vm1, %v5424_v23  ;;  %v13976_v23 = vld [vmem:[#allocation2 + $0x32] sm:$0xff] }
 0x450   : > { %15020 = vst [vmem:[#allocation40_spill] sm:$0xff] %v13976_v23 }
 0x452   : > { %11204 = vmatmul.mubr.msk.f32.vlgmr.msra.gmra.mrb[64].mxu1 %vm1104_vm1, %v5425_v31  ;;  %v13980_v31 = vld [vmem:[#allocation2 + $0x3a] sm:$0xff] }
 0x453   : > { %11252 = vmatpush3.msra.mxu1 %v13815_v7  ;;  %11206 = vmatprep.mubr.msk.f32.mxu1 %vm1104_vm1, %v13966_v35  ;;  %15021 = vst [vmem:[#allocation41_spill] sm:$0xff] %v13980_v31  ;;  %v13984_v7 = vld [vmem:[#allocation2 + $0x4a] sm:$0xff]  ;;  %v13988_v35 = vld [vmem:[#allocation2 + $0x52] sm:$0xff] }
 0x454   : > { %11301 = vmatprep.subr.mxu1 %v13963_v63  ;;  %15022 = vst [vmem:[#allocation42_spill] sm:$0xff] %v13984_v7  ;;  %15023 = vst [vmem:[#allocation55_spill] sm:$0xff] %v13988_v35 }
 0x456   : > { %11207 = vmatmul.mubr.msk.f32.gmra.mrb[66].mxu1 %vm1104_vm1, %v13972_v27  ;;  %v13992_v27 = vld [vmem:[#allocation2 + $0x62] sm:$0xff] }
 0x457   : > { %11209 = vmatprep.mubr.msk.f32.mxu1 %vm1104_vm1, %v13976_v23  ;;  %15024 = vst [vmem:[#allocation57_spill] sm:$0xff] %v13992_v27  ;;  %v13996_v23 = vld [vmem:[#allocation2 + $0x6a] sm:$0xff] }
 0x458   : > { %15025 = vst [vmem:[#allocation58_spill] sm:$0xff] %v13996_v23 }
 0x45a   : > { %11210 = vmatmul.mubr.msk.f32.gmra.mrb[68].mxu1 %vm1104_vm1, %v13980_v31  ;;  %v14000_v31 = vld [vmem:[#allocation2 + $0x7a] sm:$0xff] }
 0x45b   : > { %11212 = vmatprep.mubr.msk.f32.mxu1 %vm1104_vm1, %v13984_v7  ;;  %15026 = vst [vmem:[#allocation59_spill] sm:$0xff] %v14000_v31  ;;  %v14004_v7 = vld [vmem:[#allocation2 + $0x82] sm:$0xff] }
 0x45c   : > { %15027 = vst [vmem:[#allocation61_spill] sm:$0xff] %v14004_v7 }
 0x45e   : > { %11213 = vmatmul.mubr.msk.f32.gmra.mrb[70].mxu1 %vm1104_vm1, %v13988_v35  ;;  %v14008_v35 = vld [vmem:[#allocation2 + $0x92] sm:$0xff] }
 0x45f   : > { %11215 = vmatprep.mubr.msk.f32.mxu1 %vm1104_vm1, %v13992_v27  ;;  %15028 = vst [vmem:[#allocation63_spill] sm:$0xff] %v14008_v35  ;;  %v14012_v27 = vld [vmem:[#allocation2 + $0x9a] sm:$0xff] }
 0x460   : > { %15029 = vst [vmem:[#allocation43_spill] sm:$0xff] %v14012_v27 }
 0x462   : > { %11216 = vmatmul.mubr.msk.f32.gmra.mrb[72].mxu1 %vm1104_vm1, %v13996_v23  ;;  %v14016_v23 = vld [vmem:[#allocation2 + $0xaa] sm:$0xff] }
 0x463   : > { %11218 = vmatprep.mubr.msk.f32.mxu1 %vm1104_vm1, %v14000_v31  ;;  %15030 = vst [vmem:[#allocation44_spill] sm:$0xff] %v14016_v23  ;;  %v14020_v31 = vld [vmem:[#allocation2 + $0xb2] sm:$0xff] }
 0x464   : > { %15031 = vst [vmem:[#allocation45_spill] sm:$0xff] %v14020_v31 }
 0x466   : > { %11219 = vmatmul.mubr.msk.f32.gmra.mrb[74].mxu1 %vm1104_vm1, %v14004_v7  ;;  %v14024_v7 = vld [vmem:[#allocation2 + $0xc2] sm:$0xff] }
 0x467   : > { %11221 = vmatprep.mubr.msk.f32.mxu1 %vm1104_vm1, %v14008_v35  ;;  %15032 = vst [vmem:[#allocation46_spill] sm:$0xff] %v14024_v7  ;;  %v14028_v35 = vld [vmem:[#allocation2 + $0xca] sm:$0xff] }
 0x468   : > { %15033 = vst [vmem:[#allocation47_spill] sm:$0xff] %v14028_v35 }
 0x46a   : > { %11222 = vmatmul.mubr.msk.f32.gmra.mrb[76].mxu1 %vm1104_vm1, %v14012_v27  ;;  %v14032_v27 = vld [vmem:[#allocation2 + $0xda] sm:$0xff] }
 0x46b   : > { %11224 = vmatprep.mubr.msk.f32.mxu1 %vm1104_vm1, %v14016_v23  ;;  %15034 = vst [vmem:[#allocation48_spill] sm:$0xff] %v14032_v27  ;;  %v14036_v23 = vld [vmem:[#allocation2 + $0xe2] sm:$0xff] }
 0x46c   : > { %15035 = vst [vmem:[#allocation49_spill] sm:$0xff] %v14036_v23 }
 0x46e   : > { %11225 = vmatmul.mubr.msk.f32.gmra.mrb[78].mxu1 %vm1104_vm1, %v14020_v31  ;;  %v14040_v31 = vld [vmem:[#allocation2 + $0xf2] sm:$0xff] }
 0x46f   : > { %11227 = vmatprep.mubr.msk.f32.mxu1 %vm1104_vm1, %v14024_v7  ;;  %15036 = vst [vmem:[#allocation50_spill] sm:$0xff] %v14040_v31  ;;  %v14044_v7 = vld [vmem:[#allocation2 + $0xfa] sm:$0xff] }
 0x470   : > { %15037 = vst [vmem:[#allocation51_spill] sm:$0xff] %v14044_v7 }
 0x472   : > { %11228 = vmatmul.mubr.msk.f32.gmra.mrb[80].mxu1 %vm1104_vm1, %v14028_v35  ;;  %v14048_v35 = vld [vmem:[#allocation2 + $0x10a] sm:$0xff] }
 0x473   : > { %11230 = vmatprep.mubr.msk.f32.mxu1 %vm1104_vm1, %v14032_v27  ;;  %15038 = vst [vmem:[#allocation52_spill] sm:$0xff] %v14048_v35  ;;  %v14052_v27 = vld [vmem:[#allocation2 + $0x112] sm:$0xff] }
 0x474   : > { %15039 = vst [vmem:[#allocation53_spill] sm:$0xff] %v14052_v27 }
 0x476   : > { %11231 = vmatmul.mubr.msk.f32.gmra.mrb[82].mxu1 %vm1104_vm1, %v14036_v23  ;;  %v14056_v23 = vld [vmem:[#allocation2 + $0x122] sm:$0xff] }
 0x477   : > { %11233 = vmatprep.mubr.msk.f32.mxu1 %vm1104_vm1, %v14040_v31  ;;  %15040 = vst [vmem:[#allocation54_spill] sm:$0xff] %v14056_v23  ;;  %v14060_v31 = vld [vmem:[#allocation2 + $0x12a] sm:$0xff] }
 0x478   : > { %15041 = vst [vmem:[#allocation56_spill] sm:$0xff] %v14060_v31 }
 0x47a   : > { %11234 = vmatmul.mubr.msk.f32.gmra.mrb[84].mxu1 %vm1104_vm1, %v14044_v7  ;;  %v14064_v7 = vld [vmem:[#allocation2 + $0x13a] sm:$0xff] }
 0x47b   : > { %11236 = vmatprep.mubr.msk.f32.mxu1 %vm1104_vm1, %v14048_v35  ;;  %15042 = vst [vmem:[#allocation60_spill] sm:$0xff] %v14064_v7  ;;  %v14068_v35 = vld [vmem:[#allocation2 + $0x142] sm:$0xff] }
 0x47e   : > { %11237 = vmatmul.mubr.msk.f32.gmra.mrb[86].mxu1 %vm1104_vm1, %v14052_v27  ;;  %v14072_v27 = vld [vmem:[#allocation2 + $0x152] sm:$0xff] }
 0x47f   : > { %11239 = vmatprep.mubr.msk.f32.mxu1 %vm1104_vm1, %v14056_v23  ;;  %15043 = vst [vmem:[#allocation62_spill] sm:$0xff] %v14072_v27  ;;  %v14076_v23 = vld [vmem:[#allocation2 + $0x15a] sm:$0xff] }
 0x482   : > { %11240 = vmatmul.mubr.msk.f32.gmra.mrb[88].mxu1 %vm1104_vm1, %v14060_v31  ;;  %v14080_v31 = vld [vmem:[#allocation2 + $0x16a] sm:$0xff] }
 0x483   : > { %11242 = vmatprep.mubr.msk.f32.mxu1 %vm1104_vm1, %v14064_v7  ;;  %v14084_v7 = vld [vmem:[#allocation2 + $0x172] sm:$0xff] }
 0x486   : > { %11243 = vmatmul.mubr.msk.f32.gmra.mrb[90].mxu1 %vm1104_vm1, %v14068_v35 }
 0x487   : > { %11245 = vmatprep.mubr.msk.f32.mxu1 %vm1104_vm1, %v14072_v27  ;;  %v9616_v27 = vld [vmem:[%s14742_s7 + $0x28] sm:$0xff] }
 0x48a   : > { %11246 = vmatmul.mubr.msk.f32.gmra.mrb[92].mxu1 %vm1104_vm1, %v14076_v23 }
 0x48b   : > { %11248 = vmatprep.mubr.msk.f32.mxu1 %vm1104_vm1, %v14080_v31 }
 0x48e   : > { %11249 = vmatmul.mubr.msk.f32.gmra.mrb[94].mxu1 %vm1104_vm1, %v14084_v7 }
 0x48f   : > { %11253 = vmatprep.mubr.msk.f32.mxu1 %vm1104_vm1, %v13818_v25  ;;  %v14152_v25 = vld [vmem:[#allocation2 + $0x180] sm:$0xff] }
 0x492   : > { %11254 = vmatmul.mubr.msk.f32.vlgmr.msra.gmra.mrb[64].mxu1 %vm1104_vm1, %v13827_v44  ;;  %v14156_v44 = vld [vmem:[#allocation2 + $0x188] sm:$0xff] }
 0x493   : > { %11302 = vmatpush3.msra.mxu1 %v13963_v63  ;;  %11256 = vmatprep.mubr.msk.f32.mxu1 %vm1104_vm1, %v13832_v46  ;;  %v9649_v63 = vld [vmem:[%s14742_s7 + $0x30] sm:$0xff] }
 0x494   : > { %11351 = vmatprep.subr.mxu1 %v9616_v27 }
 0x496   : > { %11257 = vmatmul.mubr.msk.f32.gmra.mrb[66].mxu1 %vm1104_vm1, %v13839_v56 }
 0x497   : > { %11259 = vmatprep.mubr.msk.f32.mxu1 %vm1104_vm1, %v13844_v57 }
 0x49a   : > { %11260 = vmatmul.mubr.msk.f32.gmra.mrb[68].mxu1 %vm1104_vm1, %v13852_v30 }
 0x49b   : > { %11262 = vmatprep.mubr.msk.f32.mxu1 %vm1104_vm1, %v13856_v32 }
 0x49e   : > { %11263 = vmatmul.mubr.msk.f32.gmra.mrb[70].mxu1 %vm1104_vm1, %v13864_v59 }
 0x49f   : > { %11265 = vmatprep.mubr.msk.f32.mxu1 %vm1104_vm1, %v13868_v39 }
 0x4a2   : > { %11266 = vmatmul.mubr.msk.f32.gmra.mrb[72].mxu1 %vm1104_vm1, %v13874_v6 }
 0x4a3   : > { %11268 = vmatprep.mubr.msk.f32.mxu1 %vm1104_vm1, %v13878_v24 }
 0x4a6   : > { %11269 = vmatmul.mubr.msk.f32.gmra.mrb[74].mxu1 %vm1104_vm1, %v13883_v43 }
 0x4a7   : > { %11271 = vmatprep.mubr.msk.f32.mxu1 %vm1104_vm1, %v13887_v3 }
 0x4aa   : > { %11272 = vmatmul.mubr.msk.f32.gmra.mrb[76].mxu1 %vm1104_vm1, %v13891_v42 }
 0x4ab   : > { %11274 = vmatprep.mubr.msk.f32.mxu1 %vm1104_vm1, %v13895_v51 }
 0x4ae   : > { %11275 = vmatmul.mubr.msk.f32.gmra.mrb[78].mxu1 %vm1104_vm1, %v13899_v37 }
 0x4af   : > { %11277 = vmatprep.mubr.msk.f32.mxu1 %vm1104_vm1, %v13903_v21 }
 0x4b2   : > { %11278 = vmatmul.mubr.msk.f32.gmra.mrb[80].mxu1 %vm1104_vm1, %v13907_v13 }
 0x4b3   : > { %11280 = vmatprep.mubr.msk.f32.mxu1 %vm1104_vm1, %v13911_v38 }
 0x4b6   : > { %11281 = vmatmul.mubr.msk.f32.gmra.mrb[82].mxu1 %vm1104_vm1, %v13915_v18 }
 0x4b7   : > { %11283 = vmatprep.mubr.msk.f32.mxu1 %vm1104_vm1, %v13919_v4 }
 0x4ba   : > { %11284 = vmatmul.mubr.msk.f32.gmra.mrb[84].mxu1 %vm1104_vm1, %v13923_v10 }
 0x4bb   : > { %11286 = vmatprep.mubr.msk.f32.mxu1 %vm1104_vm1, %v13927_v54 }
 0x4be   : > { %11287 = vmatmul.mubr.msk.f32.gmra.mrb[86].mxu1 %vm1104_vm1, %v13931_v16 }
 0x4bf   : > { %11289 = vmatprep.mubr.msk.f32.mxu1 %vm1104_vm1, %v13935_v34 }
 0x4c2   : > { %11290 = vmatmul.mubr.msk.f32.gmra.mrb[88].mxu1 %vm1104_vm1, %v13939_v40 }
 0x4c3   : > { %11292 = vmatprep.mubr.msk.f32.mxu1 %vm1104_vm1, %v13943_v9 }
 0x4c6   : > { %11293 = vmatmul.mubr.msk.f32.gmra.mrb[90].mxu1 %vm1104_vm1, %v13947_v50 }
 0x4c7   : > { %11295 = vmatprep.mubr.msk.f32.mxu1 %vm1104_vm1, %v13951_v62 }
 0x4ca   : > { %11296 = vmatmul.mubr.msk.f32.gmra.mrb[92].mxu1 %vm1104_vm1, %v13955_v45 }
 0x4cb   : > { %11298 = vmatprep.mubr.msk.f32.mxu1 %vm1104_vm1, %v14152_v25 }
 0x4ce   : > { %11299 = vmatmul.mubr.msk.f32.gmra.mrb[94].mxu1 %vm1104_vm1, %v14156_v44 }
 0x4cf   : > { %11303 = vmatprep.mubr.msk.f32.mxu1 %vm1104_vm1, %v13586_v33  ;;  %v15044_v33 = vld [vmem:[#allocation34_spill] sm:$0xff] }
 0x4d2   : > { %11304 = vmatmul.mubr.msk.f32.vlgmr.msra.gmra.mrb[64].mxu1 %vm1104_vm1, %v13592_v15  ;;  %v15045_v15 = vld [vmem:[#allocation35_spill] sm:$0xff] }
 0x4d3   : > { %11352 = vmatpush3.msra.mxu1 %v9616_v27  ;;  %11306 = vmatprep.mubr.msk.f32.mxu1 %vm1104_vm1, %v13598_v5  ;;  %v14223_v5 = vld [vmem:[#allocation2 + $0x181] sm:$0xff]  ;;  %v15069_v27 = vld [vmem:[#allocation56_spill] sm:$0xff] }
 0x4d4   : > { %11401 = vmatprep.subr.mxu1 %v9649_v63 }
 0x4d6   : > { %11307 = vmatmul.mubr.msk.f32.gmra.mrb[66].mxu1 %vm1104_vm1, %v13604_v22  ;;  %v14227_v22 = vld [vmem:[#allocation2 + $0x189] sm:$0xff] }
 0x4d7   : > { %11309 = vmatprep.mubr.msk.f32.mxu1 %vm1104_vm1, %v13610_v2  ;;  %v15046_v2 = vld [vmem:[#allocation38_spill] sm:$0xff] }
 0x4da   : > { %11310 = vmatmul.mubr.msk.f32.gmra.mrb[68].mxu1 %vm1104_vm1, %v13616_v52  ;;  %v9682_v52 = vld [vmem:[%s14742_s7 + $0x38] sm:$0xff] }
 0x4db   : > { %11312 = vmatprep.mubr.msk.f32.mxu1 %vm1104_vm1, %v13622_v26  ;;  %v15047_v26 = vld [vmem:[#allocation39_spill] sm:$0xff] }
 0x4de   : > { %11313 = vmatmul.mubr.msk.f32.gmra.mrb[70].mxu1 %vm1104_vm1, %v13628_v28  ;;  %v15048_v28 = vld [vmem:[#allocation40_spill] sm:$0xff] }
 0x4df   : > { %11315 = vmatprep.mubr.msk.f32.mxu1 %vm1104_vm1, %v13640_v36  ;;  %v15049_v36 = vld [vmem:[#allocation41_spill] sm:$0xff] }
 0x4e2   : > { %11316 = vmatmul.mubr.msk.f32.gmra.mrb[72].mxu1 %vm1104_vm1, %v13647_v48  ;;  %v15050_v48 = vld [vmem:[#allocation42_spill] sm:$0xff] }
 0x4e3   : > { %11318 = vmatprep.mubr.msk.f32.mxu1 %vm1104_vm1, %v13657_v17  ;;  %v15051_v17 = vld [vmem:[#allocation55_spill] sm:$0xff] }
 0x4e6   : > { %11319 = vmatmul.mubr.msk.f32.gmra.mrb[74].mxu1 %vm1104_vm1, %v13665_v49  ;;  %v15052_v49 = vld [vmem:[#allocation57_spill] sm:$0xff] }
 0x4e7   : > { %11321 = vmatprep.mubr.msk.f32.mxu1 %vm1104_vm1, %v13673_v29  ;;  %v15053_v29 = vld [vmem:[#allocation58_spill] sm:$0xff] }
 0x4ea   : > { %11322 = vmatmul.mubr.msk.f32.gmra.mrb[76].mxu1 %vm1104_vm1, %v13681_v61  ;;  %v15054_v61 = vld [vmem:[#allocation59_spill] sm:$0xff] }
 0x4eb   : > { %11324 = vmatprep.mubr.msk.f32.mxu1 %vm1104_vm1, %v13689_v60  ;;  %v15055_v60 = vld [vmem:[#allocation61_spill] sm:$0xff] }
 0x4ee   : > { %11325 = vmatmul.mubr.msk.f32.gmra.mrb[78].mxu1 %vm1104_vm1, %v13697_v19  ;;  %v15056_v19 = vld [vmem:[#allocation63_spill] sm:$0xff] }
 0x4ef   : > { %11327 = vmatprep.mubr.msk.f32.mxu1 %vm1104_vm1, %v13705_v12  ;;  %v15057_v12 = vld [vmem:[#allocation43_spill] sm:$0xff] }
 0x4f2   : > { %11328 = vmatmul.mubr.msk.f32.gmra.mrb[80].mxu1 %vm1104_vm1, %v13713_v53  ;;  %v15058_v53 = vld [vmem:[#allocation44_spill] sm:$0xff] }
 0x4f3   : > { %11330 = vmatprep.mubr.msk.f32.mxu1 %vm1104_vm1, %v13721_v8  ;;  %v15059_v8 = vld [vmem:[#allocation45_spill] sm:$0xff] }
 0x4f6   : > { %11331 = vmatmul.mubr.msk.f32.gmra.mrb[82].mxu1 %vm1104_vm1, %v13729_v14  ;;  %v15060_v14 = vld [vmem:[#allocation46_spill] sm:$0xff] }
 0x4f7   : > { %11333 = vmatprep.mubr.msk.f32.mxu1 %vm1104_vm1, %v13737_v58  ;;  %v15061_v58 = vld [vmem:[#allocation47_spill] sm:$0xff] }
 0x4fa   : > { %11334 = vmatmul.mubr.msk.f32.gmra.mrb[84].mxu1 %vm1104_vm1, %v13745_v11  ;;  %v15062_v11 = vld [vmem:[#allocation48_spill] sm:$0xff] }
 0x4fb   : > { %11336 = vmatprep.mubr.msk.f32.mxu1 %vm1104_vm1, %v13753_v47  ;;  %v15063_v47 = vld [vmem:[#allocation49_spill] sm:$0xff] }
 0x4fe   : > { %11337 = vmatmul.mubr.msk.f32.gmra.mrb[86].mxu1 %vm1104_vm1, %v13761_v20  ;;  %v15064_v20 = vld [vmem:[#allocation50_spill] sm:$0xff] }
 0x4ff   : > { %11339 = vmatprep.mubr.msk.f32.mxu1 %vm1104_vm1, %v13769_v0  ;;  %v15065_v0 = vld [vmem:[#allocation51_spill] sm:$0xff] }
 0x502   : > { %11340 = vmatmul.mubr.msk.f32.gmra.mrb[88].mxu1 %vm1104_vm1, %v13777_v41  ;;  %v15066_v41 = vld [vmem:[#allocation52_spill] sm:$0xff] }
 0x503   : > { %11342 = vmatprep.mubr.msk.f32.mxu1 %vm1104_vm1, %v13784_v1  ;;  %v15067_v1 = vld [vmem:[#allocation53_spill] sm:$0xff] }
 0x506   : > { %11343 = vmatmul.mubr.msk.f32.gmra.mrb[90].mxu1 %vm1104_vm1, %v13791_v55  ;;  %v15068_v55 = vld [vmem:[#allocation54_spill] sm:$0xff] }
 0x507   : > { %11345 = vmatprep.mubr.msk.f32.mxu1 %vm1104_vm1, %v15044_v33  ;;  %v15071_v33 = vld [vmem:[#allocation62_spill] sm:$0xff] }
 0x50a   : > { %11346 = vmatmul.mubr.msk.f32.gmra.mrb[92].mxu1 %vm1104_vm1, %v15045_v15  ;;  %v14294_v15 = vld [vmem:[#allocation2 + $0x182] sm:$0xff] }
 0x50b   : > { %11348 = vmatprep.mubr.msk.f32.mxu1 %vm1104_vm1, %v14223_v5 }
 0x50e   : > { %11349 = vmatmul.mubr.msk.f32.gmra.mrb[94].mxu1 %vm1104_vm1, %v14227_v22 }
 0x50f   : > { %11353 = vmatprep.mubr.msk.f32.mxu1 %vm1104_vm1, %v15046_v2  ;;  %v14298_v2 = vld [vmem:[#allocation2 + $0x18a] sm:$0xff] }
 0x512   : > { %11354 = vmatmul.mubr.msk.f32.vlgmr.msra.gmra.mrb[64].mxu1 %vm1104_vm1, %v15047_v26  ;;  %v9715_v26 = vld [vmem:[%s14742_s7 + $0x40] sm:$0xff] }
 0x513   : > { %11402 = vmatpush3.msra.mxu1 %v9649_v63  ;;  %11356 = vmatprep.mubr.msk.f32.mxu1 %vm1104_vm1, %v15048_v28  ;;  %v15070_v63 = vld [vmem:[#allocation60_spill] sm:$0xff]  ;;  %v7389_v28 = vld [vmem:[#allocation2 + $0x199] sm:$0xff] }
 0x514   : > { %11451 = vmatprep.subr.mxu1 %v9682_v52 }
 0x516   : > { %11357 = vmatmul.mubr.msk.f32.gmra.mrb[66].mxu1 %vm1104_vm1, %v15049_v36  ;;  %v7390_v36 = vld [vmem:[#allocation2 + $0x1a1] sm:$0xff] }
 0x517   : > { %11359 = vmatprep.mubr.msk.f32.mxu1 %vm1104_vm1, %v15050_v48  ;;  %v7746_v48 = vld [vmem:[#allocation2 + $0x32] sm:$0xff] }
 0x51a   : > { %11360 = vmatmul.mubr.msk.f32.gmra.mrb[68].mxu1 %vm1104_vm1, %v15051_v17  ;;  %v7747_v17 = vld [vmem:[#allocation2 + $0x3a] sm:$0xff] }
 0x51b   : > { %11362 = vmatprep.mubr.msk.f32.mxu1 %vm1104_vm1, %v15052_v49  ;;  %v7748_v49 = vld [vmem:[#allocation2 + $0x4a] sm:$0xff] }
 0x51e   : > { %11363 = vmatmul.mubr.msk.f32.gmra.mrb[70].mxu1 %vm1104_vm1, %v15053_v29  ;;  %v7749_v29 = vld [vmem:[#allocation2 + $0x52] sm:$0xff] }
 0x51f   : > { %11365 = vmatprep.mubr.msk.f32.mxu1 %vm1104_vm1, %v15054_v61  ;;  %v7752_v61 = vld [vmem:[#allocation2 + $0x7a] sm:$0xff] }
 0x522   : > { %11366 = vmatmul.mubr.msk.f32.gmra.mrb[72].mxu1 %vm1104_vm1, %v15055_v60  ;;  %v7753_v60 = vld [vmem:[#allocation2 + $0x82] sm:$0xff] }
 0x523   : > { %11368 = vmatprep.mubr.msk.f32.mxu1 %vm1104_vm1, %v15056_v19  ;;  %v7754_v19 = vld [vmem:[#allocation2 + $0x92] sm:$0xff] }
 0x526   : > { %11369 = vmatmul.mubr.msk.f32.gmra.mrb[74].mxu1 %vm1104_vm1, %v15057_v12 }
 0x527   : > { %11371 = vmatprep.mubr.msk.f32.mxu1 %vm1104_vm1, %v15058_v53 }
 0x52a   : > { %11372 = vmatmul.mubr.msk.f32.gmra.mrb[76].mxu1 %vm1104_vm1, %v15059_v8 }
 0x52b   : > { %11374 = vmatprep.mubr.msk.f32.mxu1 %vm1104_vm1, %v15060_v14 }
 0x52e   : > { %11375 = vmatmul.mubr.msk.f32.gmra.mrb[78].mxu1 %vm1104_vm1, %v15061_v58 }
 0x52f   : > { %11377 = vmatprep.mubr.msk.f32.mxu1 %vm1104_vm1, %v15062_v11 }
 0x532   : > { %11378 = vmatmul.mubr.msk.f32.gmra.mrb[80].mxu1 %vm1104_vm1, %v15063_v47 }
 0x533   : > { %11380 = vmatprep.mubr.msk.f32.mxu1 %vm1104_vm1, %v15064_v20 }
 0x536   : > { %11381 = vmatmul.mubr.msk.f32.gmra.mrb[82].mxu1 %vm1104_vm1, %v15065_v0 }
 0x537   : > { %11383 = vmatprep.mubr.msk.f32.mxu1 %vm1104_vm1, %v15066_v41 }
 0x53a   : > { %11384 = vmatmul.mubr.msk.f32.gmra.mrb[84].mxu1 %vm1104_vm1, %v15067_v1 }
 0x53b   : > { %11386 = vmatprep.mubr.msk.f32.mxu1 %vm1104_vm1, %v15068_v55 }
 0x53e   : > { %11387 = vmatmul.mubr.msk.f32.gmra.mrb[86].mxu1 %vm1104_vm1, %v15069_v27 }
 0x53f   : > { %11389 = vmatprep.mubr.msk.f32.mxu1 %vm1104_vm1, %v15070_v63 }
 0x542   : > { %11390 = vmatmul.mubr.msk.f32.gmra.mrb[88].mxu1 %vm1104_vm1, %v14068_v35 }
 0x543   : > { %11392 = vmatprep.mubr.msk.f32.mxu1 %vm1104_vm1, %v15071_v33 }
 0x546   : > { %11393 = vmatmul.mubr.msk.f32.gmra.mrb[90].mxu1 %vm1104_vm1, %v14076_v23 }
 0x547   : > { %11395 = vmatprep.mubr.msk.f32.mxu1 %vm1104_vm1, %v14080_v31 }
 0x54a   : > { %11396 = vmatmul.mubr.msk.f32.gmra.mrb[92].mxu1 %vm1104_vm1, %v14084_v7 }
 0x54b   : > { %11398 = vmatprep.mubr.msk.f32.mxu1 %vm1104_vm1, %v14294_v15 }
 0x54e   : > { %11399 = vmatmul.mubr.msk.f32.gmra.mrb[94].mxu1 %vm1104_vm1, %v14298_v2 }
 0x54f   : > { %11403 = vmatprep.mubr.msk.f32.mxu1 %vm1104_vm1, %v13832_v46  ;;  %v7002_v46 = vld [vmem:[#allocation2 + $0x198] sm:$0xff] }
 0x552   : > { %11404 = vmatmul.mubr.msk.f32.vlgmr.msra.gmra.mrb[64].mxu1 %vm1104_vm1, %v13839_v56  ;;  %v7003_v56 = vld [vmem:[#allocation2 + $0x1a0] sm:$0xff] }
 0x553   : > { %11452 = vmatpush3.msra.mxu1 %v9682_v52  ;;  %11406 = vmatprep.mubr.msk.f32.mxu1 %vm1104_vm1, %v13844_v57  ;;  %v7359_v57 = vld [vmem:[#allocation2 + $0x31] sm:$0xff] }
 0x554   : > { %11501 = vmatprep.subr.mxu1 %v9715_v26  ;;  %v7386_v52 = vld [vmem:[#allocation2 + $0x171] sm:$0xff] }
 0x556   : > { %11407 = vmatmul.mubr.msk.f32.gmra.mrb[66].mxu1 %vm1104_vm1, %v13852_v30  ;;  %v8278_v30 = vld [vmem:[%s14744_s9] sm:$0xff] }
 0x557   : > { %11409 = vmatprep.mubr.msk.f32.mxu1 %vm1104_vm1, %v13856_v32  ;;  %11601 = vmatprep.subr.mxu0 %v8278_v30  ;;  %v7360_v32 = vld [vmem:[#allocation2 + $0x39] sm:$0xff] }
 0x558   : > { %11602 = vmatpush3.msra.mxu0 %v8278_v30 }
 0x55a   : > { %11410 = vmatmul.mubr.msk.f32.gmra.mrb[68].mxu1 %vm1104_vm1, %v13864_v59  ;;  %v7361_v59 = vld [vmem:[#allocation2 + $0x49] sm:$0xff] }
 0x55b   : > { %11412 = vmatprep.mubr.msk.f32.mxu1 %vm1104_vm1, %v13868_v39  ;;  %v7362_v39 = vld [vmem:[#allocation2 + $0x51] sm:$0xff] }
 0x55e   : > { %11413 = vmatmul.mubr.msk.f32.gmra.mrb[70].mxu1 %vm1104_vm1, %v13874_v6  ;;  %v7363_v6 = vld [vmem:[#allocation2 + $0x61] sm:$0xff] }
 0x55f   : > { %11415 = vmatprep.mubr.msk.f32.mxu1 %vm1104_vm1, %v13878_v24  ;;  %v7364_v24 = vld [vmem:[#allocation2 + $0x69] sm:$0xff] }
 0x562   : > { %11416 = vmatmul.mubr.msk.f32.gmra.mrb[72].mxu1 %vm1104_vm1, %v13883_v43  ;;  %v7365_v43 = vld [vmem:[#allocation2 + $0x79] sm:$0xff] }
 0x563   : > { %11418 = vmatprep.mubr.msk.f32.mxu1 %vm1104_vm1, %v13887_v3  ;;  %v7366_v3 = vld [vmem:[#allocation2 + $0x81] sm:$0xff] }
 0x566   : > { %11419 = vmatmul.mubr.msk.f32.gmra.mrb[74].mxu1 %vm1104_vm1, %v13891_v42  ;;  %v7367_v42 = vld [vmem:[#allocation2 + $0x91] sm:$0xff] }
 0x567   : > { %11421 = vmatprep.mubr.msk.f32.mxu1 %vm1104_vm1, %v13895_v51  ;;  %v7368_v51 = vld [vmem:[#allocation2 + $0x99] sm:$0xff] }
 0x56a   : > { %11422 = vmatmul.mubr.msk.f32.gmra.mrb[76].mxu1 %vm1104_vm1, %v13899_v37  ;;  %v7369_v37 = vld [vmem:[#allocation2 + $0xa9] sm:$0xff] }
 0x56b   : > { %11424 = vmatprep.mubr.msk.f32.mxu1 %vm1104_vm1, %v13903_v21  ;;  %v7370_v21 = vld [vmem:[#allocation2 + $0xb1] sm:$0xff] }
 0x56e   : > { %11425 = vmatmul.mubr.msk.f32.gmra.mrb[78].mxu1 %vm1104_vm1, %v13907_v13  ;;  %v7371_v13 = vld [vmem:[#allocation2 + $0xc1] sm:$0xff] }
 0x56f   : > { %11427 = vmatprep.mubr.msk.f32.mxu1 %vm1104_vm1, %v13911_v38  ;;  %v7372_v38 = vld [vmem:[#allocation2 + $0xc9] sm:$0xff] }
 0x572   : > { %11428 = vmatmul.mubr.msk.f32.gmra.mrb[80].mxu1 %vm1104_vm1, %v13915_v18  ;;  %v7373_v18 = vld [vmem:[#allocation2 + $0xd9] sm:$0xff] }
 0x573   : > { %11430 = vmatprep.mubr.msk.f32.mxu1 %vm1104_vm1, %v13919_v4  ;;  %v7374_v4 = vld [vmem:[#allocation2 + $0xe1] sm:$0xff] }
 0x576   : > { %11431 = vmatmul.mubr.msk.f32.gmra.mrb[82].mxu1 %vm1104_vm1, %v13923_v10  ;;  %v7375_v10 = vld [vmem:[#allocation2 + $0xf1] sm:$0xff] }
 0x577   : > { %11433 = vmatprep.mubr.msk.f32.mxu1 %vm1104_vm1, %v13927_v54  ;;  %v7376_v54 = vld [vmem:[#allocation2 + $0xf9] sm:$0xff] }
 0x57a   : > { %11434 = vmatmul.mubr.msk.f32.gmra.mrb[84].mxu1 %vm1104_vm1, %v13931_v16  ;;  %v7377_v16 = vld [vmem:[#allocation2 + $0x109] sm:$0xff] }
 0x57b   : > { %11436 = vmatprep.mubr.msk.f32.mxu1 %vm1104_vm1, %v13935_v34  ;;  %v7378_v34 = vld [vmem:[#allocation2 + $0x111] sm:$0xff] }
 0x57e   : > { %11437 = vmatmul.mubr.msk.f32.gmra.mrb[86].mxu1 %vm1104_vm1, %v13939_v40  ;;  %v7379_v40 = vld [vmem:[#allocation2 + $0x121] sm:$0xff] }
 0x57f   : > { %11439 = vmatprep.mubr.msk.f32.mxu1 %vm1104_vm1, %v13943_v9  ;;  %v7380_v9 = vld [vmem:[#allocation2 + $0x129] sm:$0xff] }
 0x582   : > { %11440 = vmatmul.mubr.msk.f32.gmra.mrb[88].mxu1 %vm1104_vm1, %v13947_v50  ;;  %v7381_v50 = vld [vmem:[#allocation2 + $0x139] sm:$0xff] }
 0x583   : > { %11442 = vmatprep.mubr.msk.f32.mxu1 %vm1104_vm1, %v13951_v62  ;;  %v7382_v62 = vld [vmem:[#allocation2 + $0x141] sm:$0xff] }
 0x586   : > { %11443 = vmatmul.mubr.msk.f32.gmra.mrb[90].mxu1 %vm1104_vm1, %v13955_v45  ;;  %v7383_v45 = vld [vmem:[#allocation2 + $0x151] sm:$0xff] }
 0x587   : > { %11445 = vmatprep.mubr.msk.f32.mxu1 %vm1104_vm1, %v14152_v25  ;;  %v7384_v25 = vld [vmem:[#allocation2 + $0x159] sm:$0xff] }
 0x58a   : > { %11446 = vmatmul.mubr.msk.f32.gmra.mrb[92].mxu1 %vm1104_vm1, %v14156_v44  ;;  %v7385_v44 = vld [vmem:[#allocation2 + $0x169] sm:$0xff] }
 0x58b   : > { %11448 = vmatprep.mubr.msk.f32.mxu1 %vm1104_vm1, %v7002_v46  ;;  %v15076_v46 = vld [vmem:[#allocation6_spill] sm:$0xff] }
 0x58e   : > { %11449 = vmatmul.mubr.msk.f32.gmra.mrb[94].mxu1 %vm1104_vm1, %v7003_v56  ;;  %v15077_v56 = vmax.f32 %v15076_v46, 0.0 }
 0x58f   : > { %11453 = vmatprep.mubr.msk.f32.mxu1 %vm1104_vm1, %v7359_v57 }
 0x592   : > { %11454 = vmatmul.mubr.msk.f32.vlgmr.msra.gmra.mrb[64].mxu1 %vm1104_vm1, %v7360_v32  ;;  %v15078_v32 = vld [vmem:[#allocation7_spill] sm:$0xff] }
 0x593   : > { %11502 = vmatpush3.msra.mxu1 %v9715_v26  ;;  %11456 = vmatprep.mubr.msk.f32.mxu1 %vm1104_vm1, %v7361_v59  ;;  %v15079_v59 = vmax.f32 %v15078_v32, 0.0 }
 0x596   : > { %11457 = vmatmul.mubr.msk.f32.gmra.mrb[66].mxu1 %vm1104_vm1, %v7362_v39 }
 0x597   : > { %11459 = vmatprep.mubr.msk.f32.mxu1 %vm1104_vm1, %v7363_v6 }
 0x59a   : > { %11460 = vmatmul.mubr.msk.f32.gmra.mrb[68].mxu1 %vm1104_vm1, %v7364_v24 }
 0x59b   : > { %11462 = vmatprep.mubr.msk.f32.mxu1 %vm1104_vm1, %v7365_v43 }
 0x59e   : > { %11463 = vmatmul.mubr.msk.f32.gmra.mrb[70].mxu1 %vm1104_vm1, %v7366_v3 }
 0x59f   : > { %11465 = vmatprep.mubr.msk.f32.mxu1 %vm1104_vm1, %v7367_v42 }
 0x5a2   : > { %11466 = vmatmul.mubr.msk.f32.gmra.mrb[72].mxu1 %vm1104_vm1, %v7368_v51 }
 0x5a3   : > { %11468 = vmatprep.mubr.msk.f32.mxu1 %vm1104_vm1, %v7369_v37 }
 0x5a6   : > { %11469 = vmatmul.mubr.msk.f32.gmra.mrb[74].mxu1 %vm1104_vm1, %v7370_v21  ;;  %v15080_v21 = vld [vmem:[#allocation8_spill] sm:$0xff] }
 0x5a7   : > { %11471 = vmatprep.mubr.msk.f32.mxu1 %vm1104_vm1, %v7371_v13  ;;  %v15081_v13 = vmax.f32 %v15080_v21, 0.0 }
 0x5aa   : > { %11472 = vmatmul.mubr.msk.f32.gmra.mrb[76].mxu1 %vm1104_vm1, %v7372_v38 }
 0x5ab   : > { %11474 = vmatprep.mubr.msk.f32.mxu1 %vm1104_vm1, %v7373_v18 }
 0x5ae   : > { %11475 = vmatmul.mubr.msk.f32.gmra.mrb[78].mxu1 %vm1104_vm1, %v7374_v4  ;;  %v15082_v4 = vld [vmem:[#allocation9_spill] sm:$0xff] }
 0x5af   : > { %11477 = vmatprep.mubr.msk.f32.mxu1 %vm1104_vm1, %v7375_v10  ;;  %v15083_v10 = vmax.f32 %v15082_v4, 0.0 }
 0x5b2   : > { %11478 = vmatmul.mubr.msk.f32.gmra.mrb[80].mxu1 %vm1104_vm1, %v7376_v54 }
 0x5b3   : > { %11480 = vmatprep.mubr.msk.f32.mxu1 %vm1104_vm1, %v7377_v16 }
 0x5b6   : > { %11481 = vmatmul.mubr.msk.f32.gmra.mrb[82].mxu1 %vm1104_vm1, %v7378_v34 }
 0x5b7   : > { %11483 = vmatprep.mubr.msk.f32.mxu1 %vm1104_vm1, %v7379_v40 }
 0x5ba   : > { %11484 = vmatmul.mubr.msk.f32.gmra.mrb[84].mxu1 %vm1104_vm1, %v7380_v9 }
 0x5bb   : > { %11486 = vmatprep.mubr.msk.f32.mxu1 %vm1104_vm1, %v7381_v50 }
 0x5be   : > { %11487 = vmatmul.mubr.msk.f32.gmra.mrb[86].mxu1 %vm1104_vm1, %v7382_v62 }
 0x5bf   : > { %11489 = vmatprep.mubr.msk.f32.mxu1 %vm1104_vm1, %v7383_v45 }
 0x5c2   : > { %11490 = vmatmul.mubr.msk.f32.gmra.mrb[88].mxu1 %vm1104_vm1, %v7384_v25  ;;  %v15084_v25 = vld [vmem:[#allocation10_spill] sm:$0xff] }
 0x5c3   : > { %11492 = vmatprep.mubr.msk.f32.mxu1 %vm1104_vm1, %v7385_v44  ;;  %v15085_v44 = vmax.f32 %v15084_v25, 0.0 }
 0x5c6   : > { %11493 = vmatmul.mubr.msk.f32.gmra.mrb[90].mxu1 %vm1104_vm1, %v7386_v52 }
 0x5c7   : > { %11495 = vmatprep.mubr.msk.f32.mxu1 %vm1104_vm1, %v14223_v5  ;;  %v7750_v5 = vld [vmem:[#allocation2 + $0x62] sm:$0xff] }
 0x5ca   : > { %11496 = vmatmul.mubr.msk.f32.gmra.mrb[92].mxu1 %vm1104_vm1, %v14227_v22  ;;  %v7751_v22 = vld [vmem:[#allocation2 + $0x6a] sm:$0xff] }
 0x5cb   : > { %11498 = vmatprep.mubr.msk.f32.mxu1 %vm1104_vm1, %v7389_v28 }
 0x5ce   : > { %11499 = vmatmul.mubr.msk.f32.gmra.mrb[94].mxu1 %vm1104_vm1, %v7390_v36  ;;  %v15086_v36 = vld [vmem:[#allocation11_spill] sm:$0xff] }
 0x5cf   : > { %11503 = vmatprep.mubr.msk.f32.mxu1 %vm1104_vm1, %v7746_v48  ;;  %v15087_v48 = vmax.f32 %v15086_v36, 0.0 }
 0x5d2   : > { %11504 = vmatmul.mubr.msk.f32.vlgmr.msra.gmra.mrb[64].mxu1 %vm1104_vm1, %v7747_v17 }
 0x5d3   : > { %11506 = vmatprep.mubr.msk.f32.mxu1 %vm1104_vm1, %v7748_v49 }
 0x5d6   : > { %11507 = vmatmul.mubr.msk.f32.gmra.mrb[66].mxu1 %vm1104_vm1, %v7749_v29 }
 0x5d7   : > { %11509 = vmatprep.mubr.msk.f32.mxu1 %vm1104_vm1, %v7750_v5 }
 0x5da   : > { %11510 = vmatmul.mubr.msk.f32.gmra.mrb[68].mxu1 %vm1104_vm1, %v7751_v22 }
 0x5db   : > { %11512 = vmatprep.mubr.msk.f32.mxu1 %vm1104_vm1, %v7752_v61 }
 0x5de   : > { %11513 = vmatmul.mubr.msk.f32.gmra.mrb[70].mxu1 %vm1104_vm1, %v7753_v60 }
 0x5df   : > { %11515 = vmatprep.mubr.msk.f32.mxu1 %vm1104_vm1, %v7754_v19 }
 0x5e2   : > { %11516 = vmatmul.mubr.msk.f32.gmra.mrb[72].mxu1 %vm1104_vm1, %v15057_v12  ;;  %v7776_v12 = vld [vmem:[#allocation2 + $0x19a] sm:$0xff] }
 0x5e3   : > { %11518 = vmatprep.mubr.msk.f32.mxu1 %vm1104_vm1, %v15058_v53 }
 0x5e6   : > { %11519 = vmatmul.mubr.msk.f32.gmra.mrb[74].mxu1 %vm1104_vm1, %v15059_v8 }
 0x5e7   : > { %11521 = vmatprep.mubr.msk.f32.mxu1 %vm1104_vm1, %v15060_v14 }
 0x5ea   : > { %11522 = vmatmul.mubr.msk.f32.gmra.mrb[76].mxu1 %vm1104_vm1, %v15061_v58 }
 0x5eb   : > { %11524 = vmatprep.mubr.msk.f32.mxu1 %vm1104_vm1, %v15062_v11  ;;  %v15072_v11 = vld [vmem:[#allocation4_spill] sm:$0xff] }
 0x5ee   : > { %11525 = vmatmul.mubr.msk.f32.gmra.mrb[78].mxu1 %vm1104_vm1, %v15063_v47  ;;  %v15073_v47 = vmax.f32 %v15072_v11, 0.0 }
 0x5ef   : > { %11527 = vmatprep.mubr.msk.f32.mxu1 %vm1104_vm1, %v15064_v20 }
 0x5f2   : > { %11528 = vmatmul.mubr.msk.f32.gmra.mrb[80].mxu1 %vm1104_vm1, %v15065_v0 }
 0x5f3   : > { %11530 = vmatprep.mubr.msk.f32.mxu1 %vm1104_vm1, %v15066_v41  ;;  %v15074_v41 = vld [vmem:[#allocation5_spill] sm:$0xff] }
 0x5f6   : > { %11531 = vmatmul.mubr.msk.f32.gmra.mrb[82].mxu1 %vm1104_vm1, %v15067_v1  ;;  %v15075_v1 = vmax.f32 %v15074_v41, 0.0 }
 0x5f7   : > { %11533 = vmatprep.mubr.msk.f32.mxu1 %vm1104_vm1, %v15068_v55 }
 0x5fa   : > { %11534 = vmatmul.mubr.msk.f32.gmra.mrb[84].mxu1 %vm1104_vm1, %v15069_v27 }
 0x5fb   : > { %11536 = vmatprep.mubr.msk.f32.mxu1 %vm1104_vm1, %v15070_v63 }
 0x5fe   : > { %11537 = vmatmul.mubr.msk.f32.gmra.mrb[86].mxu1 %vm1104_vm1, %v14068_v35  ;;  %v7777_v35 = vld [vmem:[#allocation2 + $0x1a2] sm:$0xff] }
 0x5ff   : > { %11539 = vmatprep.mubr.msk.f32.mxu1 %vm1104_vm1, %v15071_v33 }
 0x602   : > { %11540 = vmatmul.mubr.msk.f32.gmra.mrb[88].mxu1 %vm1104_vm1, %v14076_v23  ;;  %v14460_v23 = vld [vmem:[%s14743_s8] ss:$0 sm:$0xff] }
 0x603   : > { %11542 = vmatprep.mubr.msk.f32.mxu1 %vm1104_vm1, %v14080_v31  ;;  %v14462_v31 = vpop.permute.xlu0 %8211 }
 0x604   : > { %v8215_v20 = vmul.f32 %v14462_v31, %v15073_v47  ;;  %v8214_v55 = vmul.f32 %v14462_v31, %v15075_v1  ;;  %v8217_v57 = vmul.f32 %v14462_v31, %v15077_v56  ;;  %v8216_v39 = vmul.f32 %v14462_v31, %v15079_v59 }
 0x605   : > { %v8219_v38 = vmul.f32 %v14462_v31, %v15081_v13  ;;  %v8218_v54 = vmul.f32 %v14462_v31, %v15083_v10  ;;  %v8221_v52 = vmul.f32 %v14462_v31, %v15085_v44  ;;  %v8220_v17 = vmul.f32 %v14462_v31, %v15087_v48 }
 0x606   : > { %11543 = vmatmul.mubr.msk.f32.gmra.mrb[90].mxu1 %vm1104_vm1, %v14084_v7 }
 0x607   : > { %11545 = vmatprep.mubr.msk.f32.mxu1 %vm1104_vm1, %v14294_v15 }
 0x60a   : > { %11546 = vmatmul.mubr.msk.f32.gmra.mrb[92].mxu1 %vm1104_vm1, %v14298_v2 }
 0x60b   : > { %11548 = vmatprep.mubr.msk.f32.mxu1 %vm1104_vm1, %v7776_v12  ;;  %v15088_v12 = vld [vmem:[#allocation12_spill] sm:$0xff] }
 0x60e   : > { %11549 = vmatmul.mubr.msk.f32.gmra.mrb[94].mxu1 %vm1104_vm1, %v7777_v35  ;;  %v15089_v35 = vmax.f32 %v15088_v12, 0.0 }
 0x6a5   : > { %v11505_v7 = vpop.f32.mrb[64].mxu1 }
 0x6a6   : > { %v8141_v53 = vadd.f32 %v11505_v7, %v14460_v23  ;;  %v7942_v8 = vpop.f32.mrb[65].mxu1  ;;  %v8223_v7 = vmul.f32 %v14462_v31, %v15089_v35 }
 0x6a7   : > { %v8140_v14 = vadd.f32 %v14460_v23, %v7942_v8  ;;  %v15090_v8 = vld [vmem:[#allocation13_spill] sm:$0xff] }
 0x6a8   : > { %v8173_v58 = vmax.f32 %v8141_v53, 0.0 }
 0x6a9   : > { %v8172_v0 = vmax.f32 %v8140_v14, 0.0  ;;  %v11508_v27 = vpop.f32.mrb[66].mxu1  ;;  %v15091_v14 = vmax.f32 %v15090_v8, 0.0 }
 0x6aa   : > { %v8247_v63 = vadd.f32 %v8215_v20, %v8173_v58  ;;  %v8143_v33 = vadd.f32 %v11508_v27, %v14460_v23  ;;  %v7952_v15 = vpop.f32.mrb[67].mxu1  ;;  %v15092_v27 = vld [vmem:[#allocation14_spill] sm:$0xff] }
 0x6ab   : > { %v8246_v2 = vadd.f32 %v8214_v55, %v8172_v0  ;;  %v8142_v26 = vadd.f32 %v14460_v23, %v7952_v15  ;;  %v8222_v58 = vmul.f32 %v14462_v31, %v15091_v14 }
 0x6ac   : > { %v8175_v30 = vmax.f32 %v8143_v33, 0.0 }
 0x6ad   : > { %v8174_v6 = vmax.f32 %v8142_v26, 0.0  ;;  %v11511_v24 = vpop.f32.mrb[68].mxu1  ;;  %11603 = vmatprep.mubr.msk.f32.mxu0 %vm1104_vm1, %v8246_v2  ;;  %v15094_v2 = vld [vmem:[#allocation15_spill] sm:$0xff] }
 0x6ae   : > { %v8249_v43 = vadd.f32 %v8217_v57, %v8175_v30  ;;  %v8145_v3 = vadd.f32 %v11511_v24, %v14460_v23  ;;  %v7962_v42 = vpop.f32.mrb[69].mxu1  ;;  %11604 = vmatmul.mubr.msk.f32.vlgmr.msra.gmra.mrb[32].mxu0 %vm1104_vm1, %v8247_v63  ;;  %v15093_v63 = vmax.f32 %v15092_v27, 0.0  ;;  %v15095_v26 = vmax.f32 %v15094_v2, 0.0  ;;  %v15096_v24 = vld [vmem:[#allocation16_spill] sm:$0xff] }
 0x6af   : > { %v8248_v51 = vadd.f32 %v8216_v39, %v8174_v6  ;;  %v8144_v37 = vadd.f32 %v14460_v23, %v7962_v42 }
 0x6b0   : > { %v8177_v18 = vmax.f32 %v8145_v3, 0.0  ;;  %v8225_v33 = vmul.f32 %v14462_v31, %v15093_v63  ;;  %v8224_v46 = vmul.f32 %v14462_v31, %v15095_v26 }
 0x6b1   : > { %v8176_v16 = vmax.f32 %v8144_v37, 0.0  ;;  %v11514_v34 = vpop.f32.mrb[70].mxu1  ;;  %11606 = vmatprep.mubr.msk.f32.mxu0 %vm1104_vm1, %v8248_v51  ;;  %v15098_v51 = vld [vmem:[#allocation17_spill] sm:$0xff] }
 0x6b2   : > { %v8251_v40 = vadd.f32 %v8219_v38, %v8177_v18  ;;  %v8147_v9 = vadd.f32 %v11514_v34, %v14460_v23  ;;  %v7972_v50 = vpop.f32.mrb[71].mxu1  ;;  %11607 = vmatmul.mubr.msk.f32.gmra.mrb[34].mxu0 %vm1104_vm1, %v8249_v43  ;;  %v15097_v43 = vmax.f32 %v15096_v24, 0.0  ;;  %v15099_v37 = vmax.f32 %v15098_v51, 0.0  ;;  %v15100_v34 = vld [vmem:[#allocation18_spill] sm:$0xff] }
 0x6b3   : > { %v8250_v62 = vadd.f32 %v8218_v54, %v8176_v16  ;;  %v8146_v45 = vadd.f32 %v14460_v23, %v7972_v50 }
 0x6b4   : > { %v8179_v28 = vmax.f32 %v8147_v9, 0.0  ;;  %v8227_v3 = vmul.f32 %v14462_v31, %v15097_v43  ;;  %v8226_v21 = vmul.f32 %v14462_v31, %v15099_v37 }
 0x6b5   : > { %v8178_v49 = vmax.f32 %v8146_v45, 0.0  ;;  %v11517_v29 = vpop.f32.mrb[72].mxu1  ;;  %11609 = vmatprep.mubr.msk.f32.mxu0 %vm1104_vm1, %v8250_v62  ;;  %v15102_v62 = vld [vmem:[#allocation19_spill] sm:$0xff] }
 0x6b6   : > { %v8253_v5 = vadd.f32 %v8221_v52, %v8179_v28  ;;  %v8149_v22 = vadd.f32 %v11517_v29, %v14460_v23  ;;  %v7982_v61 = vpop.f32.mrb[73].mxu1  ;;  %11610 = vmatmul.mubr.msk.f32.gmra.mrb[36].mxu0 %vm1104_vm1, %v8251_v40  ;;  %v15101_v40 = vmax.f32 %v15100_v34, 0.0  ;;  %v15103_v45 = vmax.f32 %v15102_v62, 0.0  ;;  %v15104_v29 = vld [vmem:[#allocation20_spill] sm:$0xff] }
 0x6b7   : > { %v8252_v60 = vadd.f32 %v8220_v17, %v8178_v49  ;;  %v8148_v19 = vadd.f32 %v14460_v23, %v7982_v61 }
 0x6b8   : > { %v8181_v53 = vmax.f32 %v8149_v22, 0.0  ;;  %v8229_v9 = vmul.f32 %v14462_v31, %v15101_v40  ;;  %v8228_v25 = vmul.f32 %v14462_v31, %v15103_v45 }
 0x6b9   : > { %v8180_v11 = vmax.f32 %v8148_v19, 0.0  ;;  %v11520_v47 = vpop.f32.mrb[74].mxu1  ;;  %11612 = vmatprep.mubr.msk.f32.mxu0 %vm1104_vm1, %v8252_v60  ;;  %v15106_v60 = vld [vmem:[#allocation21_spill] sm:$0xff] }
 0x6ba   : > { %v8255_v20 = vadd.f32 %v8223_v7, %v8181_v53  ;;  %v8151_v0 = vadd.f32 %v11520_v47, %v14460_v23  ;;  %v7992_v41 = vpop.f32.mrb[75].mxu1  ;;  %11613 = vmatmul.mubr.msk.f32.gmra.mrb[38].mxu0 %vm1104_vm1, %v8253_v5  ;;  %v15105_v5 = vmax.f32 %v15104_v29, 0.0  ;;  %v15107_v19 = vmax.f32 %v15106_v60, 0.0  ;;  %v15108_v47 = vld [vmem:[#allocation22_spill] sm:$0xff] }
 0x6bb   : > { %v8254_v1 = vadd.f32 %v8222_v58, %v8180_v11  ;;  %v8150_v55 = vadd.f32 %v14460_v23, %v7992_v41 }
 0x6bc   : > { %v8183_v15 = vmax.f32 %v8151_v0, 0.0  ;;  %v8231_v22 = vmul.f32 %v14462_v31, %v15105_v5  ;;  %v8230_v12 = vmul.f32 %v14462_v31, %v15107_v19 }
 0x6bd   : > { %v8182_v56 = vmax.f32 %v8150_v55, 0.0  ;;  %v11523_v57 = vpop.f32.mrb[76].mxu1  ;;  %11615 = vmatprep.mubr.msk.f32.mxu0 %vm1104_vm1, %v8254_v1  ;;  %v15110_v1 = vld [vmem:[#allocation23_spill] sm:$0xff] }
 0x6be   : > { %v8257_v30 = vadd.f32 %v8225_v33, %v8183_v15  ;;  %v8153_v32 = vadd.f32 %v11523_v57, %v14460_v23  ;;  %v8002_v59 = vpop.f32.mrb[77].mxu1  ;;  %11616 = vmatmul.mubr.msk.f32.gmra.mrb[40].mxu0 %vm1104_vm1, %v8255_v20  ;;  %v15109_v20 = vmax.f32 %v15108_v47, 0.0  ;;  %v15111_v55 = vmax.f32 %v15110_v1, 0.0  ;;  %v15112_v57 = vld [vmem:[#allocation24_spill] sm:$0xff] }
 0x6bf   : > { %v8256_v39 = vadd.f32 %v8224_v46, %v8182_v56  ;;  %v8152_v6 = vadd.f32 %v14460_v23, %v8002_v59 }
 0x6c0   : > { %v8185_v42 = vmax.f32 %v8153_v32, 0.0  ;;  %v8233_v0 = vmul.f32 %v14462_v31, %v15109_v20  ;;  %v8232_v27 = vmul.f32 %v14462_v31, %v15111_v55 }
 0x6c1   : > { %v8184_v13 = vmax.f32 %v8152_v6, 0.0  ;;  %v11526_v38 = vpop.f32.mrb[78].mxu1  ;;  %11618 = vmatprep.mubr.msk.f32.mxu0 %vm1104_vm1, %v8256_v39  ;;  %v15114_v39 = vld [vmem:[#allocation25_spill] sm:$0xff] }
 0x6c2   : > { %v8259_v18 = vadd.f32 %v8227_v3, %v8185_v42  ;;  %v8155_v4 = vadd.f32 %v11526_v38, %v14460_v23  ;;  %v8012_v10 = vpop.f32.mrb[79].mxu1  ;;  %11619 = vmatmul.mubr.msk.f32.gmra.mrb[42].mxu0 %vm1104_vm1, %v8257_v30  ;;  %v15113_v30 = vmax.f32 %v15112_v57, 0.0  ;;  %v15115_v6 = vmax.f32 %v15114_v39, 0.0  ;;  %v15116_v38 = vld [vmem:[#allocation26_spill] sm:$0xff] }
 0x6c3   : > { %v8258_v54 = vadd.f32 %v8226_v21, %v8184_v13  ;;  %v8154_v16 = vadd.f32 %v14460_v23, %v8012_v10 }
 0x6c4   : > { %v8187_v50 = vmax.f32 %v8155_v4, 0.0  ;;  %v8235_v32 = vmul.f32 %v14462_v31, %v15113_v30  ;;  %v8234_v24 = vmul.f32 %v14462_v31, %v15115_v6 }
 0x6c5   : > { %v8186_v44 = vmax.f32 %v8154_v16, 0.0  ;;  %v11529_v52 = vpop.f32.mrb[80].mxu1  ;;  %11621 = vmatprep.mubr.msk.f32.mxu0 %vm1104_vm1, %v8258_v54  ;;  %v15118_v54 = vld [vmem:[#allocation27_spill] sm:$0xff] }
 0x6c6   : > { %v8261_v28 = vadd.f32 %v8229_v9, %v8187_v50  ;;  %v8157_v36 = vadd.f32 %v11529_v52, %v14460_v23  ;;  %v8022_v48 = vpop.f32.mrb[81].mxu1  ;;  %11622 = vmatmul.mubr.msk.f32.gmra.mrb[44].mxu0 %vm1104_vm1, %v8259_v18  ;;  %v15117_v18 = vmax.f32 %v15116_v38, 0.0  ;;  %v15119_v16 = vmax.f32 %v15118_v54, 0.0  ;;  %v15120_v52 = vld [vmem:[#allocation28_spill] sm:$0xff] }
 0x6c7   : > { %v8260_v17 = vadd.f32 %v8228_v25, %v8186_v44  ;;  %v8156_v49 = vadd.f32 %v14460_v23, %v8022_v48 }
 0x6c8   : > { %v8189_v61 = vmax.f32 %v8157_v36, 0.0  ;;  %v8237_v4 = vmul.f32 %v14462_v31, %v15117_v18  ;;  %v8236_v34 = vmul.f32 %v14462_v31, %v15119_v16 }
 0x6c9   : > { %v8188_v35 = vmax.f32 %v8156_v49, 0.0  ;;  %v11532_v7 = vpop.f32.mrb[82].mxu1  ;;  %11624 = vmatprep.mubr.msk.f32.mxu0 %vm1104_vm1, %v8260_v17  ;;  %v15122_v17 = vld [vmem:[#allocation29_spill] sm:$0xff] }
 0x6ca   : > { %v8263_v53 = vadd.f32 %v8231_v22, %v8189_v61  ;;  %v8159_v8 = vadd.f32 %v11532_v7, %v14460_v23  ;;  %v8032_v14 = vpop.f32.mrb[83].mxu1  ;;  %11625 = vmatmul.mubr.msk.f32.gmra.mrb[46].mxu0 %vm1104_vm1, %v8261_v28  ;;  %v15121_v28 = vmax.f32 %v15120_v52, 0.0  ;;  %v15123_v49 = vmax.f32 %v15122_v17, 0.0  ;;  %v15124_v7 = vld [vmem:[#allocation30_spill] sm:$0xff] }
 0x6cb   : > { %v8262_v58 = vadd.f32 %v8230_v12, %v8188_v35  ;;  %v8158_v11 = vadd.f32 %v14460_v23, %v8032_v14 }
 0x6cc   : > { %v8191_v41 = vmax.f32 %v8159_v8, 0.0  ;;  %v8239_v36 = vmul.f32 %v14462_v31, %v15121_v28  ;;  %v8238_v29 = vmul.f32 %v14462_v31, %v15123_v49 }
 0x6cd   : > { %v8190_v63 = vmax.f32 %v8158_v11, 0.0  ;;  %v11535_v33 = vpop.f32.mrb[84].mxu1  ;;  %11627 = vmatprep.mubr.msk.f32.mxu0 %vm1104_vm1, %v8262_v58  ;;  %v15126_v58 = vld [vmem:[#allocation31_spill] sm:$0xff] }
 0x6ce   : > { %v8265_v15 = vadd.f32 %v8233_v0, %v8191_v41  ;;  %v8161_v2 = vadd.f32 %v11535_v33, %v14460_v23  ;;  %v8042_v26 = vpop.f32.mrb[85].mxu1  ;;  %11628 = vmatmul.mubr.msk.f32.gmra.mrb[48].mxu0 %vm1104_vm1, %v8263_v53  ;;  %v15125_v53 = vmax.f32 %v15124_v7, 0.0  ;;  %v15127_v11 = vmax.f32 %v15126_v58, 0.0  ;;  %v15128_v33 = vld [vmem:[#allocation32_spill] sm:$0xff] }
 0x6cf   : > { %v8264_v46 = vadd.f32 %v8232_v27, %v8190_v63  ;;  %v8160_v56 = vadd.f32 %v14460_v23, %v8042_v26 }
 0x6d0   : > { %v8193_v59 = vmax.f32 %v8161_v2, 0.0  ;;  %v8241_v8 = vmul.f32 %v14462_v31, %v15125_v53  ;;  %v8240_v47 = vmul.f32 %v14462_v31, %v15127_v11 }
 0x6d1   : > { %v8192_v43 = vmax.f32 %v8160_v56, 0.0  ;;  %v11538_v3 = vpop.f32.mrb[86].mxu1  ;;  %11630 = vmatprep.mubr.msk.f32.mxu0 %vm1104_vm1, %v8264_v46  ;;  %v15130_v46 = vld [vmem:[#allocation33_spill] sm:$0xff] }
 0x6d2   : > { %v8267_v42 = vadd.f32 %v8235_v32, %v8193_v59  ;;  %v8163_v51 = vadd.f32 %v11538_v3, %v14460_v23  ;;  %v8052_v37 = vpop.f32.mrb[87].mxu1  ;;  %11631 = vmatmul.mubr.msk.f32.gmra.mrb[50].mxu0 %vm1104_vm1, %v8265_v15  ;;  %v15129_v15 = vmax.f32 %v15128_v33, 0.0  ;;  %v15131_v56 = vmax.f32 %v15130_v46, 0.0  ;;  %v15132_v3 = vld [vmem:[#allocation36_spill] sm:$0xff] }
 0x6d3   : > { %v8266_v21 = vadd.f32 %v8234_v24, %v8192_v43  ;;  %v8162_v13 = vadd.f32 %v14460_v23, %v8052_v37 }
 0x6d4   : > { %v8195_v10 = vmax.f32 %v8163_v51, 0.0  ;;  %v8243_v2 = vmul.f32 %v14462_v31, %v15129_v15  ;;  %v8242_v57 = vmul.f32 %v14462_v31, %v15131_v56 }
 0x6d5   : > { %v8194_v40 = vmax.f32 %v8162_v13, 0.0  ;;  %v11541_v9 = vpop.f32.mrb[88].mxu1  ;;  %11633 = vmatprep.mubr.msk.f32.mxu0 %vm1104_vm1, %v8266_v21  ;;  %v15134_v21 = vld [vmem:[#allocation37_spill] sm:$0xff] }
 0x6d6   : > { %v8269_v50 = vadd.f32 %v8237_v4, %v8195_v10  ;;  %v8165_v62 = vadd.f32 %v11541_v9, %v14460_v23  ;;  %v8062_v45 = vpop.f32.mrb[89].mxu1  ;;  %11634 = vmatmul.mubr.msk.f32.gmra.mrb[52].mxu0 %vm1104_vm1, %v8267_v42  ;;  %v15133_v42 = vmax.f32 %v15132_v3, 0.0  ;;  %v15135_v13 = vmax.f32 %v15134_v21, 0.0 }
 0x6d7   : > { %v8268_v25 = vadd.f32 %v8236_v34, %v8194_v40  ;;  %v8164_v44 = vadd.f32 %v14460_v23, %v8062_v45 }
 0x6d8   : > { %v8197_v48 = vmax.f32 %v8165_v62, 0.0  ;;  %v8245_v51 = vmul.f32 %v14462_v31, %v15133_v42  ;;  %v8244_v38 = vmul.f32 %v14462_v31, %v15135_v13 }
 0x6d9   : > { %v8196_v5 = vmax.f32 %v8164_v44, 0.0  ;;  %v11544_v22 = vpop.f32.mrb[90].mxu1  ;;  %11636 = vmatprep.mubr.msk.f32.mxu0 %vm1104_vm1, %v8268_v25 }
 0x6da   : > { %v8271_v61 = vadd.f32 %v8239_v36, %v8197_v48  ;;  %v8167_v60 = vadd.f32 %v11544_v22, %v14460_v23  ;;  %v8072_v19 = vpop.f32.mrb[91].mxu1  ;;  %11637 = vmatmul.mubr.msk.f32.gmra.mrb[54].mxu0 %vm1104_vm1, %v8269_v50 }
 0x6db   : > { %v8270_v12 = vadd.f32 %v8238_v29, %v8196_v5  ;;  %v8166_v35 = vadd.f32 %v14460_v23, %v8072_v19 }
 0x6dc   : > { %v8199_v14 = vmax.f32 %v8167_v60, 0.0 }
 0x6dd   : > { %v8198_v20 = vmax.f32 %v8166_v35, 0.0  ;;  %v11547_v0 = vpop.f32.mrb[92].mxu1  ;;  %11639 = vmatprep.mubr.msk.f32.mxu0 %vm1104_vm1, %v8270_v12 }
 0x6de   : > { %v8273_v41 = vadd.f32 %v8241_v8, %v8199_v14  ;;  %v8169_v1 = vadd.f32 %v11547_v0, %v14460_v23  ;;  %v8082_v55 = vpop.f32.mrb[93].mxu1  ;;  %11640 = vmatmul.mubr.msk.f32.gmra.mrb[56].mxu0 %vm1104_vm1, %v8271_v61 }
 0x6df   : > { %v8272_v27 = vadd.f32 %v8240_v47, %v8198_v20  ;;  %v8168_v63 = vadd.f32 %v14460_v23, %v8082_v55 }
 0x6e0   : > { %v8201_v26 = vmax.f32 %v8169_v1, 0.0 }
 0x6e1   : > { %v8200_v30 = vmax.f32 %v8168_v63, 0.0  ;;  %v11550_v32 = vpop.f32.mrb[94].mxu1  ;;  %11642 = vmatprep.mubr.msk.f32.mxu0 %vm1104_vm1, %v8272_v27 }
 0x6e2   : > { %v8275_v59 = vadd.f32 %v8243_v2, %v8201_v26  ;;  %v8171_v39 = vadd.f32 %v11550_v32, %v14460_v23  ;;  %v8092_v6 = vpop.f32.mrb[95].mxu1  ;;  %11643 = vmatmul.mubr.msk.f32.gmra.mrb[58].mxu0 %vm1104_vm1, %v8273_v41 }
 0x6e3   : > { %v8274_v24 = vadd.f32 %v8242_v57, %v8200_v30  ;;  %v8170_v43 = vadd.f32 %v14460_v23, %v8092_v6  ;;  %v14627_v23 = vld [vmem:[%s14746_s11] ss:$0 sm:$0xff] }
 0x6e4   : > { %v8203_v37 = vmax.f32 %v8171_v39, 0.0 }
 0x6e5   : > { %v8202_v18 = vmax.f32 %v8170_v43, 0.0  ;;  %11645 = vmatprep.mubr.msk.f32.mxu0 %vm1104_vm1, %v8274_v24 }
 0x6e6   : > { %v8277_v4 = vadd.f32 %v8245_v51, %v8203_v37  ;;  %11646 = vmatmul.mubr.msk.f32.gmra.mrb[60].mxu0 %vm1104_vm1, %v8275_v59 }
 0x6e7   : > { %v8276_v10 = vadd.f32 %v8244_v38, %v8202_v18 }
 0x6e9   : > { %11648 = vmatprep.mubr.msk.f32.mxu0 %vm1104_vm1, %v8276_v10 }
 0x6ea   : > { %11649 = vmatmul.mubr.msk.f32.gmra.mrb[62].mxu0 %vm1104_vm1, %v8277_v4 }
 0x781   : > { %v11605_v54 = vpop.f32.mrb[32].mxu0 }
 0x782   : > { %v8930_v16 = vadd.f32 %v11605_v54, %v14627_v23  ;;  %v8763_v31 = vpop.f32.mrb[33].mxu0 }
 0x783   : > { %v8929_v34 = vadd.f32 %v14627_v23, %v8763_v31 }
 0x784   : > { %v8962_v40 = vmax.f32 %v8930_v16, 0.0 }
 0x785   : > { %v8961_v9 = vmax.f32 %v8929_v34, 0.0  ;;  %v11608_v50 = vpop.f32.mrb[34].mxu0 }
 0x786   : > { %8994 = vst.msk [vmem:[%s14635_s18 + $0x8] sm:$0xff] %vm484_vm0, %v8962_v40  ;;  %v8932_v62 = vadd.f32 %v11608_v50, %v14627_v23  ;;  %v8773_v45 = vpop.f32.mrb[35].mxu0 }
 0x787   : > { %8993 = vst.msk [vmem:[%s14635_s18] sm:$0xff] %vm484_vm0, %v8961_v9  ;;  %v8931_v25 = vadd.f32 %v14627_v23, %v8773_v45 }
 0x788   : > { %v8964_v44 = vmax.f32 %v8932_v62, 0.0 }
 0x789   : > { %v8963_v52 = vmax.f32 %v8931_v25, 0.0  ;;  %v11611_v28 = vpop.f32.mrb[36].mxu0 }
 0x78a   : > { %8996 = vst.msk [vmem:[%s14635_s18 + $0x18] sm:$0xff] %vm484_vm0, %v8964_v44  ;;  %v8934_v36 = vadd.f32 %v11611_v28, %v14627_v23  ;;  %v8783_v48 = vpop.f32.mrb[37].mxu0 }
 0x78b   : > { %8995 = vst.msk [vmem:[%s14635_s18 + $0x10] sm:$0xff] %vm484_vm0, %v8963_v52  ;;  %v8933_v17 = vadd.f32 %v14627_v23, %v8783_v48 }
 0x78c   : > { %v8966_v49 = vmax.f32 %v8934_v36, 0.0 }
 0x78d   : > { %v8965_v29 = vmax.f32 %v8933_v17, 0.0  ;;  %v11614_v5 = vpop.f32.mrb[38].mxu0 }
 0x78e   : > { %8998 = vst.msk [vmem:[%s14635_s18 + $0x28] sm:$0xff] %vm484_vm0, %v8966_v49  ;;  %v8936_v22 = vadd.f32 %v11614_v5, %v14627_v23  ;;  %v8793_v61 = vpop.f32.mrb[39].mxu0 }
 0x78f   : > { %8997 = vst.msk [vmem:[%s14635_s18 + $0x20] sm:$0xff] %vm484_vm0, %v8965_v29  ;;  %v8935_v60 = vadd.f32 %v14627_v23, %v8793_v61 }
 0x790   : > { %v8968_v19 = vmax.f32 %v8936_v22, 0.0 }
 0x791   : > { %v8967_v12 = vmax.f32 %v8935_v60, 0.0  ;;  %v11617_v35 = vpop.f32.mrb[40].mxu0 }
 0x792   : > { %9000 = vst.msk [vmem:[%s14635_s18 + $0x38] sm:$0xff] %vm484_vm0, %v8968_v19  ;;  %v8938_v7 = vadd.f32 %v11617_v35, %v14627_v23  ;;  %v8803_v53 = vpop.f32.mrb[41].mxu0 }
 0x793   : > { %8999 = vst.msk [vmem:[%s14635_s18 + $0x30] sm:$0xff] %vm484_vm0, %v8967_v12  ;;  %v8937_v8 = vadd.f32 %v14627_v23, %v8803_v53 }
 0x794   : > { %v8970_v14 = vmax.f32 %v8938_v7, 0.0 }
 0x795   : > { %v8969_v58 = vmax.f32 %v8937_v8, 0.0  ;;  %v11620_v11 = vpop.f32.mrb[42].mxu0 }
 0x796   : > { %9002 = vst.msk [vmem:[%s14635_s18 + $0x48] sm:$0xff] %vm484_vm0, %v8970_v14  ;;  %v8940_v47 = vadd.f32 %v11620_v11, %v14627_v23  ;;  %v8813_v20 = vpop.f32.mrb[43].mxu0 }
 0x797   : > { %9001 = vst.msk [vmem:[%s14635_s18 + $0x40] sm:$0xff] %vm484_vm0, %v8969_v58  ;;  %v8939_v0 = vadd.f32 %v14627_v23, %v8813_v20 }
 0x798   : > { %v8972_v41 = vmax.f32 %v8940_v47, 0.0 }
 0x799   : > { %v8971_v1 = vmax.f32 %v8939_v0, 0.0  ;;  %v11623_v55 = vpop.f32.mrb[44].mxu0 }
 0x79a   : > { %9004 = vst.msk [vmem:[%s14635_s18 + $0x58] sm:$0xff] %vm484_vm0, %v8972_v41  ;;  %v8942_v27 = vadd.f32 %v11623_v55, %v14627_v23  ;;  %v8823_v63 = vpop.f32.mrb[45].mxu0 }
 0x79b   : > { %9003 = vst.msk [vmem:[%s14635_s18 + $0x50] sm:$0xff] %vm484_vm0, %v8971_v1  ;;  %v8941_v33 = vadd.f32 %v14627_v23, %v8823_v63 }
 0x79c   : > { %v8974_v15 = vmax.f32 %v8942_v27, 0.0 }
 0x79d   : > { %v8973_v2 = vmax.f32 %v8941_v33, 0.0  ;;  %v11626_v26 = vpop.f32.mrb[46].mxu0 }
 0x79e   : > { %9006 = vst.msk [vmem:[%s14635_s18 + $0x68] sm:$0xff] %vm484_vm0, %v8974_v15  ;;  %v8944_v46 = vadd.f32 %v11626_v26, %v14627_v23  ;;  %v8833_v56 = vpop.f32.mrb[47].mxu0 }
 0x79f   : > { %9005 = vst.msk [vmem:[%s14635_s18 + $0x60] sm:$0xff] %vm484_vm0, %v8973_v2  ;;  %v8943_v57 = vadd.f32 %v14627_v23, %v8833_v56 }
 0x7a0   : > { %v8976_v30 = vmax.f32 %v8944_v46, 0.0 }
 0x7a1   : > { %v8975_v32 = vmax.f32 %v8943_v57, 0.0  ;;  %v11629_v59 = vpop.f32.mrb[48].mxu0 }
 0x7a2   : > { %9008 = vst.msk [vmem:[%s14635_s18 + $0x78] sm:$0xff] %vm484_vm0, %v8976_v30  ;;  %v8946_v39 = vadd.f32 %v11629_v59, %v14627_v23  ;;  %v8843_v6 = vpop.f32.mrb[49].mxu0 }
 0x7a3   : > { %9007 = vst.msk [vmem:[%s14635_s18 + $0x70] sm:$0xff] %vm484_vm0, %v8975_v32  ;;  %v8945_v24 = vadd.f32 %v14627_v23, %v8843_v6 }
 0x7a4   : > { %v8978_v43 = vmax.f32 %v8946_v39, 0.0 }
 0x7a5   : > { %v8977_v3 = vmax.f32 %v8945_v24, 0.0  ;;  %v11632_v42 = vpop.f32.mrb[50].mxu0 }
 0x7a6   : > { %9010 = vst.msk [vmem:[%s14635_s18 + $0x88] sm:$0xff] %vm484_vm0, %v8978_v43  ;;  %v8948_v51 = vadd.f32 %v11632_v42, %v14627_v23  ;;  %v8853_v37 = vpop.f32.mrb[51].mxu0 }
 0x7a7   : > { %9009 = vst.msk [vmem:[%s14635_s18 + $0x80] sm:$0xff] %vm484_vm0, %v8977_v3  ;;  %v8947_v21 = vadd.f32 %v14627_v23, %v8853_v37 }
 0x7a8   : > { %v8980_v13 = vmax.f32 %v8948_v51, 0.0 }
 0x7a9   : > { %v8979_v38 = vmax.f32 %v8947_v21, 0.0  ;;  %v11635_v18 = vpop.f32.mrb[52].mxu0 }
 0x7aa   : > { %9012 = vst.msk [vmem:[%s14635_s18 + $0x98] sm:$0xff] %vm484_vm0, %v8980_v13  ;;  %v8950_v4 = vadd.f32 %v11635_v18, %v14627_v23  ;;  %v8863_v10 = vpop.f32.mrb[53].mxu0 }
 0x7ab   : > { %9011 = vst.msk [vmem:[%s14635_s18 + $0x90] sm:$0xff] %vm484_vm0, %v8979_v38  ;;  %v8949_v54 = vadd.f32 %v14627_v23, %v8863_v10 }
 0x7ac   : > { %v8982_v16 = vmax.f32 %v8950_v4, 0.0 }
 0x7ad   : > { %v8981_v31 = vmax.f32 %v8949_v54, 0.0  ;;  %v11638_v34 = vpop.f32.mrb[54].mxu0 }
 0x7ae   : > { %9014 = vst.msk [vmem:[%s14635_s18 + $0xa8] sm:$0xff] %vm484_vm0, %v8982_v16  ;;  %v8952_v40 = vadd.f32 %v11638_v34, %v14627_v23  ;;  %v8873_v9 = vpop.f32.mrb[55].mxu0 }
 0x7af   : > { %9013 = vst.msk [vmem:[%s14635_s18 + $0xa0] sm:$0xff] %vm484_vm0, %v8981_v31  ;;  %v8951_v50 = vadd.f32 %v14627_v23, %v8873_v9 }
 0x7b0   : > { %v8984_v62 = vmax.f32 %v8952_v40, 0.0 }
 0x7b1   : > { %v8983_v45 = vmax.f32 %v8951_v50, 0.0  ;;  %v11641_v25 = vpop.f32.mrb[56].mxu0 }
 0x7b2   : > { %9016 = vst.msk [vmem:[%s14635_s18 + $0xb8] sm:$0xff] %vm484_vm0, %v8984_v62  ;;  %v8954_v44 = vadd.f32 %v11641_v25, %v14627_v23  ;;  %v8883_v52 = vpop.f32.mrb[57].mxu0 }
 0x7b3   : > { %9015 = vst.msk [vmem:[%s14635_s18 + $0xb0] sm:$0xff] %vm484_vm0, %v8983_v45  ;;  %v8953_v28 = vadd.f32 %v14627_v23, %v8883_v52 }
 0x7b4   : > { %v8986_v36 = vmax.f32 %v8954_v44, 0.0 }
 0x7b5   : > { %v8985_v48 = vmax.f32 %v8953_v28, 0.0  ;;  %v11644_v17 = vpop.f32.mrb[58].mxu0 }
 0x7b6   : > { %9018 = vst.msk [vmem:[%s14635_s18 + $0xc8] sm:$0xff] %vm484_vm0, %v8986_v36  ;;  %v8956_v49 = vadd.f32 %v11644_v17, %v14627_v23  ;;  %v8893_v29 = vpop.f32.mrb[59].mxu0 }
 0x7b7   : > { %9017 = vst.msk [vmem:[%s14635_s18 + $0xc0] sm:$0xff] %vm484_vm0, %v8985_v48  ;;  %v8955_v5 = vadd.f32 %v14627_v23, %v8893_v29 }
 0x7b8   : > { %v8988_v22 = vmax.f32 %v8956_v49, 0.0 }
 0x7b9   : > { %v8987_v61 = vmax.f32 %v8955_v5, 0.0  ;;  %v11647_v60 = vpop.f32.mrb[60].mxu0 }
 0x7ba   : > { %9020 = vst.msk [vmem:[%s14635_s18 + $0xd8] sm:$0xff] %vm484_vm0, %v8988_v22  ;;  %v8958_v19 = vadd.f32 %v11647_v60, %v14627_v23  ;;  %v8903_v12 = vpop.f32.mrb[61].mxu0 }
 0x7bb   : > { %9019 = vst.msk [vmem:[%s14635_s18 + $0xd0] sm:$0xff] %vm484_vm0, %v8987_v61  ;;  %v8957_v35 = vadd.f32 %v14627_v23, %v8903_v12 }
 0x7bc   : > { %v8990_v7 = vmax.f32 %v8958_v19, 0.0 }
 0x7bd   : > { %v8989_v53 = vmax.f32 %v8957_v35, 0.0  ;;  %v11650_v8 = vpop.f32.mrb[62].mxu0 }
 0x7be   : > { %9022 = vst.msk [vmem:[%s14635_s18 + $0xe8] sm:$0xff] %vm484_vm0, %v8990_v7  ;;  %v8960_v14 = vadd.f32 %v11650_v8, %v14627_v23  ;;  %v8913_v58 = vpop.f32.mrb[63].mxu0 }
 0x7bf   : > { %9021 = vst.msk [vmem:[%s14635_s18 + $0xe0] sm:$0xff] %vm484_vm0, %v8989_v53  ;;  %v8959_v11 = vadd.f32 %v14627_v23, %v8913_v58 }
 0x7c0   : > { %v8992_v47 = vmax.f32 %v8960_v14, 0.0 }
 0x7c1   : > { %v8991_v20 = vmax.f32 %v8959_v11, 0.0 }
 0x7c2   : > { %9024 = vst.msk [vmem:[%s14635_s18 + $0xf8] sm:$0xff] %vm484_vm0, %v8992_v47 }
 0x7c3   : > { %9023 = vst.msk [vmem:[%s14635_s18 + $0xf0] sm:$0xff] %vm484_vm0, %v8991_v20 }
 0x7c4 PF: > { %s25_s27 = sadd.s32 1, %s12251_s27  }
 0x7c5   : > { %p22_p4 = scmp.ge.s32.totalorder %s25_s27, 4  }
 0x7c7   :  { %24 = sbr.rel (!%p22_p4) target bundleno = 3 (0x3), region = 120 }

</bundles_post_ra>
